<compile_context>
chip_gen: v7x
topology: tpu7x:2x2x1
jax: 0.10.0
libtpu: 0.0.40
codegen_flags: <defaults>
</compile_context>

<pallas_src>
import jax
import jax.numpy as jnp
from jax.experimental import pallas as pl
from jax.experimental.pallas import tpu as pltpu

IN_DIM = 1 * 28 * 28            # 784
H1, H2, H3 = 1024, 512, 256
OUT = 10
OUT_PAD = 128                   # lane-dense output width


def _round_up(n, m):
    return ((n + m - 1) // m) * m


def mlp_kernel(x_ref,
               w1_ref, b1_ref,
               w2_ref, b2_ref,
               w3_ref, b3_ref,
               w4_ref, b4_ref,
               o_ref):
    # x_ref: (tm, 784) f32 row tile; weights bf16 (VMEM-resident); biases f32.
    # All 4 matmuls accumulate in f32 on the MXU; cast/bias/ReLU on the VPU.
    x = x_ref[...].astype(jnp.bfloat16)

    h = jnp.dot(x, w1_ref[...],
                preferred_element_type=jnp.float32) + b1_ref[...]
    h = jnp.maximum(h, 0.0)

    h = jnp.dot(h.astype(jnp.bfloat16), w2_ref[...],
                preferred_element_type=jnp.float32) + b2_ref[...]
    h = jnp.maximum(h, 0.0)

    h = jnp.dot(h.astype(jnp.bfloat16), w3_ref[...],
                preferred_element_type=jnp.float32) + b3_ref[...]
    h = jnp.maximum(h, 0.0)

    o_ref[...] = (jnp.dot(h.astype(jnp.bfloat16), w4_ref[...],
                          preferred_element_type=jnp.float32)
                  + b4_ref[...]).astype(o_ref.dtype)


def init_params(key):
    """Deterministic init mimicking nn.Linear defaults (uniform +/- 1/sqrt(fan_in)).

    Weights stored as (in_features, out_features): y = x @ W + b == torch x @ W_pt.T + b.
    """
    dims = [(IN_DIM, H1), (H1, H2), (H2, H3), (H3, OUT)]
    params = []
    for i, (fan_in, fan_out) in enumerate(dims):
        kw, kb = jax.random.split(jax.random.fold_in(key, i))
        bound = 1.0 / (fan_in ** 0.5)
        w = jax.random.uniform(kw, (fan_in, fan_out), jnp.float32, -bound, bound)
        b = jax.random.uniform(kb, (1, fan_out), jnp.float32, -bound, bound)
        params.append((w, b))
    return params


def prepare_params(params):
    """Cast / pad logical f32 params into kernel layout (done once at weight-prep).

    Weights -> bf16 (layer-1 kept at K = 784, no K pad), last layer padded
    10 -> 128 lanes, biases stay f32.
    """
    (w1, b1), (w2, b2), (w3, b3), (w4, b4) = params
    w4p = jnp.zeros((H3, OUT_PAD), jnp.float32).at[:, :OUT].set(w4)
    b4p = jnp.zeros((1, OUT_PAD), jnp.float32).at[:, :OUT].set(b4)
    ws = [w1.astype(jnp.bfloat16), w2.astype(jnp.bfloat16),
          w3.astype(jnp.bfloat16), w4p.astype(jnp.bfloat16)]
    bs = [b1.astype(jnp.float32), b2.astype(jnp.float32),
          b3.astype(jnp.float32), b4p.astype(jnp.float32)]
    return ws, bs


def _pick_tile(rows, tm_max):
    # Multiple of 8 sublanes, capped at tm_max; keep >= 2 grid steps when
    # there are enough rows so v7x's two TensorCores both get work.
    half = _round_up((rows + 1) // 2, 8)
    return max(8, min(tm_max, half))


def mlp_forward(x_nchw, prepared, *, tm_max=1024):
    ws, bs = prepared
    B = x_nchw.shape[0]
    x = x_nchw.reshape(B, IN_DIM).astype(jnp.float32)   # torch: x.view(-1, 784)

    # Minimal sublane pad (at most 7 rows, no-op for typical batch sizes);
    # any further remainder is handled by a partial final grid block.
    rows = _round_up(max(B, 8), 8)
    if rows != B:
        x = jnp.pad(x, ((0, rows - B), (0, 0)))

    tm = _pick_tile(rows, tm_max)
    grid = (pl.cdiv(rows, tm),)

    flat_args = [x]
    # 784 == full last dim of x, so a non-128-multiple block width is legal.
    in_specs = [pl.BlockSpec((tm, IN_DIM), lambda i: (i, 0))]
    for w, b in zip(ws, bs):
        flat_args += [w, b]
        # Constant index_map -> weights/biases stay resident in VMEM.
        in_specs += [pl.BlockSpec(w.shape, lambda i: (0, 0)),
                     pl.BlockSpec(b.shape, lambda i: (0, 0))]

    out = pl.pallas_call(
        mlp_kernel,
        out_shape=jax.ShapeDtypeStruct((rows, OUT_PAD), jnp.float32),
        grid=grid,
        in_specs=in_specs,
        out_specs=pl.BlockSpec((tm, OUT_PAD), lambda i: (i, 0)),
        compiler_params=pltpu.CompilerParams(
            dimension_semantics=("parallel",),
            vmem_limit_bytes=48 << 20),
    )(*flat_args)

    return out[:B, :OUT]


def mlp_reference(x_nchw, params):
    """Pure-JAX reference mirroring the kernel's quantization points
    (bf16 weights / activations, f32 bias + accumulation)."""
    h = x_nchw.reshape(x_nchw.shape[0], IN_DIM).astype(jnp.float32)
    for i, (w, b) in enumerate(params):
        hq = h.astype(jnp.bfloat16).astype(jnp.float32)
        wq = w.astype(jnp.bfloat16).astype(jnp.float32)
        h = hq @ wq + b
        if i < len(params) - 1:
            h = jnp.maximum(h, 0.0)
    return h


if __name__ == "__main__":
    key = jax.random.PRNGKey(0)
    k_x, k_p = jax.random.split(key)

    B = 2
    x = jax.random.normal(k_x, (B, 1, 28, 28), jnp.float32)   # NCHW input
    params = init_params(k_p)
    prepared = prepare_params(params)

    out = jax.block_until_ready(mlp_forward(x, prepared))
    ref = jax.block_until_ready(mlp_reference(x, params))

    assert out.shape == (B, OUT), out.shape
    max_err = float(jnp.max(jnp.abs(out - ref)))
    assert jnp.allclose(out, ref, atol=5e-3, rtol=5e-3), max_err

    print("KERNEL_OK")
</pallas_src>

<mosaic_0001>
module attributes {stable_mosaic.version = 11 : i64} {
  func.func @mlp_kernel(%arg0: i32, %arg1: memref<8x784xf32, #tpu.memory_space<vmem>>, %arg2: memref<784x1024xbf16, #tpu.memory_space<vmem>>, %arg3: memref<1x1024xf32, #tpu.memory_space<vmem>>, %arg4: memref<1024x512xbf16, #tpu.memory_space<vmem>>, %arg5: memref<1x512xf32, #tpu.memory_space<vmem>>, %arg6: memref<512x256xbf16, #tpu.memory_space<vmem>>, %arg7: memref<1x256xf32, #tpu.memory_space<vmem>>, %arg8: memref<256x128xbf16, #tpu.memory_space<vmem>>, %arg9: memref<1x128xf32, #tpu.memory_space<vmem>>, %arg10: memref<8x128xf32, #tpu.memory_space<vmem>>) attributes {dimension_semantics = [#tpu.dimension_semantics<parallel>], iteration_bounds = array<i64: 1>, scalar_prefetch = 0 : i64, scratch_operands = 0 : i64, tpu.core_type = #tpu.core_type<tc>, window_params = [{transform_indices = @transform_0, window_bounds = array<i64: 8, 784>}, {pipeline_mode = #tpu.pipeline_mode<synchronous>, transform_indices = @transform_1, window_bounds = array<i64: 784, 1024>}, {pipeline_mode = #tpu.pipeline_mode<synchronous>, transform_indices = @transform_2, window_bounds = array<i64: 1, 1024>}, {pipeline_mode = #tpu.pipeline_mode<synchronous>, transform_indices = @transform_3, window_bounds = array<i64: 1024, 512>}, {pipeline_mode = #tpu.pipeline_mode<synchronous>, transform_indices = @transform_4, window_bounds = array<i64: 1, 512>}, {pipeline_mode = #tpu.pipeline_mode<synchronous>, transform_indices = @transform_5, window_bounds = array<i64: 512, 256>}, {pipeline_mode = #tpu.pipeline_mode<synchronous>, transform_indices = @transform_6, window_bounds = array<i64: 1, 256>}, {pipeline_mode = #tpu.pipeline_mode<synchronous>, transform_indices = @transform_7, window_bounds = array<i64: 256, 128>}, {pipeline_mode = #tpu.pipeline_mode<synchronous>, transform_indices = @transform_8, window_bounds = array<i64: 1, 128>}, {transform_indices = @transform_9, window_bounds = array<i64: 8, 128>}]} {
    %c0 = arith.constant 0 : index
    %c0_0 = arith.constant 0 : index
    %0 = vector.load %arg1[%c0, %c0_0] : memref<8x784xf32, #tpu.memory_space<vmem>>, vector<8x784xf32>
    %1 = arith.truncf %0 : vector<8x784xf32> to vector<8x784xbf16>
    %c0_1 = arith.constant 0 : index
    %c0_2 = arith.constant 0 : index
    %2 = vector.load %arg2[%c0_1, %c0_2] : memref<784x1024xbf16, #tpu.memory_space<vmem>>, vector<784x1024xbf16>
    %cst = arith.constant dense<0.000000e+00> : vector<8x1024xf32>
    %3 = tpu.matmul %1, %2, %cst {dimension_numbers = #tpu.dot_dimension_numbers<[1], [0], [0], [1], [0, 0, 1, 1], [], []>} : vector<8x784xbf16>, vector<784x1024xbf16>, vector<8x1024xf32> -> vector<8x1024xf32>
    %c0_3 = arith.constant 0 : index
    %c0_4 = arith.constant 0 : index
    %4 = vector.load %arg3[%c0_3, %c0_4] : memref<1x1024xf32, #tpu.memory_space<vmem>>, vector<1x1024xf32>
    %5 = vector.broadcast %4 : vector<1x1024xf32> to vector<8x1024xf32>
    %6 = arith.addf %3, %5 : vector<8x1024xf32>
    %cst_5 = arith.constant 0.000000e+00 : f32
    %7 = vector.broadcast %cst_5 : f32 to vector<8x1024xf32>
    %8 = arith.maximumf %6, %7 : vector<8x1024xf32>
    %9 = arith.truncf %8 : vector<8x1024xf32> to vector<8x1024xbf16>
    %c0_6 = arith.constant 0 : index
    %c0_7 = arith.constant 0 : index
    %10 = vector.load %arg4[%c0_6, %c0_7] : memref<1024x512xbf16, #tpu.memory_space<vmem>>, vector<1024x512xbf16>
    %cst_8 = arith.constant dense<0.000000e+00> : vector<8x512xf32>
    %11 = tpu.matmul %9, %10, %cst_8 {dimension_numbers = #tpu.dot_dimension_numbers<[1], [0], [0], [1], [0, 0, 1, 1], [], []>} : vector<8x1024xbf16>, vector<1024x512xbf16>, vector<8x512xf32> -> vector<8x512xf32>
    %c0_9 = arith.constant 0 : index
    %c0_10 = arith.constant 0 : index
    %12 = vector.load %arg5[%c0_9, %c0_10] : memref<1x512xf32, #tpu.memory_space<vmem>>, vector<1x512xf32>
    %13 = vector.broadcast %12 : vector<1x512xf32> to vector<8x512xf32>
    %14 = arith.addf %11, %13 : vector<8x512xf32>
    %cst_11 = arith.constant 0.000000e+00 : f32
    %15 = vector.broadcast %cst_11 : f32 to vector<8x512xf32>
    %16 = arith.maximumf %14, %15 : vector<8x512xf32>
    %17 = arith.truncf %16 : vector<8x512xf32> to vector<8x512xbf16>
    %c0_12 = arith.constant 0 : index
    %c0_13 = arith.constant 0 : index
    %18 = vector.load %arg6[%c0_12, %c0_13] : memref<512x256xbf16, #tpu.memory_space<vmem>>, vector<512x256xbf16>
    %cst_14 = arith.constant dense<0.000000e+00> : vector<8x256xf32>
    %19 = tpu.matmul %17, %18, %cst_14 {dimension_numbers = #tpu.dot_dimension_numbers<[1], [0], [0], [1], [0, 0, 1, 1], [], []>} : vector<8x512xbf16>, vector<512x256xbf16>, vector<8x256xf32> -> vector<8x256xf32>
    %c0_15 = arith.constant 0 : index
    %c0_16 = arith.constant 0 : index
    %20 = vector.load %arg7[%c0_15, %c0_16] : memref<1x256xf32, #tpu.memory_space<vmem>>, vector<1x256xf32>
    %21 = vector.broadcast %20 : vector<1x256xf32> to vector<8x256xf32>
    %22 = arith.addf %19, %21 : vector<8x256xf32>
    %cst_17 = arith.constant 0.000000e+00 : f32
    %23 = vector.broadcast %cst_17 : f32 to vector<8x256xf32>
    %24 = arith.maximumf %22, %23 : vector<8x256xf32>
    %25 = arith.truncf %24 : vector<8x256xf32> to vector<8x256xbf16>
    %c0_18 = arith.constant 0 : index
    %c0_19 = arith.constant 0 : index
    %26 = vector.load %arg8[%c0_18, %c0_19] : memref<256x128xbf16, #tpu.memory_space<vmem>>, vector<256x128xbf16>
    %cst_20 = arith.constant dense<0.000000e+00> : vector<8x128xf32>
    %27 = tpu.matmul %25, %26, %cst_20 {dimension_numbers = #tpu.dot_dimension_numbers<[1], [0], [0], [1], [0, 0, 1, 1], [], []>} : vector<8x256xbf16>, vector<256x128xbf16>, vector<8x128xf32> -> vector<8x128xf32>
    %c0_21 = arith.constant 0 : index
    %c0_22 = arith.constant 0 : index
    %28 = vector.load %arg9[%c0_21, %c0_22] : memref<1x128xf32, #tpu.memory_space<vmem>>, vector<1x128xf32>
    %29 = vector.broadcast %28 : vector<1x128xf32> to vector<8x128xf32>
    %30 = arith.addf %27, %29 : vector<8x128xf32>
    %c0_23 = arith.constant 0 : index
    %c0_24 = arith.constant 0 : index
    %31 = vector.load %arg10[%c0_23, %c0_24] : memref<8x128xf32, #tpu.memory_space<vmem>>, vector<8x128xf32>
    tpu.vector_store %arg10[%c0_23, %c0_24], %30 {strides = array<i32>} : memref<8x128xf32, #tpu.memory_space<vmem>>, vector<8x128xf32>,
    return
  }
  func.func @transform_0(%arg0: i32) -> (i32, i32) {
    %c0_i32 = arith.constant 0 : i32
    %c0_i32_0 = arith.constant 0 : i32
    return %arg0, %c0_i32 : i32, i32
  }
  func.func @transform_1(%arg0: i32) -> (i32, i32) {
    %c0_i32 = arith.constant 0 : i32
    %c0_i32_0 = arith.constant 0 : i32
    %c0_i32_1 = arith.constant 0 : i32
    return %c0_i32, %c0_i32_0 : i32, i32
  }
  func.func @transform_2(%arg0: i32) -> (i32, i32) {
    %c0_i32 = arith.constant 0 : i32
    %c0_i32_0 = arith.constant 0 : i32
    %c0_i32_1 = arith.constant 0 : i32
    return %c0_i32, %c0_i32_0 : i32, i32
  }
  func.func @transform_3(%arg0: i32) -> (i32, i32) {
    %c0_i32 = arith.constant 0 : i32
    %c0_i32_0 = arith.constant 0 : i32
    %c0_i32_1 = arith.constant 0 : i32
    return %c0_i32, %c0_i32_0 : i32, i32
  }
  func.func @transform_4(%arg0: i32) -> (i32, i32) {
    %c0_i32 = arith.constant 0 : i32
    %c0_i32_0 = arith.constant 0 : i32
    %c0_i32_1 = arith.constant 0 : i32
    return %c0_i32, %c0_i32_0 : i32, i32
  }
  func.func @transform_5(%arg0: i32) -> (i32, i32) {
    %c0_i32 = arith.constant 0 : i32
    %c0_i32_0 = arith.constant 0 : i32
    %c0_i32_1 = arith.constant 0 : i32
    return %c0_i32, %c0_i32_0 : i32, i32
  }
  func.func @transform_6(%arg0: i32) -> (i32, i32) {
    %c0_i32 = arith.constant 0 : i32
    %c0_i32_0 = arith.constant 0 : i32
    %c0_i32_1 = arith.constant 0 : i32
    return %c0_i32, %c0_i32_0 : i32, i32
  }
  func.func @transform_7(%arg0: i32) -> (i32, i32) {
    %c0_i32 = arith.constant 0 : i32
    %c0_i32_0 = arith.constant 0 : i32
    %c0_i32_1 = arith.constant 0 : i32
    return %c0_i32, %c0_i32_0 : i32, i32
  }
  func.func @transform_8(%arg0: i32) -> (i32, i32) {
    %c0_i32 = arith.constant 0 : i32
    %c0_i32_0 = arith.constant 0 : i32
    %c0_i32_1 = arith.constant 0 : i32
    return %c0_i32, %c0_i32_0 : i32, i32
  }
  func.func @transform_9(%arg0: i32) -> (i32, i32) {
    %c0_i32 = arith.constant 0 : i32
    %c0_i32_0 = arith.constant 0 : i32
    return %arg0, %c0_i32 : i32, i32
  }
}

</mosaic_0001>

<bundles_post_ra>
// kernel: tpu_custom_call.1
= control target key start
LH: loop header
LB: loop body
LE: loop exit
PB: predicated region body
PF: predicated region fallthrough
CT: control target
= control target key end

     0   :  { %14 = vsyncpa [#allocation3], 0  ;;  %s7718_s0 = inlined_call_operand.hbm [shape: f32[8,784], index: 0, kind: input, shape index: {}]   ;;  %s7719_s1 = inlined_call_operand.hbm [shape: bf16[784,1024], index: 1, kind: input, shape index: {}]   ;;  %s7720_s2 = inlined_call_operand.hbm [shape: f32[1,1024], index: 2, kind: input, shape index: {}]   ;;  %s7721_s3 = inlined_call_operand.hbm [shape: bf16[1024,512], index: 3, kind: input, shape index: {}]   ;;  %s7722_s4 = inlined_call_operand.hbm [shape: f32[1,512], index: 4, kind: input, shape index: {}]   ;;  %s7723_s5 = inlined_call_operand.hbm [shape: bf16[512,256], index: 5, kind: input, shape index: {}]   ;;  %s7724_s6 = inlined_call_operand.hbm [shape: f32[1,256], index: 6, kind: input, shape index: {}]   ;;  %s7725_s7 = inlined_call_operand.hbm [shape: bf16[256,128], index: 7, kind: input, shape index: {}]   ;;  %s7726_s8 = inlined_call_operand.hbm [shape: f32[1,128], index: 8, kind: input, shape index: {}]   ;;  %s7727_s9 = inlined_call_operand.hbm [shape: f32[8,128], index: 9, kind: output, shape index: {}]  }
   0x1   :  { %15 = vsyncpa [#allocation6], 0 }
   0x2   :  { %16 = vsyncpa [#allocation9], 0 }
   0x3   :  { %17 = vsyncpa [#allocation12], 0 }
   0x4   :  { %18 = vsyncpa [#allocation15], 0 }
   0x5   :  { %19 = vsyncpa [#allocation4], 0  ;;  %s7388_s30 = smov [#allocation5]   ;;  %s7156_s13 = scalar_lea.hbm %s7719_s1, 50176 }
   0x6   :  { %s35_s10 = sshll.u32 %s7388_s30, 4  ;;  %p7157_p0 = scmp.ne.s32.totalorder %s7719_s1, %s7156_s13  ;;  %s36_s10 = int_to_ptr.vmem [resolvable:$true] %s35_s10 }
   0x7   :  { %p7160_p1 = scmp.lt.u32.totalorder %s7156_s13, %s7719_s1 }
   0x9   :  { %p7162_p2 = pnand %p7160_p1, %p7157_p0 }
   0xb   :  { %7165 = shalt.err (!%p7162_p2)
}
   0xc   :  { %s7166_s18 = scalar_lea.vmem %s36_s10, 50176  ;;  %p7171_p4 = scmp.lt.s32.totalorder %s36_s10, %s36_s10 }
   0xd   :  { %p7167_p3 = scmp.ne.s32.totalorder %s36_s10, %s7166_s18  ;;  %p7172_p5 = scmp.lt.s32.totalorder %s7166_s18, %s7166_s18 }
   0xf   :  { %p7173_p6 = por %p7172_p5, %p7171_p4 }
  0x11   :  { %p7174_p7 = pnand %p7173_p6, %p7167_p3 }
  0x13   :  { %7177 = shalt.err (!%p7174_p7)
}
  0x14   :  { %s7389_s19 = smov 512   ;;  %s7390_s20 = smov 32  }
  0x15   :  { %41 = dma.hbm_to_vmem [thread:$0]  %s7719_s1, 50176, %s36_s10, [#allocation6], %s7389_s19, %s7389_s19, %s7390_s20  }
  0x16   :  { %s7391_s23 = smov [#allocation8]   ;;  %s7178_s27 = scalar_lea.hbm %s7721_s3, 32768 }
  0x17   :  { %s57_s24 = sshll.u32 %s7391_s23, 4  ;;  %p7179_p8 = scmp.ne.s32.totalorder %s7721_s3, %s7178_s27  ;;  %s58_s24 = int_to_ptr.vmem [resolvable:$true] %s57_s24 }
  0x18   :  { %p7182_p9 = scmp.lt.u32.totalorder %s7178_s27, %s7721_s3 }
  0x1a   :  { %p7184_p10 = pnand %p7182_p9, %p7179_p8 }
  0x1c   :  { %7187 = shalt.err (!%p7184_p10)
}
  0x1d   :  { %s7188_s12 = scalar_lea.vmem %s58_s24, 32768  ;;  %p7193_p12 = scmp.lt.s32.totalorder %s58_s24, %s58_s24 }
  0x1e   :  { %p7189_p11 = scmp.ne.s32.totalorder %s58_s24, %s7188_s12  ;;  %p7194_p13 = scmp.lt.s32.totalorder %s7188_s12, %s7188_s12 }
  0x20   :  { %p7195_p0 = por %p7194_p13, %p7193_p12 }
  0x22   :  { %p7196_p1 = pnand %p7195_p0, %p7189_p11 }
  0x24   :  { %7199 = shalt.err (!%p7196_p1)
}
  0x25   :  { %s7392_s1 = smov 256   ;;  %s7393_s10 = smov 16  }
  0x26   :  { %63 = dma.hbm_to_vmem [thread:$0]  %s7721_s3, 32768, %s58_s24, [#allocation9], %s7392_s1, %s7392_s1, %s7393_s10  }
  0x27   :  { %s7394_s15 = smov [#allocation11]   ;;  %s7200_s19 = scalar_lea.hbm %s7723_s5, 8192 }
  0x28   :  { %s79_s16 = sshll.u32 %s7394_s15, 4  ;;  %p7201_p2 = scmp.ne.s32.totalorder %s7723_s5, %s7200_s19  ;;  %s80_s16 = int_to_ptr.vmem [resolvable:$true] %s79_s16 }
  0x29   :  { %p7204_p3 = scmp.lt.u32.totalorder %s7200_s19, %s7723_s5 }
  0x2b   :  { %p7206_p4 = pnand %p7204_p3, %p7201_p2 }
  0x2d   :  { %7209 = shalt.err (!%p7206_p4)
}
  0x2e   :  { %s7210_s25 = scalar_lea.vmem %s80_s16, 8192  ;;  %p7215_p6 = scmp.lt.s32.totalorder %s80_s16, %s80_s16 }
  0x2f   :  { %p7211_p5 = scmp.ne.s32.totalorder %s80_s16, %s7210_s25  ;;  %p7216_p7 = scmp.lt.s32.totalorder %s7210_s25, %s7210_s25 }
  0x31   :  { %p7217_p8 = por %p7216_p7, %p7215_p6 }
  0x33   :  { %p7218_p9 = pnand %p7217_p8, %p7211_p5 }
  0x35   :  { %7221 = shalt.err (!%p7218_p9)
}
  0x36   :  { %s7395_s3 = smov 128   ;;  %s7396_s24 = smov 8  }
  0x37   :  { %85 = dma.hbm_to_vmem [thread:$0]  %s7723_s5, 8192, %s80_s16, [#allocation12], %s7395_s3, %s7395_s3, %s7396_s24  }
  0x38   :  { %s7397_s28 = smov [#allocation14]   ;;  %s7222_s12 = scalar_lea.hbm %s7725_s7, 2048 }
  0x39   :  { %s101_s29 = sshll.u32 %s7397_s28, 4  ;;  %p7223_p10 = scmp.ne.s32.totalorder %s7725_s7, %s7222_s12  ;;  %s102_s29 = int_to_ptr.vmem [resolvable:$true] %s101_s29 }
  0x3a   :  { %p7226_p11 = scmp.lt.u32.totalorder %s7222_s12, %s7725_s7 }
  0x3c   :  { %p7228_p12 = pnand %p7226_p11, %p7223_p10 }
  0x3e   :  { %7231 = shalt.err (!%p7228_p12)
}
  0x3f   :  { %s7232_s15 = scalar_lea.vmem %s102_s29, 2048  ;;  %p7237_p0 = scmp.lt.s32.totalorder %s102_s29, %s102_s29 }
  0x40   :  { %p7233_p13 = scmp.ne.s32.totalorder %s102_s29, %s7232_s15  ;;  %p7238_p1 = scmp.lt.s32.totalorder %s7232_s15, %s7232_s15 }
  0x42   :  { %p7239_p2 = por %p7238_p1, %p7237_p0 }
  0x44   :  { %p7240_p3 = pnand %p7239_p2, %p7233_p13 }
  0x46   :  { %7243 = shalt.err (!%p7240_p3)
}
  0x47   :  { %s7398_s5 = smov 64   ;;  %s7399_s16 = smov 4  }
  0x48   :  { %107 = dma.hbm_to_vmem [thread:$0]  %s7725_s7, 2048, %s102_s29, [#allocation15], %s7398_s5, %s7398_s5, %s7399_s16  }
  0x49   :  { %s7400_s19 = smov [#allocation2]   ;;  %s7401_s21 = smov [#allocation7]  }
  0x4a   :  { %s26_s20 = sshll.u32 %s7400_s19, 4  ;;  %s48_s22 = sshll.u32 %s7401_s21, 4  ;;  %s27_s20 = int_to_ptr.vmem [resolvable:$true] %s26_s20  ;;  %s49_s22 = int_to_ptr.vmem [resolvable:$true] %s48_s22 }
  0x4b   :  { %s7244_s3 = scalar_lea.hbm %s7718_s0, 896 }
  0x4c   :  { %p7245_p4 = scmp.ne.s32.totalorder %s7718_s0, %s7244_s3  ;;  %p7248_p5 = scmp.lt.u32.totalorder %s7244_s3, %s7718_s0 }
  0x4e   :  { %p7250_p6 = pnand %p7248_p5, %p7245_p4 }
  0x50   :  { %7253 = shalt.err (!%p7250_p6)
}
  0x51   :  { %s7254_s7 = scalar_lea.vmem %s27_s20, 896  ;;  %p7259_p8 = scmp.lt.s32.totalorder %s27_s20, %s27_s20 }
  0x52   :  { %p7255_p7 = scmp.ne.s32.totalorder %s27_s20, %s7254_s7  ;;  %p7260_p9 = scmp.lt.s32.totalorder %s7254_s7, %s7254_s7 }
  0x54   :  { %p7261_p10 = por %p7260_p9, %p7259_p8 }
  0x56   :  { %p7262_p11 = pnand %p7261_p10, %p7255_p7 }
  0x58   :  { %7265 = shalt.err (!%p7262_p11)
}
  0x59   :  { %29 = dma.hbm_to_vmem [thread:$0]  %s7718_s0, 896, %s27_s20, [#allocation3]  }
  0x5a   :  { %s7266_s1 = scalar_lea.hbm %s7720_s2, 128 }
  0x5b   :  { %p7267_p12 = scmp.ne.s32.totalorder %s7720_s2, %s7266_s1  ;;  %p7270_p13 = scmp.lt.u32.totalorder %s7266_s1, %s7720_s2 }
  0x5d   :  { %p7272_p0 = pnand %p7270_p13, %p7267_p12 }
  0x5f   :  { %7275 = shalt.err (!%p7272_p0)
}
  0x60   :  { %s7276_s5 = scalar_lea.vmem %s49_s22, 128  ;;  %p7281_p2 = scmp.lt.s32.totalorder %s49_s22, %s49_s22 }
  0x61   :  { %p7277_p1 = scmp.ne.s32.totalorder %s49_s22, %s7276_s5  ;;  %p7282_p3 = scmp.lt.s32.totalorder %s7276_s5, %s7276_s5 }
  0x63   :  { %p7283_p4 = por %p7282_p3, %p7281_p2 }
  0x65   :  { %p7284_p5 = pnand %p7283_p4, %p7277_p1 }
  0x67   :  { %7287 = shalt.err (!%p7284_p5)
}
  0x68   :  { %51 = dma.hbm_to_vmem [thread:$0]  %s7720_s2, 128, %s49_s22, [#allocation6]  }
  0x69   :  { %s7402_s17 = smov [#allocation10]   ;;  %s7403_s19 = smov [#allocation13]  }
  0x6a   :  { %s70_s18 = sshll.u32 %s7402_s17, 4  ;;  %s92_s20 = sshll.u32 %s7403_s19, 4  ;;  %s71_s18 = int_to_ptr.vmem [resolvable:$true] %s70_s18  ;;  %s93_s20 = int_to_ptr.vmem [resolvable:$true] %s92_s20 }
  0x6b   :  { %s7288_s25 = scalar_lea.hbm %s7722_s4, 64 }
  0x6c   :  { %p7289_p6 = scmp.ne.s32.totalorder %s7722_s4, %s7288_s25  ;;  %p7292_p7 = scmp.lt.u32.totalorder %s7288_s25, %s7722_s4 }
  0x6e   :  { %p7294_p8 = pnand %p7292_p7, %p7289_p6 }
  0x70   :  { %7297 = shalt.err (!%p7294_p8)
}
  0x71   :  { %s7298_s2 = scalar_lea.vmem %s71_s18, 64  ;;  %p7303_p10 = scmp.lt.s32.totalorder %s71_s18, %s71_s18 }
  0x72   :  { %p7299_p9 = scmp.ne.s32.totalorder %s71_s18, %s7298_s2  ;;  %p7304_p11 = scmp.lt.s32.totalorder %s7298_s2, %s7298_s2 }
  0x74   :  { %p7305_p12 = por %p7304_p11, %p7303_p10 }
  0x76   :  { %p7306_p13 = pnand %p7305_p12, %p7299_p9 }
  0x78   :  { %7309 = shalt.err (!%p7306_p13)
}
  0x79   :  { %73 = dma.hbm_to_vmem [thread:$0]  %s7722_s4, 64, %s71_s18, [#allocation9]  }
  0x7a   :  { %s7310_s30 = scalar_lea.hbm %s7724_s6, 32 }
  0x7b   :  { %p7311_p0 = scmp.ne.s32.totalorder %s7724_s6, %s7310_s30  ;;  %p7314_p1 = scmp.lt.u32.totalorder %s7310_s30, %s7724_s6 }
  0x7d   :  { %p7316_p2 = pnand %p7314_p1, %p7311_p0 }
  0x7f   :  { %7319 = shalt.err (!%p7316_p2)
}
  0x80   :  { %s7320_s13 = scalar_lea.vmem %s93_s20, 32  ;;  %p7325_p4 = scmp.lt.s32.totalorder %s93_s20, %s93_s20 }
  0x81   :  { %p7321_p3 = scmp.ne.s32.totalorder %s93_s20, %s7320_s13  ;;  %p7326_p5 = scmp.lt.s32.totalorder %s7320_s13, %s7320_s13 }
  0x83   :  { %p7327_p6 = por %p7326_p5, %p7325_p4 }
  0x85   :  { %p7328_p7 = pnand %p7327_p6, %p7321_p3 }
  0x87   :  { %7331 = shalt.err (!%p7328_p7)
}
  0x88   :  { %95 = dma.hbm_to_vmem [thread:$0]  %s7724_s6, 32, %s93_s20, [#allocation12]  }
  0x89   :  { %s7404_s15 = smov [#allocation16]   ;;  %s7332_s17 = scalar_lea.hbm %s7726_s8, 16 }
  0x8a   :  { %s114_s5 = sshll.u32 %s7404_s15, 4  ;;  %p7333_p8 = scmp.ne.s32.totalorder %s7726_s8, %s7332_s17  ;;  %s115_s5 = int_to_ptr.vmem [resolvable:$true] %s114_s5 }
  0x8b   :  { %p7336_p9 = scmp.lt.u32.totalorder %s7332_s17, %s7726_s8 }
  0x8d   :  { %p7338_p10 = pnand %p7336_p9, %p7333_p8 }
  0x8f   :  { %7341 = shalt.err (!%p7338_p10)
}
  0x90   :  { %s7342_s25 = scalar_lea.vmem %s115_s5, 16  ;;  %s7346_s6 = scalar_lea.vmem %s115_s5, 32 }
  0x91   :  { %p7343_p11 = scmp.ne.s32.totalorder %s115_s5, %s7342_s25  ;;  %p7347_p12 = scmp.lt.s32.totalorder %s115_s5, %s115_s5 }
  0x92   :  { %p7348_p13 = scmp.lt.s32.totalorder %s7346_s6, %s7342_s25 }
  0x94   :  { %p7349_p0 = por %p7348_p13, %p7347_p12 }
  0x96   :  { %p7350_p1 = pnand %p7349_p0, %p7343_p11 }
  0x98   :  { %7353 = shalt.err (!%p7350_p1)
}
  0x99   :  { %117 = dma.hbm_to_vmem [thread:$0]  %s7726_s8, 16, %s115_s5, [#allocation15]  }
  0x9a   :  { %7376 = dma.done.wait [#allocation3], 896  }
  0x9b   :  { %7377 = vsyncadd [#allocation3], 4294966400 }
  0x9c   :  { %7378 = dma.done.wait [#allocation6], 50304  }
  0x9d   :  { %7379 = vsyncadd [#allocation6], 4294916992 }
  0x9e   :  { %7380 = dma.done.wait [#allocation9], 32832  }
  0x9f   :  { %7381 = vsyncadd [#allocation9], 4294934464 }
  0xa0   :  { %7382 = dma.done.wait [#allocation12], 8224  }
  0xa1   :  { %7383 = vsyncadd [#allocation12], 4294959072 }
  0xa2   :  { %7384 = dma.done.wait [#allocation15], 2064  }
  0xa3   :  { %7385 = vsyncadd [#allocation15], 4294965232  ;;  %v160_v0 = vld [vmem:[#allocation5] sm:$0xff]  ;;  %v147_v53 = vld [vmem:[#allocation2 + $0x8] sm:$0xff]  ;;  %vm2554_vm0 = vcmask 130048   ;;  %s7406_s8 = smov [#allocation17]  }
  0xa4   :  { %v164_v1 = vld [vmem:[#allocation5 + $0x20] sm:$0xff]  ;;  %v7565_v57 = vpack.c.bf16 %v147_v53, %v147_v53  ;;  %s5788_s24 = sshll.u32 %s7406_s8, 4  ;;  %s5789_s24 = int_to_ptr.vmem [resolvable:$true] %s5788_s24 }
  0xa5   :  { %v288_v2 = vld [vmem:[#allocation5 + $0x400] sm:$0xff]  ;;  %v5802_v3 = vcombine.high %v160_v0, %v164_v1  ;;  %v5801_v5 = vcombine.low %v160_v0, %v164_v1  ;;  %s7354_s26 = scalar_lea.vmem %s5789_s24, 128  ;;  %p7359_p3 = scmp.lt.s32.totalorder %s5789_s24, %s5789_s24 }
  0xa6   :  { %v292_v4 = vld [vmem:[#allocation5 + $0x420] sm:$0xff]  ;;  %2590 = vmatprep.mubr.bf16.mxu1 %v7565_v57  ;;  %p7355_p2 = scmp.ne.s32.totalorder %s5789_s24, %s7354_s26  ;;  %p7360_p4 = scmp.lt.s32.totalorder %s7354_s26, %s7354_s26 }
  0xa7   :  { %v168_v6 = vld [vmem:[#allocation5 + $0x40] sm:$0xff]  ;;  %v5930_v8 = vcombine.high %v288_v2, %v292_v4  ;;  %v5929_v9 = vcombine.low %v288_v2, %v292_v4  ;;  %2558 = vmatprep.subr.bf16.mxu1 %v5802_v3 }
  0xa8   :  { %v172_v7 = vld [vmem:[#allocation5 + $0x60] sm:$0xff]  ;;  %2559 = vmatpush1.bf16.msra.mxu1 %v5801_v5  ;;  %p7361_p5 = por %p7360_p4, %p7359_p3 }
  0xa9   :  { %v5810_v10 = vcombine.high %v168_v6, %v172_v7  ;;  %v296_v11 = vld [vmem:[#allocation5 + $0x440] sm:$0xff]  ;;  %2599 = vmatprep.subr.bf16.mxu0 %v5930_v8  ;;  %v5809_v18 = vcombine.low %v168_v6, %v172_v7 }
  0xaa   :  { %v300_v12 = vld [vmem:[#allocation5 + $0x460] sm:$0xff]  ;;  %2600 = vmatpush1.bf16.msra.mxu0 %v5929_v9  ;;  %p7362_p6 = pnand %p7361_p5, %p7355_p2 }
  0xab   :  { %v176_v13 = vld [vmem:[#allocation5 + $0x80] sm:$0xff]  ;;  %v5938_v14 = vcombine.high %v296_v11, %v300_v12  ;;  %2560 = vmatprep.subr.bf16.mxu1 %v5810_v10  ;;  %v5937_v19 = vcombine.low %v296_v11, %v300_v12 }
  0xac   :  { %v180_v15 = vld [vmem:[#allocation5 + $0xa0] sm:$0xff]  ;;  %2561 = vmatpush1.bf16.msra.mxu1 %v5809_v18 }
  0xad   :  { %v304_v16 = vld [vmem:[#allocation5 + $0x480] sm:$0xff]  ;;  %v5818_v20 = vcombine.high %v176_v13, %v180_v15  ;;  %2601 = vmatprep.subr.bf16.mxu0 %v5938_v14  ;;  %v5817_v26 = vcombine.low %v176_v13, %v180_v15 }
  0xae   :  { %v308_v17 = vld [vmem:[#allocation5 + $0x4a0] sm:$0xff]  ;;  %2602 = vmatpush1.bf16.msra.mxu0 %v5937_v19 }
  0xaf   :  { %v5946_v21 = vcombine.high %v304_v16, %v308_v17  ;;  %v184_v22 = vld [vmem:[#allocation5 + $0xc0] sm:$0xff]  ;;  %2562 = vmatprep.subr.bf16.mxu1 %v5818_v20  ;;  %v5945_v27 = vcombine.low %v304_v16, %v308_v17 }
  0xb0   :  { %v188_v23 = vld [vmem:[#allocation5 + $0xe0] sm:$0xff]  ;;  %2563 = vmatpush1.bf16.msra.mxu1 %v5817_v26 }
  0xb1   :  { %v312_v24 = vld [vmem:[#allocation5 + $0x4c0] sm:$0xff]  ;;  %v5826_v28 = vcombine.high %v184_v22, %v188_v23  ;;  %2603 = vmatprep.subr.bf16.mxu0 %v5946_v21  ;;  %v5825_v34 = vcombine.low %v184_v22, %v188_v23 }
  0xb2   :  { %v316_v25 = vld [vmem:[#allocation5 + $0x4e0] sm:$0xff]  ;;  %2604 = vmatpush1.bf16.msra.mxu0 %v5945_v27 }
  0xb3   :  { %v5954_v29 = vcombine.high %v312_v24, %v316_v25  ;;  %v192_v30 = vld [vmem:[#allocation5 + $0x100] sm:$0xff]  ;;  %2564 = vmatprep.subr.bf16.mxu1 %v5826_v28  ;;  %v5953_v35 = vcombine.low %v312_v24, %v316_v25 }
  0xb4   :  { %v196_v31 = vld [vmem:[#allocation5 + $0x120] sm:$0xff]  ;;  %2565 = vmatpush1.bf16.msra.mxu1 %v5825_v34 }
  0xb5   :  { %v320_v32 = vld [vmem:[#allocation5 + $0x500] sm:$0xff]  ;;  %v5834_v36 = vcombine.high %v192_v30, %v196_v31  ;;  %2605 = vmatprep.subr.bf16.mxu0 %v5954_v29  ;;  %v5833_v42 = vcombine.low %v192_v30, %v196_v31 }
  0xb6   :  { %v324_v33 = vld [vmem:[#allocation5 + $0x520] sm:$0xff]  ;;  %2606 = vmatpush1.bf16.msra.mxu0 %v5953_v35 }
  0xb7   :  { %v5962_v37 = vcombine.high %v320_v32, %v324_v33  ;;  %v200_v38 = vld [vmem:[#allocation5 + $0x140] sm:$0xff]  ;;  %2566 = vmatprep.subr.bf16.mxu1 %v5834_v36  ;;  %v5961_v43 = vcombine.low %v320_v32, %v324_v33 }
  0xb8   :  { %v204_v39 = vld [vmem:[#allocation5 + $0x160] sm:$0xff]  ;;  %2567 = vmatpush1.bf16.msra.mxu1 %v5833_v42 }
  0xb9   :  { %v328_v40 = vld [vmem:[#allocation5 + $0x540] sm:$0xff]  ;;  %v5842_v44 = vcombine.high %v200_v38, %v204_v39  ;;  %2607 = vmatprep.subr.bf16.mxu0 %v5962_v37  ;;  %v5841_v50 = vcombine.low %v200_v38, %v204_v39 }
  0xba   :  { %v332_v41 = vld [vmem:[#allocation5 + $0x560] sm:$0xff]  ;;  %2608 = vmatpush1.bf16.msra.mxu0 %v5961_v43 }
  0xbb   :  { %v5970_v45 = vcombine.high %v328_v40, %v332_v41  ;;  %v208_v46 = vld [vmem:[#allocation5 + $0x180] sm:$0xff]  ;;  %2568 = vmatprep.subr.bf16.mxu1 %v5842_v44  ;;  %v5969_v51 = vcombine.low %v328_v40, %v332_v41 }
  0xbc   :  { %v212_v47 = vld [vmem:[#allocation5 + $0x1a0] sm:$0xff]  ;;  %2569 = vmatpush1.bf16.msra.mxu1 %v5841_v50 }
  0xbd   :  { %v336_v48 = vld [vmem:[#allocation5 + $0x580] sm:$0xff]  ;;  %v5850_v52 = vcombine.high %v208_v46, %v212_v47  ;;  %2609 = vmatprep.subr.bf16.mxu0 %v5970_v45  ;;  %v5849_v62 = vcombine.low %v208_v46, %v212_v47 }
  0xbe   :  { %v340_v49 = vld [vmem:[#allocation5 + $0x5a0] sm:$0xff]  ;;  %2610 = vmatpush1.bf16.msra.mxu0 %v5969_v51 }
  0xbf   :  { %v5978_v54 = vcombine.high %v336_v48, %v340_v49  ;;  %v216_v55 = vld [vmem:[#allocation5 + $0x1c0] sm:$0xff]  ;;  %2570 = vmatprep.subr.bf16.mxu1 %v5850_v52  ;;  %v5977_v63 = vcombine.low %v336_v48, %v340_v49 }
  0xc0   :  { %v220_v56 = vld [vmem:[#allocation5 + $0x1e0] sm:$0xff]  ;;  %2571 = vmatpush1.bf16.msra.mxu1 %v5849_v62 }
  0xc1   :  { %v149_v58 = vld [vmem:[#allocation2 + $0x18] sm:$0xff]  ;;  %v5858_v0 = vcombine.high %v216_v55, %v220_v56  ;;  %2611 = vmatprep.subr.bf16.mxu0 %v5978_v54  ;;  %v5857_v6 = vcombine.low %v216_v55, %v220_v56 }
  0xc2   :  { %v344_v59 = vld [vmem:[#allocation5 + $0x5c0] sm:$0xff]  ;;  %v7567_v61 = vpack.c.bf16 %v149_v58, %v149_v58  ;;  %2612 = vmatpush1.bf16.msra.mxu0 %v5977_v63 }
  0xc3   :  { %v348_v60 = vld [vmem:[#allocation5 + $0x5e0] sm:$0xff]  ;;  %2572 = vmatprep.subr.bf16.mxu1 %v5858_v0 }
  0xc4   :  { %v5986_v1 = vcombine.high %v344_v59, %v348_v60  ;;  %v224_v2 = vld [vmem:[#allocation5 + $0x200] sm:$0xff]  ;;  %2631 = vmatprep.mubr.bf16.mxu0 %v7567_v61  ;;  %v5985_v7 = vcombine.low %v344_v59, %v348_v60  ;;  %2573 = vmatpush1.bf16.msra.mxu1 %v5857_v6 }
  0xc5   :  { %v228_v3 = vld [vmem:[#allocation5 + $0x220] sm:$0xff] }
  0xc6   :  { %v352_v4 = vld [vmem:[#allocation5 + $0x600] sm:$0xff]  ;;  %v5866_v8 = vcombine.high %v224_v2, %v228_v3  ;;  %2613 = vmatprep.subr.bf16.mxu0 %v5986_v1  ;;  %v5865_v14 = vcombine.low %v224_v2, %v228_v3 }
  0xc7   :  { %v356_v5 = vld [vmem:[#allocation5 + $0x620] sm:$0xff]  ;;  %2614 = vmatpush1.bf16.msra.mxu0 %v5985_v7 }
  0xc8   :  { %v5994_v9 = vcombine.high %v352_v4, %v356_v5  ;;  %v232_v10 = vld [vmem:[#allocation5 + $0x240] sm:$0xff]  ;;  %2574 = vmatprep.subr.bf16.mxu1 %v5866_v8  ;;  %v5993_v15 = vcombine.low %v352_v4, %v356_v5  ;;  %v161_v4 = vld [vmem:[#allocation5 + $0x8] sm:$0xff] }
  0xc9   :  { %v236_v11 = vld [vmem:[#allocation5 + $0x260] sm:$0xff]  ;;  %2575 = vmatpush1.bf16.msra.mxu1 %v5865_v14  ;;  %v165_v5 = vld [vmem:[#allocation5 + $0x28] sm:$0xff] }
  0xca   :  { %v360_v12 = vld [vmem:[#allocation5 + $0x640] sm:$0xff]  ;;  %v5874_v16 = vcombine.high %v232_v10, %v236_v11  ;;  %2615 = vmatprep.subr.bf16.mxu0 %v5994_v9  ;;  %v5873_v22 = vcombine.low %v232_v10, %v236_v11  ;;  %v146_v9 = vld [vmem:[#allocation2] sm:$0xff]  ;;  %v5804_v11 = vcombine.high %v161_v4, %v165_v5 }
  0xcb   :  { %v364_v13 = vld [vmem:[#allocation5 + $0x660] sm:$0xff]  ;;  %2616 = vmatpush1.bf16.msra.mxu0 %v5993_v15  ;;  %v169_v14 = vld [vmem:[#allocation5 + $0x48] sm:$0xff] }
  0xcc   :  { %v6002_v17 = vcombine.high %v360_v12, %v364_v13  ;;  %v240_v18 = vld [vmem:[#allocation5 + $0x280] sm:$0xff]  ;;  %2576 = vmatprep.subr.bf16.mxu1 %v5874_v16  ;;  %v6001_v23 = vcombine.low %v360_v12, %v364_v13  ;;  %v148_v12 = vld [vmem:[#allocation2 + $0x10] sm:$0xff]  ;;  %v173_v15 = vld [vmem:[#allocation5 + $0x68] sm:$0xff]  ;;  %v7571_v16 = vpack.c.bf16 %v146_v9, %v146_v9 }
  0xcd   :  { %v244_v19 = vld [vmem:[#allocation5 + $0x2a0] sm:$0xff]  ;;  %2577 = vmatpush1.bf16.msra.mxu1 %v5873_v22 }
  0xce   :  { %v368_v20 = vld [vmem:[#allocation5 + $0x680] sm:$0xff]  ;;  %v5882_v24 = vcombine.high %v240_v18, %v244_v19  ;;  %2617 = vmatprep.subr.bf16.mxu0 %v6002_v17  ;;  %v5881_v30 = vcombine.low %v240_v18, %v244_v19  ;;  %v151_v19 = vld [vmem:[#allocation2 + $0x28] sm:$0xff] }
  0xcf   :  { %v372_v21 = vld [vmem:[#allocation5 + $0x6a0] sm:$0xff]  ;;  %2618 = vmatpush1.bf16.msra.mxu0 %v6001_v23  ;;  %v5812_v23 = vcombine.high %v169_v14, %v173_v15 }
  0xd0   :  { %v6010_v25 = vcombine.high %v368_v20, %v372_v21  ;;  %v248_v26 = vld [vmem:[#allocation5 + $0x2c0] sm:$0xff]  ;;  %2578 = vmatprep.subr.bf16.mxu1 %v5882_v24  ;;  %v6009_v31 = vcombine.low %v368_v20, %v372_v21  ;;  %v5803_v20 = vcombine.low %v161_v4, %v165_v5  ;;  %v7573_v21 = vpack.c.bf16 %v148_v12, %v148_v12 }
  0xd1   :  { %v252_v27 = vld [vmem:[#allocation5 + $0x2e0] sm:$0xff]  ;;  %2579 = vmatpush1.bf16.msra.mxu1 %v5881_v30  ;;  %v5811_v30 = vcombine.low %v169_v14, %v173_v15  ;;  %v225_v14 = vld [vmem:[#allocation5 + $0x208] sm:$0xff] }
  0xd2   :  { %v376_v28 = vld [vmem:[#allocation5 + $0x6c0] sm:$0xff]  ;;  %v5890_v32 = vcombine.high %v248_v26, %v252_v27  ;;  %2619 = vmatprep.subr.bf16.mxu0 %v6010_v25  ;;  %v5889_v38 = vcombine.low %v248_v26, %v252_v27  ;;  %v177_v27 = vld [vmem:[#allocation5 + $0x88] sm:$0xff] }
  0xd3   :  { %v380_v29 = vld [vmem:[#allocation5 + $0x6e0] sm:$0xff]  ;;  %2620 = vmatpush1.bf16.msra.mxu0 %v6009_v31  ;;  %v229_v15 = vld [vmem:[#allocation5 + $0x228] sm:$0xff] }
  0xd4   :  { %v6018_v33 = vcombine.high %v376_v28, %v380_v29  ;;  %v256_v34 = vld [vmem:[#allocation5 + $0x300] sm:$0xff]  ;;  %2580 = vmatprep.subr.bf16.mxu1 %v5890_v32  ;;  %v6017_v39 = vcombine.low %v376_v28, %v380_v29  ;;  %v181_v28 = vld [vmem:[#allocation5 + $0xa8] sm:$0xff]  ;;  %v7575_v29 = vpack.c.bf16 %v151_v19, %v151_v19  ;;  %v5868_v19 = vcombine.high %v225_v14, %v229_v15 }
  0xd5   :  { %v260_v35 = vld [vmem:[#allocation5 + $0x320] sm:$0xff]  ;;  %2581 = vmatpush1.bf16.msra.mxu1 %v5889_v38  ;;  %v5820_v32 = vcombine.high %v177_v27, %v181_v28  ;;  %v5819_v38 = vcombine.low %v177_v27, %v181_v28 }
  0xd6   :  { %v384_v36 = vld [vmem:[#allocation5 + $0x700] sm:$0xff]  ;;  %v5898_v40 = vcombine.high %v256_v34, %v260_v35  ;;  %2621 = vmatprep.subr.bf16.mxu0 %v6018_v33  ;;  %v5897_v46 = vcombine.low %v256_v34, %v260_v35 }
  0xd7   :  { %v388_v37 = vld [vmem:[#allocation5 + $0x720] sm:$0xff]  ;;  %2622 = vmatpush1.bf16.msra.mxu0 %v6017_v39 }
  0xd8   :  { %v6026_v41 = vcombine.high %v384_v36, %v388_v37  ;;  %v264_v42 = vld [vmem:[#allocation5 + $0x340] sm:$0xff]  ;;  %2582 = vmatprep.subr.bf16.mxu1 %v5898_v40  ;;  %v6025_v47 = vcombine.low %v384_v36, %v388_v37  ;;  %v185_v36 = vld [vmem:[#allocation5 + $0xc8] sm:$0xff] }
  0xd9   :  { %v268_v43 = vld [vmem:[#allocation5 + $0x360] sm:$0xff]  ;;  %2583 = vmatpush1.bf16.msra.mxu1 %v5897_v46  ;;  %v189_v37 = vld [vmem:[#allocation5 + $0xe8] sm:$0xff] }
  0xda   :  { %v392_v44 = vld [vmem:[#allocation5 + $0x740] sm:$0xff]  ;;  %v5906_v48 = vcombine.high %v264_v42, %v268_v43  ;;  %2623 = vmatprep.subr.bf16.mxu0 %v6026_v41  ;;  %v5905_v54 = vcombine.low %v264_v42, %v268_v43  ;;  %v5828_v40 = vcombine.high %v185_v36, %v189_v37  ;;  %v5827_v46 = vcombine.low %v185_v36, %v189_v37 }
  0xdb   :  { %v396_v45 = vld [vmem:[#allocation5 + $0x760] sm:$0xff]  ;;  %2624 = vmatpush1.bf16.msra.mxu0 %v6025_v47 }
  0xdc   :  { %v6034_v49 = vcombine.high %v392_v44, %v396_v45  ;;  %v272_v50 = vld [vmem:[#allocation5 + $0x380] sm:$0xff]  ;;  %2584 = vmatprep.subr.bf16.mxu1 %v5906_v48  ;;  %v6033_v55 = vcombine.low %v392_v44, %v396_v45  ;;  %v193_v44 = vld [vmem:[#allocation5 + $0x108] sm:$0xff] }
  0xdd   :  { %v276_v51 = vld [vmem:[#allocation5 + $0x3a0] sm:$0xff]  ;;  %2585 = vmatpush1.bf16.msra.mxu1 %v5905_v54  ;;  %v197_v45 = vld [vmem:[#allocation5 + $0x128] sm:$0xff] }
  0xde   :  { %v400_v52 = vld [vmem:[#allocation5 + $0x780] sm:$0xff]  ;;  %v5914_v56 = vcombine.high %v272_v50, %v276_v51  ;;  %2625 = vmatprep.subr.bf16.mxu0 %v6034_v49  ;;  %v5913_v0 = vcombine.low %v272_v50, %v276_v51  ;;  %v5836_v48 = vcombine.high %v193_v44, %v197_v45  ;;  %v5835_v54 = vcombine.low %v193_v44, %v197_v45 }
  0xdf   :  { %v404_v53 = vld [vmem:[#allocation5 + $0x7a0] sm:$0xff]  ;;  %2626 = vmatpush1.bf16.msra.mxu0 %v6033_v55 }
  0xe0   :  { %v6042_v58 = vcombine.high %v400_v52, %v404_v53  ;;  %v280_v59 = vld [vmem:[#allocation5 + $0x3c0] sm:$0xff]  ;;  %2586 = vmatprep.subr.bf16.mxu1 %v5914_v56  ;;  %v6041_v1 = vcombine.low %v400_v52, %v404_v53  ;;  %v201_v52 = vld [vmem:[#allocation5 + $0x148] sm:$0xff] }
  0xe1   :  { %v284_v60 = vld [vmem:[#allocation5 + $0x3e0] sm:$0xff]  ;;  %2587 = vmatpush1.bf16.msra.mxu1 %v5913_v0  ;;  %v205_v53 = vld [vmem:[#allocation5 + $0x168] sm:$0xff] }
  0xe2   :  { %v408_v62 = vld [vmem:[#allocation5 + $0x7c0] sm:$0xff]  ;;  %v5922_v2 = vcombine.high %v280_v59, %v284_v60  ;;  %2627 = vmatprep.subr.bf16.mxu0 %v6042_v58  ;;  %v5921_v8 = vcombine.low %v280_v59, %v284_v60  ;;  %v5844_v56 = vcombine.high %v201_v52, %v205_v53  ;;  %v5843_v0 = vcombine.low %v201_v52, %v205_v53 }
  0xe3   :  { %v412_v63 = vld [vmem:[#allocation5 + $0x7e0] sm:$0xff]  ;;  %2628 = vmatpush1.bf16.msra.mxu0 %v6041_v1 }
  0xe4   :  { %v6050_v3 = vcombine.high %v408_v62, %v412_v63  ;;  %v416_v6 = vld [vmem:[#allocation5 + $0x800] sm:$0xff]  ;;  %2588 = vmatprep.subr.bf16.mxu1 %v5922_v2  ;;  %v6049_v10 = vcombine.low %v408_v62, %v412_v63  ;;  %v209_v62 = vld [vmem:[#allocation5 + $0x188] sm:$0xff] }
  0xe5   :  { %v420_v7 = vld [vmem:[#allocation5 + $0x820] sm:$0xff]  ;;  %2589 = vmatpush1.bf16.msra.mxu1 %v5921_v8  ;;  %v213_v63 = vld [vmem:[#allocation5 + $0x1a8] sm:$0xff] }
  0xe6   :  { %2629 = vmatprep.subr.bf16.mxu0 %v6050_v3  ;;  %v6058_v13 = vcombine.high %v416_v6, %v420_v7  ;;  %v424_v17 = vld [vmem:[#allocation5 + $0x840] sm:$0xff]  ;;  %v6057_v22 = vcombine.low %v416_v6, %v420_v7  ;;  %2722 = vmatprep.subr.bf16.mxu1 %v5804_v11  ;;  %v5852_v2 = vcombine.high %v209_v62, %v213_v63  ;;  %v217_v6 = vld [vmem:[#allocation5 + $0x1c8] sm:$0xff] }
  0xe7   :  { %v428_v18 = vld [vmem:[#allocation5 + $0x860] sm:$0xff]  ;;  %2630 = vmatpush1.bf16.msra.mxu0 %v6049_v10  ;;  %v221_v7 = vld [vmem:[#allocation5 + $0x1e8] sm:$0xff]  ;;  %v5851_v8 = vcombine.low %v209_v62, %v213_v63 }
  0xe8   :  { %v432_v24 = vld [vmem:[#allocation5 + $0x880] sm:$0xff]  ;;  %2640 = vmatprep.subr.bf16.mxu0 %v6058_v13  ;;  %v6066_v26 = vcombine.high %v424_v17, %v428_v18  ;;  %2591 = vmatmul.mubr.bf16.vlgmr.msra.gmra.mrb[0].mxu1 %v7571_v16  ;;  %v6065_v31 = vcombine.low %v424_v17, %v428_v18  ;;  %v5860_v10 = vcombine.high %v217_v6, %v221_v7 }
  0xe9   :  { %v436_v25 = vld [vmem:[#allocation5 + $0x8a0] sm:$0xff]  ;;  %2723 = vmatpush1.bf16.msra.mxu1 %v5803_v20  ;;  %2754 = vmatprep.mubr.bf16.mxu1 %v7565_v57  ;;  %v5859_v17 = vcombine.low %v217_v6, %v221_v7 }
  0xea   :  { %2632 = vmatmul.mubr.bf16.vlgmr.msra.gmra.mrb[0].mxu0 %v7573_v21  ;;  %2724 = vmatprep.subr.bf16.mxu1 %v5812_v23  ;;  %v440_v33 = vld [vmem:[#allocation5 + $0x8c0] sm:$0xff]  ;;  %v6074_v35 = vcombine.high %v432_v24, %v436_v25  ;;  %v6073_v39 = vcombine.low %v432_v24, %v436_v25  ;;  %v233_v24 = vld [vmem:[#allocation5 + $0x248] sm:$0xff] }
  0xeb   :  { %2641 = vmatpush1.bf16.msra.mxu0 %v6057_v22  ;;  %v444_v34 = vld [vmem:[#allocation5 + $0x8e0] sm:$0xff]  ;;  %2672 = vmatprep.mubr.bf16.mxu0 %v7575_v29  ;;  %v237_v25 = vld [vmem:[#allocation5 + $0x268] sm:$0xff] }
  0xec   :  { %2642 = vmatprep.subr.bf16.mxu0 %v6066_v26  ;;  %v448_v41 = vld [vmem:[#allocation5 + $0x900] sm:$0xff]  ;;  %v6082_v43 = vcombine.high %v440_v33, %v444_v34  ;;  %v6081_v47 = vcombine.low %v440_v33, %v444_v34  ;;  %v5867_v26 = vcombine.low %v225_v14, %v229_v15  ;;  %v5876_v28 = vcombine.high %v233_v24, %v237_v25  ;;  %v241_v33 = vld [vmem:[#allocation5 + $0x288] sm:$0xff] }
  0xed   :  { %2725 = vmatpush1.bf16.msra.mxu1 %v5811_v30  ;;  %v452_v42 = vld [vmem:[#allocation5 + $0x920] sm:$0xff]  ;;  %v245_v34 = vld [vmem:[#allocation5 + $0x2a8] sm:$0xff] }
  0xee   :  { %2726 = vmatprep.subr.bf16.mxu1 %v5820_v32  ;;  %v456_v49 = vld [vmem:[#allocation5 + $0x940] sm:$0xff]  ;;  %v6090_v51 = vcombine.high %v448_v41, %v452_v42  ;;  %v6089_v55 = vcombine.low %v448_v41, %v452_v42  ;;  %v5884_v37 = vcombine.high %v241_v33, %v245_v34  ;;  %v249_v41 = vld [vmem:[#allocation5 + $0x2c8] sm:$0xff] }
  0xef   :  { %2643 = vmatpush1.bf16.msra.mxu0 %v6065_v31  ;;  %v460_v50 = vld [vmem:[#allocation5 + $0x960] sm:$0xff]  ;;  %v253_v42 = vld [vmem:[#allocation5 + $0x2e8] sm:$0xff] }
  0xf0   :  { %2644 = vmatprep.subr.bf16.mxu0 %v6074_v35  ;;  %v464_v58 = vld [vmem:[#allocation5 + $0x980] sm:$0xff]  ;;  %v6098_v60 = vcombine.high %v456_v49, %v460_v50  ;;  %v6097_v1 = vcombine.low %v456_v49, %v460_v50  ;;  %v5875_v35 = vcombine.low %v233_v24, %v237_v25  ;;  %v5892_v45 = vcombine.high %v249_v41, %v253_v42  ;;  %v257_v49 = vld [vmem:[#allocation5 + $0x308] sm:$0xff] }
  0xf1   :  { %2727 = vmatpush1.bf16.msra.mxu1 %v5819_v38  ;;  %v468_v59 = vld [vmem:[#allocation5 + $0x9a0] sm:$0xff]  ;;  %v261_v50 = vld [vmem:[#allocation5 + $0x328] sm:$0xff] }
  0xf2   :  { %2728 = vmatprep.subr.bf16.mxu1 %v5828_v40  ;;  %v472_v3 = vld [vmem:[#allocation5 + $0x9c0] sm:$0xff]  ;;  %v6106_v5 = vcombine.high %v464_v58, %v468_v59  ;;  %v6105_v9 = vcombine.low %v464_v58, %v468_v59  ;;  %v5900_v53 = vcombine.high %v257_v49, %v261_v50  ;;  %v265_v58 = vld [vmem:[#allocation5 + $0x348] sm:$0xff] }
  0xf3   :  { %2645 = vmatpush1.bf16.msra.mxu0 %v6073_v39  ;;  %v476_v4 = vld [vmem:[#allocation5 + $0x9e0] sm:$0xff]  ;;  %v269_v59 = vld [vmem:[#allocation5 + $0x368] sm:$0xff] }
  0xf4   :  { %2646 = vmatprep.subr.bf16.mxu0 %v6082_v43  ;;  %v480_v11 = vld [vmem:[#allocation5 + $0xa00] sm:$0xff]  ;;  %v6114_v13 = vcombine.high %v472_v3, %v476_v4  ;;  %v6113_v18 = vcombine.low %v472_v3, %v476_v4  ;;  %v5883_v43 = vcombine.low %v241_v33, %v245_v34  ;;  %v5908_v63 = vcombine.high %v265_v58, %v269_v59  ;;  %v273_v3 = vld [vmem:[#allocation5 + $0x388] sm:$0xff] }
  0xf5   :  { %2729 = vmatpush1.bf16.msra.mxu1 %v5827_v46  ;;  %v484_v12 = vld [vmem:[#allocation5 + $0xa20] sm:$0xff]  ;;  %v277_v4 = vld [vmem:[#allocation5 + $0x3a8] sm:$0xff] }
  0xf6   :  { %2730 = vmatprep.subr.bf16.mxu1 %v5836_v48  ;;  %v488_v20 = vld [vmem:[#allocation5 + $0xa40] sm:$0xff]  ;;  %v6122_v23 = vcombine.high %v480_v11, %v484_v12  ;;  %v6121_v27 = vcombine.low %v480_v11, %v484_v12  ;;  %v5916_v7 = vcombine.high %v273_v3, %v277_v4  ;;  %v281_v11 = vld [vmem:[#allocation5 + $0x3c8] sm:$0xff] }
  0xf7   :  { %2647 = vmatpush1.bf16.msra.mxu0 %v6081_v47  ;;  %v492_v22 = vld [vmem:[#allocation5 + $0xa60] sm:$0xff]  ;;  %v285_v12 = vld [vmem:[#allocation5 + $0x3e8] sm:$0xff] }
  0xf8   :  { %2648 = vmatprep.subr.bf16.mxu0 %v6090_v51  ;;  %v496_v30 = vld [vmem:[#allocation5 + $0xa80] sm:$0xff]  ;;  %v6130_v32 = vcombine.high %v488_v20, %v492_v22  ;;  %v6129_v36 = vcombine.low %v488_v20, %v492_v22  ;;  %v5891_v51 = vcombine.low %v249_v41, %v253_v42  ;;  %v5924_v15 = vcombine.high %v281_v11, %v285_v12 }
  0xf9   :  { %2731 = vmatpush1.bf16.msra.mxu1 %v5835_v54  ;;  %v500_v31 = vld [vmem:[#allocation5 + $0xaa0] sm:$0xff]  ;;  %v5923_v24 = vcombine.low %v281_v11, %v285_v12  ;;  %v7405_v42 = vmov 0  }
  0xfa   :  { %2732 = vmatprep.subr.bf16.mxu1 %v5844_v56  ;;  %v504_v38 = vld [vmem:[#allocation5 + $0xac0] sm:$0xff]  ;;  %v6138_v40 = vcombine.high %v496_v30, %v500_v31  ;;  %v6137_v44 = vcombine.low %v496_v30, %v500_v31  ;;  %v545_v31 = vld [vmem:[#allocation5 + $0xc08] sm:$0xff] }
  0xfb   :  { %2649 = vmatpush1.bf16.msra.mxu0 %v6089_v55  ;;  %v508_v39 = vld [vmem:[#allocation5 + $0xae0] sm:$0xff] }
  0xfc   :  { %2650 = vmatprep.subr.bf16.mxu0 %v6098_v60  ;;  %v512_v46 = vld [vmem:[#allocation5 + $0xb00] sm:$0xff]  ;;  %v6146_v48 = vcombine.high %v504_v38, %v508_v39  ;;  %v6145_v52 = vcombine.low %v504_v38, %v508_v39  ;;  %v5899_v60 = vcombine.low %v257_v49, %v261_v50  ;;  %v309_v38 = vld [vmem:[#allocation5 + $0x4a8] sm:$0xff]  ;;  %v162_v50 = vld [vmem:[#allocation5 + $0x10] sm:$0xff] }
  0xfd   :  { %2733 = vmatpush1.bf16.msra.mxu1 %v5843_v0  ;;  %v516_v47 = vld [vmem:[#allocation5 + $0xb20] sm:$0xff]  ;;  %v325_v49 = vld [vmem:[#allocation5 + $0x528] sm:$0xff] }
  0xfe   :  { %2734 = vmatprep.subr.bf16.mxu1 %v5852_v2  ;;  %v520_v54 = vld [vmem:[#allocation5 + $0xb40] sm:$0xff]  ;;  %v6154_v56 = vcombine.high %v512_v46, %v516_v47  ;;  %v6153_v62 = vcombine.low %v512_v46, %v516_v47 }
  0xff   :  { %2651 = vmatpush1.bf16.msra.mxu0 %v6097_v1  ;;  %v524_v55 = vld [vmem:[#allocation5 + $0xb60] sm:$0xff] }
 0x100   :  { %2652 = vmatprep.subr.bf16.mxu0 %v6106_v5  ;;  %v528_v0 = vld [vmem:[#allocation5 + $0xb80] sm:$0xff]  ;;  %v6162_v2 = vcombine.high %v520_v54, %v524_v55  ;;  %v5907_v5 = vcombine.low %v265_v58, %v269_v59  ;;  %v6161_v6 = vcombine.low %v520_v54, %v524_v55  ;;  %v329_v58 = vld [vmem:[#allocation5 + $0x548] sm:$0xff] }
 0x101   :  { %2735 = vmatpush1.bf16.msra.mxu1 %v5851_v8  ;;  %v532_v1 = vld [vmem:[#allocation5 + $0xba0] sm:$0xff]  ;;  %v333_v59 = vld [vmem:[#allocation5 + $0x568] sm:$0xff] }
 0x102   :  { %2736 = vmatprep.subr.bf16.mxu1 %v5860_v10  ;;  %v536_v8 = vld [vmem:[#allocation5 + $0xbc0] sm:$0xff]  ;;  %v6170_v10 = vcombine.high %v528_v0, %v532_v1  ;;  %v6169_v14 = vcombine.low %v528_v0, %v532_v1  ;;  %v174_v0 = vld [vmem:[#allocation5 + $0x70] sm:$0xff]  ;;  %v337_v1 = vld [vmem:[#allocation5 + $0x588] sm:$0xff] }
 0x103   :  { %2653 = vmatpush1.bf16.msra.mxu0 %v6105_v9  ;;  %v540_v9 = vld [vmem:[#allocation5 + $0xbe0] sm:$0xff] }
 0x104   :  { %2654 = vmatprep.subr.bf16.mxu0 %v6114_v13  ;;  %v5915_v13 = vcombine.low %v273_v3, %v277_v4  ;;  %v544_v20 = vld [vmem:[#allocation5 + $0xc00] sm:$0xff]  ;;  %v6177_v25 = vcombine.low %v536_v8, %v540_v9  ;;  %v5971_v3 = vcombine.low %v329_v58, %v333_v59 }
 0x105   :  { %2737 = vmatpush1.bf16.msra.mxu1 %v5859_v17  ;;  %v289_v17 = vld [vmem:[#allocation5 + $0x408] sm:$0xff]  ;;  %v548_v22 = vld [vmem:[#allocation5 + $0xc20] sm:$0xff] }
 0x106   :  { %2738 = vmatprep.subr.bf16.mxu1 %v5868_v19  ;;  %v6178_v19 = vcombine.high %v536_v8, %v540_v9  ;;  %v6186_v30 = vcombine.high %v544_v20, %v548_v22  ;;  %v345_v9 = vld [vmem:[#allocation5 + $0x5c8] sm:$0xff] }
 0x107   :  { %2655 = vmatpush1.bf16.msra.mxu0 %v6113_v18  ;;  %v293_v18 = vld [vmem:[#allocation5 + $0x428] sm:$0xff] }
 0x108   :  { %2656 = vmatprep.subr.bf16.mxu0 %v6122_v23  ;;  %v150_v23 = vld [vmem:[#allocation2 + $0x20] sm:$0xff]  ;;  %v5931_v34 = vcombine.low %v289_v17, %v293_v18 }
 0x109   :  { %2739 = vmatpush1.bf16.msra.mxu1 %v5867_v26  ;;  %v5932_v26 = vcombine.high %v289_v17, %v293_v18  ;;  %v7581_v33 = vpack.c.bf16 %v150_v23, %v150_v23  ;;  %v353_v18 = vld [vmem:[#allocation5 + $0x608] sm:$0xff] }
 0x10a   :  { %2740 = vmatprep.subr.bf16.mxu1 %v5876_v28  ;;  %v301_v28 = vld [vmem:[#allocation5 + $0x468] sm:$0xff] }
 0x10b   :  { %2657 = vmatpush1.bf16.msra.mxu0 %v6121_v27  ;;  %v297_v27 = vld [vmem:[#allocation5 + $0x448] sm:$0xff] }
 0x10c   :  { %2658 = vmatprep.subr.bf16.mxu0 %v6130_v32  ;;  %v549_v32 = vld [vmem:[#allocation5 + $0xc28] sm:$0xff] }
 0x10d   :  { %2741 = vmatpush1.bf16.msra.mxu1 %v5875_v35  ;;  %v5940_v35 = vcombine.high %v297_v27, %v301_v28  ;;  %v6188_v39 = vcombine.high %v545_v31, %v549_v32  ;;  %v6187_v54 = vcombine.low %v545_v31, %v549_v32 }
 0x10e   :  { %2742 = vmatprep.subr.bf16.mxu1 %v5884_v37  ;;  %v305_v37 = vld [vmem:[#allocation5 + $0x488] sm:$0xff] }
 0x10f   :  { %2659 = vmatpush1.bf16.msra.mxu0 %v6129_v36  ;;  %v6185_v36 = vcombine.low %v544_v20, %v548_v22  ;;  %v5948_v41 = vcombine.high %v305_v37, %v309_v38  ;;  %v5947_v46 = vcombine.low %v305_v37, %v309_v38  ;;  %v369_v37 = vld [vmem:[#allocation5 + $0x688] sm:$0xff] }
 0x110   :  { %2660 = vmatprep.subr.bf16.mxu0 %v6138_v40  ;;  %v5939_v40 = vcombine.low %v297_v27, %v301_v28  ;;  %v361_v27 = vld [vmem:[#allocation5 + $0x648] sm:$0xff] }
 0x111   :  { %2743 = vmatpush1.bf16.msra.mxu1 %v5883_v43  ;;  %v313_v43 = vld [vmem:[#allocation5 + $0x4c8] sm:$0xff] }
 0x112   :  { %2744 = vmatprep.subr.bf16.mxu1 %v5892_v45  ;;  %v152_v45 = vld [vmem:[#allocation2 + $0x30] sm:$0xff]  ;;  %v365_v28 = vld [vmem:[#allocation5 + $0x668] sm:$0xff] }
 0x113   :  { %2661 = vmatpush1.bf16.msra.mxu0 %v6137_v44  ;;  %v317_v44 = vld [vmem:[#allocation5 + $0x4e8] sm:$0xff]  ;;  %v6004_v32 = vcombine.high %v361_v27, %v365_v28 }
 0x114   :  { %2662 = vmatprep.subr.bf16.mxu0 %v6146_v48  ;;  %v5956_v47 = vcombine.high %v313_v43, %v317_v44  ;;  %v321_v48 = vld [vmem:[#allocation5 + $0x508] sm:$0xff] }
 0x115   :  { %2745 = vmatpush1.bf16.msra.mxu1 %v5891_v51  ;;  %v166_v51 = vld [vmem:[#allocation5 + $0x30] sm:$0xff]  ;;  %v5964_v55 = vcombine.high %v321_v48, %v325_v49  ;;  %v373_v38 = vld [vmem:[#allocation5 + $0x6a8] sm:$0xff] }
 0x116   :  { %2746 = vmatprep.subr.bf16.mxu1 %v5900_v53  ;;  %v5955_v53 = vcombine.low %v313_v43, %v317_v44  ;;  %v5805_v4 = vcombine.low %v162_v50, %v166_v51  ;;  %v210_v43 = vld [vmem:[#allocation5 + $0x190] sm:$0xff] }
 0x117   :  { %2663 = vmatpush1.bf16.msra.mxu0 %v6145_v52  ;;  %v7587_v52 = vpack.c.bf16 %v152_v45, %v152_v45  ;;  %v214_v44 = vld [vmem:[#allocation5 + $0x1b0] sm:$0xff] }
 0x118   :  { %2664 = vmatprep.subr.bf16.mxu0 %v6154_v56  ;;  %v5806_v56 = vcombine.high %v162_v50, %v166_v51  ;;  %v218_v51 = vld [vmem:[#allocation5 + $0x1d0] sm:$0xff] }
 0x119   :  { %2747 = vmatpush1.bf16.msra.mxu1 %v5899_v60  ;;  %v5963_v60 = vcombine.low %v321_v48, %v325_v49  ;;  %v6011_v48 = vcombine.low %v369_v37, %v373_v38 }
 0x11a   :  { %2748 = vmatprep.subr.bf16.mxu1 %v5908_v63  ;;  %v170_v63 = vld [vmem:[#allocation5 + $0x50] sm:$0xff] }
 0x11b   :  { %2665 = vmatpush1.bf16.msra.mxu0 %v6153_v62  ;;  %v5972_v62 = vcombine.high %v329_v58, %v333_v59  ;;  %v5814_v8 = vcombine.high %v170_v63, %v174_v0  ;;  %v5813_v12 = vcombine.low %v170_v63, %v174_v0  ;;  %v5853_v59 = vcombine.low %v210_v43, %v214_v44  ;;  %v230_v63 = vld [vmem:[#allocation5 + $0x230] sm:$0xff] }
 0x11c   :  { %2666 = vmatprep.subr.bf16.mxu0 %v6162_v2  ;;  %v341_v2 = vld [vmem:[#allocation5 + $0x5a8] sm:$0xff] }
 0x11d   :  { %2749 = vmatpush1.bf16.msra.mxu1 %v5907_v5  ;;  %v5980_v5 = vcombine.high %v337_v1, %v341_v2  ;;  %v5979_v11 = vcombine.low %v337_v1, %v341_v2  ;;  %v393_v1 = vld [vmem:[#allocation5 + $0x748] sm:$0xff] }
 0x11e   :  { %2750 = vmatprep.subr.bf16.mxu1 %v5916_v7  ;;  %v182_v7 = vld [vmem:[#allocation5 + $0xb0] sm:$0xff]  ;;  %v397_v2 = vld [vmem:[#allocation5 + $0x768] sm:$0xff] }
 0x11f   :  { %2667 = vmatpush1.bf16.msra.mxu0 %v6161_v6  ;;  %v178_v6 = vld [vmem:[#allocation5 + $0x90] sm:$0xff] }
 0x120   :  { %2668 = vmatprep.subr.bf16.mxu0 %v6170_v10  ;;  %v349_v10 = vld [vmem:[#allocation5 + $0x5e8] sm:$0xff]  ;;  %v5822_v17 = vcombine.high %v178_v6, %v182_v7  ;;  %v5821_v22 = vcombine.low %v178_v6, %v182_v7  ;;  %v234_v6 = vld [vmem:[#allocation5 + $0x250] sm:$0xff] }
 0x121   :  { %2751 = vmatpush1.bf16.msra.mxu1 %v5915_v13  ;;  %v5988_v13 = vcombine.high %v345_v9, %v349_v10  ;;  %v5987_v20 = vcombine.low %v345_v9, %v349_v10  ;;  %v238_v7 = vld [vmem:[#allocation5 + $0x270] sm:$0xff]  ;;  %v401_v9 = vld [vmem:[#allocation5 + $0x788] sm:$0xff] }
 0x122   :  { %2752 = vmatprep.subr.bf16.mxu1 %v5924_v15  ;;  %v190_v15 = vld [vmem:[#allocation5 + $0xf0] sm:$0xff]  ;;  %v405_v10 = vld [vmem:[#allocation5 + $0x7a8] sm:$0xff] }
 0x123   :  { %2669 = vmatpush1.bf16.msra.mxu0 %v6169_v14  ;;  %v186_v14 = vld [vmem:[#allocation5 + $0xd0] sm:$0xff] }
 0x124   :  { %2670 = vmatprep.subr.bf16.mxu0 %v6178_v19  ;;  %v357_v19 = vld [vmem:[#allocation5 + $0x628] sm:$0xff]  ;;  %v5829_v31 = vcombine.low %v186_v14, %v190_v15 }
 0x125   :  { %2753 = vmatpush1.bf16.msra.mxu1 %v5923_v24  ;;  %v5996_v23 = vcombine.high %v353_v18, %v357_v19  ;;  %v194_v24 = vld [vmem:[#allocation5 + $0x110] sm:$0xff] }
 0x126   :  { %2763 = vmatprep.subr.bf16.mxu1 %v5932_v26  ;;  %v5830_v26 = vcombine.high %v186_v14, %v190_v15  ;;  %v242_v14 = vld [vmem:[#allocation5 + $0x290] sm:$0xff] }
 0x127   :  { %2671 = vmatpush1.bf16.msra.mxu0 %v6177_v25  ;;  %v198_v25 = vld [vmem:[#allocation5 + $0x130] sm:$0xff] }
 0x128   :  { %2681 = vmatprep.subr.bf16.mxu0 %v6186_v30  ;;  %2755 = vmatmul.mubr.bf16.vlgmr.msra.gmra.mrb[4].mxu1 %v7571_v16  ;;  %v5995_v30 = vcombine.low %v353_v18, %v357_v19  ;;  %v246_v15 = vld [vmem:[#allocation5 + $0x2b0] sm:$0xff]  ;;  %v409_v18 = vld [vmem:[#allocation5 + $0x7c8] sm:$0xff] }
 0x129   :  { %2764 = vmatpush1.bf16.msra.mxu1 %v5931_v34  ;;  %2795 = vmatprep.mubr.bf16.mxu1 %v7567_v61  ;;  %v202_v34 = vld [vmem:[#allocation5 + $0x150] sm:$0xff]  ;;  %v413_v19 = vld [vmem:[#allocation5 + $0x7e8] sm:$0xff] }
 0x12a   :  { %2673 = vmatmul.mubr.bf16.vlgmr.msra.gmra.mrb[0].mxu0 %v7581_v33  ;;  %2765 = vmatprep.subr.bf16.mxu1 %v5940_v35  ;;  %v206_v35 = vld [vmem:[#allocation5 + $0x170] sm:$0xff] }
 0x12b   :  { %2682 = vmatpush1.bf16.msra.mxu0 %v6185_v36  ;;  %2713 = vmatprep.mubr.bf16.mxu0 %v7405_v42  ;;  %v5838_v36 = vcombine.high %v194_v24, %v198_v25  ;;  %v5846_v45 = vcombine.high %v202_v34, %v206_v35  ;;  %v5845_v49 = vcombine.low %v202_v34, %v206_v35  ;;  %v258_v34 = vld [vmem:[#allocation5 + $0x310] sm:$0xff] }
 0x12c   :  { %2845 = vmatprep.subr.bf16.mxu0 %v6188_v39  ;;  %v6003_v39 = vcombine.low %v361_v27, %v365_v28  ;;  %v417_v27 = vld [vmem:[#allocation5 + $0x808] sm:$0xff]  ;;  %v262_v35 = vld [vmem:[#allocation5 + $0x330] sm:$0xff] }
 0x12d   :  { %2766 = vmatpush1.bf16.msra.mxu1 %v5939_v40  ;;  %v5837_v40 = vcombine.low %v194_v24, %v198_v25  ;;  %v250_v24 = vld [vmem:[#allocation5 + $0x2d0] sm:$0xff]  ;;  %v421_v28 = vld [vmem:[#allocation5 + $0x828] sm:$0xff] }
 0x12e   :  { %2767 = vmatprep.subr.bf16.mxu1 %v5948_v41  ;;  %v6012_v41 = vcombine.high %v369_v37, %v373_v38  ;;  %v254_v25 = vld [vmem:[#allocation5 + $0x2f0] sm:$0xff]  ;;  %v425_v37 = vld [vmem:[#allocation5 + $0x848] sm:$0xff] }
 0x12f   :  { %v429_v38 = vld [vmem:[#allocation5 + $0x868] sm:$0xff] }
 0x131   :  { %2768 = vmatpush1.bf16.msra.mxu1 %v5947_v46  ;;  %v377_v46 = vld [vmem:[#allocation5 + $0x6c8] sm:$0xff] }
 0x132   :  { %2769 = vmatprep.subr.bf16.mxu1 %v5956_v47  ;;  %v381_v47 = vld [vmem:[#allocation5 + $0x6e8] sm:$0xff] }
 0x133   :  { %v6020_v50 = vcombine.high %v377_v46, %v381_v47  ;;  %v6019_v58 = vcombine.low %v377_v46, %v381_v47  ;;  %v433_v46 = vld [vmem:[#allocation5 + $0x888] sm:$0xff] }
 0x134   :  { %v437_v47 = vld [vmem:[#allocation5 + $0x8a8] sm:$0xff] }
 0x135   :  { %2770 = vmatpush1.bf16.msra.mxu1 %v5955_v53  ;;  %v222_v53 = vld [vmem:[#allocation5 + $0x1f0] sm:$0xff] }
 0x136   :  { %6193 = vmatmul.mubr.msk.bf16.vlgmr.msra.gmra.mrb[0].mxu0 %vm2554_vm0, %v7587_v52  ;;  %2771 = vmatprep.subr.bf16.mxu1 %v5964_v55  ;;  %v385_v55 = vld [vmem:[#allocation5 + $0x708] sm:$0xff]  ;;  %v5862_v0 = vcombine.high %v218_v51, %v222_v53 }
 0x137   :  { %2846 = vmatpush1.bf16.msra.mxu0 %v6187_v54  ;;  %2877 = vmatprep.mubr.bf16.mxu0 %v7405_v42  ;;  %v5854_v54 = vcombine.high %v210_v43, %v214_v44  ;;  %v266_v43 = vld [vmem:[#allocation5 + $0x350] sm:$0xff] }
 0x138   :  { %2886 = vmatprep.subr.bf16.mxu0 %v5806_v56  ;;  %v389_v56 = vld [vmem:[#allocation5 + $0x728] sm:$0xff]  ;;  %v270_v44 = vld [vmem:[#allocation5 + $0x370] sm:$0xff] }
 0x139   :  { %2772 = vmatpush1.bf16.msra.mxu1 %v5963_v60  ;;  %v6028_v60 = vcombine.high %v385_v55, %v389_v56 }
 0x13a   :  { %2773 = vmatprep.subr.bf16.mxu1 %v5972_v62  ;;  %v226_v62 = vld [vmem:[#allocation5 + $0x210] sm:$0xff] }
 0x13d   :  { %2774 = vmatpush1.bf16.msra.mxu1 %v5971_v3  ;;  %v6027_v3 = vcombine.low %v385_v55, %v389_v56  ;;  %v441_v55 = vld [vmem:[#allocation5 + $0x8c8] sm:$0xff] }
 0x13e   :  { %6194 = vmatmul.mubr.msk.bf16.vlgmr.msra.gmra.mrb[4].mxu0 %vm2554_vm0, %v7587_v52  ;;  %2775 = vmatprep.subr.bf16.mxu1 %v5980_v5  ;;  %v6036_v5 = vcombine.high %v393_v1, %v397_v2  ;;  %v445_v56 = vld [vmem:[#allocation5 + $0x8e8] sm:$0xff] }
 0x13f   :  { %2887 = vmatpush1.bf16.msra.mxu0 %v5805_v4  ;;  %2918 = vmatprep.mubr.bf16.mxu0 %v7565_v57  ;;  %v5861_v4 = vcombine.low %v218_v51, %v222_v53  ;;  %v274_v51 = vld [vmem:[#allocation5 + $0x390] sm:$0xff] }
 0x140   :  { %2888 = vmatprep.subr.bf16.mxu0 %v5814_v8  ;;  %v5870_v8 = vcombine.high %v226_v62, %v230_v63  ;;  %v278_v53 = vld [vmem:[#allocation5 + $0x3b0] sm:$0xff] }
 0x141   :  { %2776 = vmatpush1.bf16.msra.mxu1 %v5979_v11  ;;  %v6035_v11 = vcombine.low %v393_v1, %v397_v2  ;;  %v449_v1 = vld [vmem:[#allocation5 + $0x908] sm:$0xff] }
 0x142   :  { %2777 = vmatprep.subr.bf16.mxu1 %v5988_v13  ;;  %v6044_v13 = vcombine.high %v401_v9, %v405_v10  ;;  %v453_v2 = vld [vmem:[#allocation5 + $0x928] sm:$0xff] }
 0x143   :  { %2889 = vmatpush1.bf16.msra.mxu0 %v5813_v12  ;;  %v5869_v12 = vcombine.low %v226_v62, %v230_v63  ;;  %v282_v62 = vld [vmem:[#allocation5 + $0x3d0] sm:$0xff] }
 0x144   :  { %2890 = vmatprep.subr.bf16.mxu0 %v5822_v17  ;;  %v5878_v17 = vcombine.high %v234_v6, %v238_v7  ;;  %v286_v63 = vld [vmem:[#allocation5 + $0x3f0] sm:$0xff] }
 0x145   :  { %2778 = vmatpush1.bf16.msra.mxu1 %v5987_v20  ;;  %v6043_v20 = vcombine.low %v401_v9, %v405_v10  ;;  %v457_v9 = vld [vmem:[#allocation5 + $0x948] sm:$0xff] }
 0x146   :  { %2779 = vmatprep.subr.bf16.mxu1 %v5996_v23  ;;  %v6052_v23 = vcombine.high %v409_v18, %v413_v19  ;;  %v461_v10 = vld [vmem:[#allocation5 + $0x968] sm:$0xff] }
 0x147   :  { %2891 = vmatpush1.bf16.msra.mxu0 %v5821_v22  ;;  %v5877_v22 = vcombine.low %v234_v6, %v238_v7  ;;  %v290_v6 = vld [vmem:[#allocation5 + $0x410] sm:$0xff] }
 0x148   :  { %2892 = vmatprep.subr.bf16.mxu0 %v5830_v26  ;;  %v5886_v26 = vcombine.high %v242_v14, %v246_v15  ;;  %v294_v7 = vld [vmem:[#allocation5 + $0x430] sm:$0xff] }
 0x149   :  { %2780 = vmatpush1.bf16.msra.mxu1 %v5995_v30  ;;  %v6051_v30 = vcombine.low %v409_v18, %v413_v19  ;;  %v465_v18 = vld [vmem:[#allocation5 + $0x988] sm:$0xff] }
 0x14a   :  { %2781 = vmatprep.subr.bf16.mxu1 %v6004_v32  ;;  %v6060_v32 = vcombine.high %v417_v27, %v421_v28  ;;  %v469_v19 = vld [vmem:[#allocation5 + $0x9a8] sm:$0xff] }
 0x14b   :  { %2893 = vmatpush1.bf16.msra.mxu0 %v5829_v31  ;;  %v5885_v31 = vcombine.low %v242_v14, %v246_v15  ;;  %v298_v14 = vld [vmem:[#allocation5 + $0x450] sm:$0xff] }
 0x14c   :  { %2894 = vmatprep.subr.bf16.mxu0 %v5838_v36  ;;  %v5894_v36 = vcombine.high %v250_v24, %v254_v25  ;;  %v302_v15 = vld [vmem:[#allocation5 + $0x470] sm:$0xff] }
 0x14d   :  { %2782 = vmatpush1.bf16.msra.mxu1 %v6003_v39  ;;  %v6059_v39 = vcombine.low %v417_v27, %v421_v28  ;;  %v473_v27 = vld [vmem:[#allocation5 + $0x9c8] sm:$0xff] }
 0x14e   :  { %2783 = vmatprep.subr.bf16.mxu1 %v6012_v41  ;;  %v6068_v41 = vcombine.high %v425_v37, %v429_v38  ;;  %v477_v28 = vld [vmem:[#allocation5 + $0x9e8] sm:$0xff] }
 0x14f   :  { %2895 = vmatpush1.bf16.msra.mxu0 %v5837_v40  ;;  %v5893_v40 = vcombine.low %v250_v24, %v254_v25  ;;  %v306_v24 = vld [vmem:[#allocation5 + $0x490] sm:$0xff] }
 0x150   :  { %2896 = vmatprep.subr.bf16.mxu0 %v5846_v45  ;;  %v5902_v45 = vcombine.high %v258_v34, %v262_v35  ;;  %v310_v25 = vld [vmem:[#allocation5 + $0x4b0] sm:$0xff] }
 0x151   :  { %2784 = vmatpush1.bf16.msra.mxu1 %v6011_v48  ;;  %v6067_v48 = vcombine.low %v425_v37, %v429_v38  ;;  %v318_v37 = vld [vmem:[#allocation5 + $0x4f0] sm:$0xff]  ;;  %v5950_v38 = vcombine.high %v306_v24, %v310_v25 }
 0x152   :  { %2785 = vmatprep.subr.bf16.mxu1 %v6020_v50  ;;  %v6076_v50 = vcombine.high %v433_v46, %v437_v47 }
 0x153   :  { %2897 = vmatpush1.bf16.msra.mxu0 %v5845_v49  ;;  %v5901_v49 = vcombine.low %v258_v34, %v262_v35  ;;  %v5941_v34 = vcombine.low %v298_v14, %v302_v15  ;;  %v6116_v35 = vcombine.high %v473_v27, %v477_v28 }
 0x154   :  { %2898 = vmatprep.subr.bf16.mxu0 %v5854_v54  ;;  %v5910_v54 = vcombine.high %v266_v43, %v270_v44 }
 0x155   :  { %2786 = vmatpush1.bf16.msra.mxu1 %v6019_v58  ;;  %v6075_v58 = vcombine.low %v433_v46, %v437_v47  ;;  %v493_v46 = vld [vmem:[#allocation5 + $0xa68] sm:$0xff] }
 0x156   :  { %2787 = vmatprep.subr.bf16.mxu1 %v6028_v60  ;;  %v6084_v60 = vcombine.high %v441_v55, %v445_v56 }
 0x157   :  { %2899 = vmatpush1.bf16.msra.mxu0 %v5853_v59  ;;  %v5909_v59 = vcombine.low %v266_v43, %v270_v44  ;;  %v322_v44 = vld [vmem:[#allocation5 + $0x510] sm:$0xff] }
 0x158   :  { %2900 = vmatprep.subr.bf16.mxu0 %v5862_v0  ;;  %v5918_v0 = vcombine.high %v274_v51, %v278_v53 }
 0x159   :  { %2788 = vmatpush1.bf16.msra.mxu1 %v6027_v3  ;;  %v6083_v3 = vcombine.low %v441_v55, %v445_v56  ;;  %v497_v55 = vld [vmem:[#allocation5 + $0xa88] sm:$0xff] }
 0x15a   :  { %2789 = vmatprep.subr.bf16.mxu1 %v6036_v5  ;;  %v6092_v5 = vcombine.high %v449_v1, %v453_v2  ;;  %v501_v56 = vld [vmem:[#allocation5 + $0xaa8] sm:$0xff] }
 0x15b   :  { %2901 = vmatpush1.bf16.msra.mxu0 %v5861_v4  ;;  %v5917_v4 = vcombine.low %v274_v51, %v278_v53  ;;  %v330_v51 = vld [vmem:[#allocation5 + $0x550] sm:$0xff] }
 0x15c   :  { %2902 = vmatprep.subr.bf16.mxu0 %v5870_v8  ;;  %v5926_v8 = vcombine.high %v282_v62, %v286_v63  ;;  %v334_v53 = vld [vmem:[#allocation5 + $0x570] sm:$0xff] }
 0x15d   :  { %2790 = vmatpush1.bf16.msra.mxu1 %v6035_v11  ;;  %v6091_v11 = vcombine.low %v449_v1, %v453_v2  ;;  %v505_v1 = vld [vmem:[#allocation5 + $0xac8] sm:$0xff] }
 0x15e   :  { %2791 = vmatprep.subr.bf16.mxu1 %v6044_v13  ;;  %v6100_v13 = vcombine.high %v457_v9, %v461_v10  ;;  %v509_v2 = vld [vmem:[#allocation5 + $0xae8] sm:$0xff] }
 0x15f   :  { %2903 = vmatpush1.bf16.msra.mxu0 %v5869_v12  ;;  %v5925_v12 = vcombine.low %v282_v62, %v286_v63  ;;  %v338_v62 = vld [vmem:[#allocation5 + $0x590] sm:$0xff] }
 0x160   :  { %2904 = vmatprep.subr.bf16.mxu0 %v5878_v17  ;;  %v5934_v17 = vcombine.high %v290_v6, %v294_v7  ;;  %v342_v63 = vld [vmem:[#allocation5 + $0x5b0] sm:$0xff] }
 0x161   :  { %2792 = vmatpush1.bf16.msra.mxu1 %v6043_v20  ;;  %v6099_v20 = vcombine.low %v457_v9, %v461_v10  ;;  %v346_v9 = vld [vmem:[#allocation5 + $0x5d0] sm:$0xff] }
 0x162   :  { %2793 = vmatprep.subr.bf16.mxu1 %v6052_v23  ;;  %v6108_v23 = vcombine.high %v465_v18, %v469_v19  ;;  %v350_v10 = vld [vmem:[#allocation5 + $0x5f0] sm:$0xff] }
 0x163   :  { %2905 = vmatpush1.bf16.msra.mxu0 %v5877_v22  ;;  %v5933_v22 = vcombine.low %v290_v6, %v294_v7  ;;  %v513_v6 = vld [vmem:[#allocation5 + $0xb08] sm:$0xff] }
 0x164   :  { %2906 = vmatprep.subr.bf16.mxu0 %v5886_v26  ;;  %v5942_v26 = vcombine.high %v298_v14, %v302_v15  ;;  %v517_v7 = vld [vmem:[#allocation5 + $0xb28] sm:$0xff]  ;;  %v5990_v14 = vcombine.high %v346_v9, %v350_v10 }
 0x165   :  { %2794 = vmatpush1.bf16.msra.mxu1 %v6051_v30  ;;  %v6107_v30 = vcombine.low %v465_v18, %v469_v19  ;;  %v521_v15 = vld [vmem:[#allocation5 + $0xb48] sm:$0xff]  ;;  %v354_v18 = vld [vmem:[#allocation5 + $0x610] sm:$0xff] }
 0x166   :  { %2804 = vmatprep.subr.bf16.mxu1 %v6060_v32  ;;  %v485_v32 = vld [vmem:[#allocation5 + $0xa28] sm:$0xff]  ;;  %v358_v19 = vld [vmem:[#allocation5 + $0x630] sm:$0xff] }
 0x167   :  { %2907 = vmatpush1.bf16.msra.mxu0 %v5885_v31  ;;  %v481_v31 = vld [vmem:[#allocation5 + $0xa08] sm:$0xff] }
 0x168   :  { %2908 = vmatprep.subr.bf16.mxu0 %v5894_v36  ;;  %2796 = vmatmul.mubr.bf16.vlgmr.msra.gmra.mrb[4].mxu1 %v7573_v21  ;;  %v314_v36 = vld [vmem:[#allocation5 + $0x4d0] sm:$0xff]  ;;  %v6124_v43 = vcombine.high %v481_v31, %v485_v32 }
 0x169   :  { %2805 = vmatpush1.bf16.msra.mxu1 %v6059_v39  ;;  %2836 = vmatprep.mubr.bf16.mxu1 %v7575_v29  ;;  %v6115_v39 = vcombine.low %v473_v27, %v477_v28  ;;  %v5958_v47 = vcombine.high %v314_v36, %v318_v37  ;;  %v362_v27 = vld [vmem:[#allocation5 + $0x650] sm:$0xff] }
 0x16a   :  { %2806 = vmatprep.subr.bf16.mxu1 %v6068_v41  ;;  %v5949_v41 = vcombine.low %v306_v24, %v310_v25  ;;  %v5998_v24 = vcombine.high %v354_v18, %v358_v19  ;;  %v529_v25 = vld [vmem:[#allocation5 + $0xb88] sm:$0xff]  ;;  %v366_v28 = vld [vmem:[#allocation5 + $0x670] sm:$0xff] }
 0x16b   :  { %2909 = vmatpush1.bf16.msra.mxu0 %v5893_v40  ;;  %v489_v40 = vld [vmem:[#allocation5 + $0xa48] sm:$0xff] }
 0x16c   :  { %2910 = vmatprep.subr.bf16.mxu0 %v5902_v45  ;;  %v326_v45 = vld [vmem:[#allocation5 + $0x530] sm:$0xff] }
 0x16d   :  { %2807 = vmatpush1.bf16.msra.mxu1 %v6067_v48  ;;  %v6123_v48 = vcombine.low %v481_v31, %v485_v32  ;;  %v5997_v31 = vcombine.low %v354_v18, %v358_v19  ;;  %v414_v18 = vld [vmem:[#allocation5 + $0x7f0] sm:$0xff] }
 0x16e   :  { %2808 = vmatprep.subr.bf16.mxu1 %v6076_v50  ;;  %v6132_v50 = vcombine.high %v489_v40, %v493_v46 }
 0x16f   :  { %2911 = vmatpush1.bf16.msra.mxu0 %v5901_v49  ;;  %v5957_v49 = vcombine.low %v314_v36, %v318_v37  ;;  %v541_v36 = vld [vmem:[#allocation5 + $0xbe8] sm:$0xff]  ;;  %v370_v37 = vld [vmem:[#allocation5 + $0x690] sm:$0xff] }
 0x170   :  { %2912 = vmatprep.subr.bf16.mxu0 %v5910_v54  ;;  %v5966_v54 = vcombine.high %v322_v44, %v326_v45 }
 0x171   :  { %2809 = vmatpush1.bf16.msra.mxu1 %v6075_v58  ;;  %v6131_v58 = vcombine.low %v489_v40, %v493_v46  ;;  %v6005_v40 = vcombine.low %v362_v27, %v366_v28  ;;  %v378_v46 = vld [vmem:[#allocation5 + $0x6d0] sm:$0xff] }
 0x172   :  { %2810 = vmatprep.subr.bf16.mxu1 %v6084_v60  ;;  %v6140_v60 = vcombine.high %v497_v55, %v501_v56 }
 0x173   :  { %2913 = vmatpush1.bf16.msra.mxu0 %v5909_v59  ;;  %v5965_v59 = vcombine.low %v322_v44, %v326_v45  ;;  %v163_v44 = vld [vmem:[#allocation5 + $0x18] sm:$0xff] }
 0x174   :  { %2914 = vmatprep.subr.bf16.mxu0 %v5918_v0  ;;  %v5974_v0 = vcombine.high %v330_v51, %v334_v53  ;;  %v167_v45 = vld [vmem:[#allocation5 + $0x38] sm:$0xff] }
 0x175   :  { %2811 = vmatpush1.bf16.msra.mxu1 %v6083_v3  ;;  %v6139_v3 = vcombine.low %v497_v55, %v501_v56  ;;  %v386_v55 = vld [vmem:[#allocation5 + $0x710] sm:$0xff] }
 0x176   :  { %2812 = vmatprep.subr.bf16.mxu1 %v6092_v5  ;;  %v6148_v5 = vcombine.high %v505_v1, %v509_v2  ;;  %v390_v56 = vld [vmem:[#allocation5 + $0x730] sm:$0xff] }
 0x177   :  { %2915 = vmatpush1.bf16.msra.mxu0 %v5917_v4  ;;  %v5973_v4 = vcombine.low %v330_v51, %v334_v53  ;;  %v171_v53 = vld [vmem:[#allocation5 + $0x58] sm:$0xff] }
 0x178   :  { %2916 = vmatprep.subr.bf16.mxu0 %v5926_v8  ;;  %v5982_v8 = vcombine.high %v338_v62, %v342_v63 }
 0x179   :  { %2813 = vmatpush1.bf16.msra.mxu1 %v6091_v11  ;;  %v6147_v11 = vcombine.low %v505_v1, %v509_v2  ;;  %v394_v1 = vld [vmem:[#allocation5 + $0x750] sm:$0xff] }
 0x17a   :  { %2814 = vmatprep.subr.bf16.mxu1 %v6100_v13  ;;  %v6156_v13 = vcombine.high %v513_v6, %v517_v7  ;;  %v398_v2 = vld [vmem:[#allocation5 + $0x770] sm:$0xff] }
 0x17b   :  { %2917 = vmatpush1.bf16.msra.mxu0 %v5925_v12  ;;  %v5981_v12 = vcombine.low %v338_v62, %v342_v63  ;;  %v6030_v62 = vcombine.high %v386_v55, %v390_v56  ;;  %v179_v63 = vld [vmem:[#allocation5 + $0x98] sm:$0xff] }
 0x17c   :  { %2927 = vmatprep.subr.bf16.mxu0 %v5934_v17  ;;  %v525_v17 = vld [vmem:[#allocation5 + $0xb68] sm:$0xff] }
 0x17d   :  { %2815 = vmatpush1.bf16.msra.mxu1 %v6099_v20  ;;  %v6155_v20 = vcombine.low %v513_v6, %v517_v7  ;;  %v6038_v6 = vcombine.high %v394_v1, %v398_v2  ;;  %v187_v7 = vld [vmem:[#allocation5 + $0xd8] sm:$0xff] }
 0x17e   :  { %2919 = vmatmul.mubr.bf16.vlgmr.msra.gmra.mrb[8].mxu0 %v7571_v16  ;;  %2816 = vmatprep.subr.bf16.mxu1 %v6108_v23  ;;  %v6164_v23 = vcombine.high %v521_v15, %v525_v17 }
 0x17f   :  { %2928 = vmatpush1.bf16.msra.mxu0 %v5933_v22  ;;  %2959 = vmatprep.mubr.bf16.mxu0 %v7567_v61  ;;  %v5989_v22 = vcombine.low %v346_v9, %v350_v10  ;;  %v402_v9 = vld [vmem:[#allocation5 + $0x790] sm:$0xff] }
 0x180   :  { %2929 = vmatprep.subr.bf16.mxu0 %v5942_v26  ;;  %v533_v26 = vld [vmem:[#allocation5 + $0xba8] sm:$0xff]  ;;  %v406_v10 = vld [vmem:[#allocation5 + $0x7b0] sm:$0xff] }
 0x181   :  { %2817 = vmatpush1.bf16.msra.mxu1 %v6107_v30  ;;  %v6163_v30 = vcombine.low %v521_v15, %v525_v17  ;;  %v6172_v32 = vcombine.high %v529_v25, %v533_v26  ;;  %v195_v15 = vld [vmem:[#allocation5 + $0x118] sm:$0xff]  ;;  %v410_v17 = vld [vmem:[#allocation5 + $0x7d0] sm:$0xff] }
 0x182   :  { %2818 = vmatprep.subr.bf16.mxu1 %v6116_v35  ;;  %v537_v35 = vld [vmem:[#allocation5 + $0xbc8] sm:$0xff] }
 0x183   :  { %2930 = vmatpush1.bf16.msra.mxu0 %v5941_v34  ;;  %v6006_v34 = vcombine.high %v362_v27, %v366_v28  ;;  %v422_v27 = vld [vmem:[#allocation5 + $0x830] sm:$0xff] }
 0x184   :  { %2931 = vmatprep.subr.bf16.mxu0 %v5950_v38  ;;  %v374_v38 = vld [vmem:[#allocation5 + $0x6b0] sm:$0xff] }
 0x185   :  { %2819 = vmatpush1.bf16.msra.mxu1 %v6115_v39  ;;  %v6171_v39 = vcombine.low %v529_v25, %v533_v26  ;;  %v207_v25 = vld [vmem:[#allocation5 + $0x178] sm:$0xff]  ;;  %v418_v26 = vld [vmem:[#allocation5 + $0x810] sm:$0xff] }
 0x186   :  { %2820 = vmatprep.subr.bf16.mxu1 %v6124_v43  ;;  %v6014_v43 = vcombine.high %v370_v37, %v374_v38 }
 0x187   :  { %2932 = vmatpush1.bf16.msra.mxu0 %v5949_v41  ;;  %v6180_v41 = vcombine.high %v537_v35, %v541_v36 }
 0x188   :  { %2933 = vmatprep.subr.bf16.mxu0 %v5958_v47  ;;  %v382_v47 = vld [vmem:[#allocation5 + $0x6f0] sm:$0xff] }
 0x189   :  { %2821 = vmatpush1.bf16.msra.mxu1 %v6123_v48  ;;  %v6179_v48 = vcombine.low %v537_v35, %v541_v36  ;;  %v6022_v51 = vcombine.high %v378_v46, %v382_v47  ;;  %v215_v35 = vld [vmem:[#allocation5 + $0x1b8] sm:$0xff]  ;;  %v426_v36 = vld [vmem:[#allocation5 + $0x850] sm:$0xff] }
 0x18a   :  { %2822 = vmatprep.subr.bf16.mxu1 %v6132_v50  ;;  %v5808_v50 = vcombine.high %v163_v44, %v167_v45 }
 0x18b   :  { %2934 = vmatpush1.bf16.msra.mxu0 %v5957_v49  ;;  %v6013_v49 = vcombine.low %v370_v37, %v374_v38  ;;  %v430_v37 = vld [vmem:[#allocation5 + $0x870] sm:$0xff] }
 0x18c   :  { %2935 = vmatprep.subr.bf16.mxu0 %v5966_v54  ;;  %v175_v54 = vld [vmem:[#allocation5 + $0x78] sm:$0xff] }
 0x18d   :  { %2823 = vmatpush1.bf16.msra.mxu1 %v6131_v58  ;;  %v5807_v58 = vcombine.low %v163_v44, %v167_v45  ;;  %v219_v44 = vld [vmem:[#allocation5 + $0x1d8] sm:$0xff] }
 0x18e   :  { %2824 = vmatprep.subr.bf16.mxu1 %v6140_v60  ;;  %v5816_v60 = vcombine.high %v171_v53, %v175_v54  ;;  %v223_v45 = vld [vmem:[#allocation5 + $0x1f8] sm:$0xff] }
 0x18f   :  { %2936 = vmatpush1.bf16.msra.mxu0 %v5965_v59  ;;  %v6021_v59 = vcombine.low %v378_v46, %v382_v47  ;;  %v434_v47 = vld [vmem:[#allocation5 + $0x890] sm:$0xff] }
 0x190   :  { %2937 = vmatprep.subr.bf16.mxu0 %v5974_v0  ;;  %v183_v0 = vld [vmem:[#allocation5 + $0xb8] sm:$0xff] }
 0x191   :  { %2825 = vmatpush1.bf16.msra.mxu1 %v6139_v3  ;;  %v5815_v3 = vcombine.low %v171_v53, %v175_v54  ;;  %v6069_v53 = vcombine.low %v426_v36, %v430_v37  ;;  %v5864_v54 = vcombine.high %v219_v44, %v223_v45 }
 0x192   :  { %2826 = vmatprep.subr.bf16.mxu1 %v6148_v5  ;;  %v5824_v5 = vcombine.high %v179_v63, %v183_v0 }
 0x193   :  { %2938 = vmatpush1.bf16.msra.mxu0 %v5973_v4  ;;  %v6029_v4 = vcombine.low %v386_v55, %v390_v56  ;;  %v227_v56 = vld [vmem:[#allocation5 + $0x218] sm:$0xff] }
 0x194   :  { %2939 = vmatprep.subr.bf16.mxu0 %v5982_v8  ;;  %v191_v8 = vld [vmem:[#allocation5 + $0xf8] sm:$0xff] }
 0x195   :  { %2827 = vmatpush1.bf16.msra.mxu1 %v6147_v11  ;;  %v5823_v11 = vcombine.low %v179_v63, %v183_v0  ;;  %v5831_v19 = vcombine.low %v187_v7, %v191_v8 }
 0x196   :  { %2828 = vmatprep.subr.bf16.mxu1 %v6156_v13  ;;  %v5832_v13 = vcombine.high %v187_v7, %v191_v8 }
 0x197   :  { %2940 = vmatpush1.bf16.msra.mxu0 %v5981_v12  ;;  %v6037_v12 = vcombine.low %v394_v1, %v398_v2  ;;  %v235_v2 = vld [vmem:[#allocation5 + $0x258] sm:$0xff] }
 0x198   :  { %2941 = vmatprep.subr.bf16.mxu0 %v5990_v14  ;;  %v6046_v14 = vcombine.high %v402_v9, %v406_v10 }
 0x199   :  { %2829 = vmatpush1.bf16.msra.mxu1 %v6155_v20  ;;  %v6045_v20 = vcombine.low %v402_v9, %v406_v10  ;;  %v243_v10 = vld [vmem:[#allocation5 + $0x298] sm:$0xff] }
 0x19a   :  { %2830 = vmatprep.subr.bf16.mxu1 %v6164_v23  ;;  %v6054_v23 = vcombine.high %v410_v17, %v414_v18 }
 0x19b   :  { %2942 = vmatpush1.bf16.msra.mxu0 %v5989_v22 }
 0x19c   :  { %2943 = vmatprep.subr.bf16.mxu0 %v5998_v24  ;;  %v203_v24 = vld [vmem:[#allocation5 + $0x158] sm:$0xff] }
 0x19d   :  { %2831 = vmatpush1.bf16.msra.mxu1 %v6163_v30  ;;  %v6053_v30 = vcombine.low %v410_v17, %v414_v18  ;;  %v5847_v38 = vcombine.low %v203_v24, %v207_v25  ;;  %v251_v18 = vld [vmem:[#allocation5 + $0x2d8] sm:$0xff] }
 0x19e   :  { %2832 = vmatprep.subr.bf16.mxu1 %v6172_v32  ;;  %v6062_v32 = vcombine.high %v418_v26, %v422_v27 }
 0x19f   :  { %2944 = vmatpush1.bf16.msra.mxu0 %v5997_v31  ;;  %v5848_v31 = vcombine.high %v203_v24, %v207_v25 }
 0x1a0   :  { %2945 = vmatprep.subr.bf16.mxu0 %v6006_v34  ;;  %v211_v34 = vld [vmem:[#allocation5 + $0x198] sm:$0xff] }
 0x1a1   :  { %2833 = vmatpush1.bf16.msra.mxu1 %v6171_v39  ;;  %v6061_v39 = vcombine.low %v418_v26, %v422_v27  ;;  %v259_v27 = vld [vmem:[#allocation5 + $0x318] sm:$0xff] }
 0x1a2   :  { %2834 = vmatprep.subr.bf16.mxu1 %v6180_v41 }
 0x1a3   :  { %2946 = vmatpush1.bf16.msra.mxu0 %v6005_v40  ;;  %v5856_v40 = vcombine.high %v211_v34, %v215_v35 }
 0x1a4   :  { %2947 = vmatprep.subr.bf16.mxu0 %v6014_v43  ;;  %v6070_v43 = vcombine.high %v426_v36, %v430_v37  ;;  %v267_v37 = vld [vmem:[#allocation5 + $0x358] sm:$0xff] }
 0x1a5   :  { %2835 = vmatpush1.bf16.msra.mxu1 %v6179_v48  ;;  %v438_v48 = vld [vmem:[#allocation5 + $0x8b0] sm:$0xff] }
 0x1a6   :  { %3050 = vmatprep.subr.bf16.mxu1 %v5808_v50  ;;  %v5855_v50 = vcombine.low %v211_v34, %v215_v35  ;;  %v6078_v55 = vcombine.high %v434_v47, %v438_v48  ;;  %v6077_v63 = vcombine.low %v434_v47, %v438_v48  ;;  %v275_v48 = vld [vmem:[#allocation5 + $0x398] sm:$0xff] }
 0x1a7   :  { %2948 = vmatpush1.bf16.msra.mxu0 %v6013_v49 }
 0x1a8   :  { %2949 = vmatprep.subr.bf16.mxu0 %v6022_v51  ;;  %2837 = vmatmul.mubr.bf16.vlgmr.msra.gmra.mrb[4].mxu1 %v7581_v33 }
 0x1a9   :  { %3051 = vmatpush1.bf16.msra.mxu1 %v5807_v58  ;;  %3082 = vmatprep.mubr.bf16.mxu1 %v7565_v57  ;;  %v199_v57 = vld [vmem:[#allocation5 + $0x138] sm:$0xff] }
 0x1aa   :  { %3052 = vmatprep.subr.bf16.mxu1 %v5816_v60  ;;  %v5840_v22 = vcombine.high %v195_v15, %v199_v57  ;;  %v5839_v28 = vcombine.low %v195_v15, %v199_v57  ;;  %v231_v58 = vld [vmem:[#allocation5 + $0x238] sm:$0xff]  ;;  %v446_v60 = vld [vmem:[#allocation5 + $0x8f0] sm:$0xff] }
 0x1ab   :  { %2950 = vmatpush1.bf16.msra.mxu0 %v6021_v59  ;;  %v442_v59 = vld [vmem:[#allocation5 + $0x8d0] sm:$0xff]  ;;  %v5872_v0 = vcombine.high %v227_v56, %v231_v58 }
 0x1ac   :  { %2951 = vmatprep.subr.bf16.mxu0 %v6030_v62  ;;  %v5863_v62 = vcombine.low %v219_v44, %v223_v45  ;;  %v6086_v1 = vcombine.high %v442_v59, %v446_v60  ;;  %v6085_v7 = vcombine.low %v442_v59, %v446_v60  ;;  %v287_v59 = vld [vmem:[#allocation5 + $0x3f8] sm:$0xff]  ;;  %v498_v60 = vld [vmem:[#allocation5 + $0xa90] sm:$0xff] }
 0x1ad   :  { %3053 = vmatpush1.bf16.msra.mxu1 %v5815_v3  ;;  %v239_v3 = vld [vmem:[#allocation5 + $0x278] sm:$0xff] }
 0x1ae   :  { %3054 = vmatprep.subr.bf16.mxu1 %v5824_v5  ;;  %v454_v5 = vld [vmem:[#allocation5 + $0x930] sm:$0xff]  ;;  %v5880_v8 = vcombine.high %v235_v2, %v239_v3 }
 0x1af   :  { %2952 = vmatpush1.bf16.msra.mxu0 %v6029_v4  ;;  %v450_v4 = vld [vmem:[#allocation5 + $0x910] sm:$0xff] }
 0x1b0   :  { %2953 = vmatprep.subr.bf16.mxu0 %v6038_v6  ;;  %v5871_v6 = vcombine.low %v227_v56, %v231_v58  ;;  %v6094_v9 = vcombine.high %v450_v4, %v454_v5  ;;  %v6093_v15 = vcombine.low %v450_v4, %v454_v5  ;;  %v283_v58 = vld [vmem:[#allocation5 + $0x3d8] sm:$0xff]  ;;  %v506_v5 = vld [vmem:[#allocation5 + $0xad0] sm:$0xff] }
 0x1b1   :  { %3055 = vmatpush1.bf16.msra.mxu1 %v5823_v11  ;;  %v247_v11 = vld [vmem:[#allocation5 + $0x2b8] sm:$0xff] }
 0x1b2   :  { %3056 = vmatprep.subr.bf16.mxu1 %v5832_v13  ;;  %v462_v13 = vld [vmem:[#allocation5 + $0x970] sm:$0xff]  ;;  %v5888_v57 = vcombine.high %v243_v10, %v247_v11  ;;  %v295_v4 = vld [vmem:[#allocation5 + $0x438] sm:$0xff] }
 0x1b3   :  { %2954 = vmatpush1.bf16.msra.mxu0 %v6037_v12  ;;  %v458_v12 = vld [vmem:[#allocation5 + $0x950] sm:$0xff] }
 0x1b4   :  { %2955 = vmatprep.subr.bf16.mxu0 %v6046_v14  ;;  %v5879_v14 = vcombine.low %v235_v2, %v239_v3  ;;  %v6102_v17 = vcombine.high %v458_v12, %v462_v13  ;;  %v6101_v24 = vcombine.low %v458_v12, %v462_v13  ;;  %v291_v3 = vld [vmem:[#allocation5 + $0x418] sm:$0xff]  ;;  %v514_v13 = vld [vmem:[#allocation5 + $0xb10] sm:$0xff] }
 0x1b5   :  { %3057 = vmatpush1.bf16.msra.mxu1 %v5831_v19  ;;  %v255_v19 = vld [vmem:[#allocation5 + $0x2f8] sm:$0xff] }
 0x1b6   :  { %3058 = vmatprep.subr.bf16.mxu1 %v5840_v22  ;;  %v470_v22 = vld [vmem:[#allocation5 + $0x9b0] sm:$0xff]  ;;  %v5896_v25 = vcombine.high %v251_v18, %v255_v19  ;;  %v303_v12 = vld [vmem:[#allocation5 + $0x478] sm:$0xff] }
 0x1b7   :  { %2956 = vmatpush1.bf16.msra.mxu0 %v6045_v20  ;;  %v466_v20 = vld [vmem:[#allocation5 + $0x990] sm:$0xff] }
 0x1b8   :  { %2957 = vmatprep.subr.bf16.mxu0 %v6054_v23  ;;  %v5887_v23 = vcombine.low %v243_v10, %v247_v11  ;;  %v6110_v26 = vcombine.high %v466_v20, %v470_v22  ;;  %v6109_v34 = vcombine.low %v466_v20, %v470_v22  ;;  %v299_v11 = vld [vmem:[#allocation5 + $0x458] sm:$0xff]  ;;  %v522_v22 = vld [vmem:[#allocation5 + $0xb50] sm:$0xff] }
 0x1b9   :  { %3059 = vmatpush1.bf16.msra.mxu1 %v5839_v28  ;;  %v263_v28 = vld [vmem:[#allocation5 + $0x338] sm:$0xff] }
 0x1ba   :  { %3060 = vmatprep.subr.bf16.mxu1 %v5848_v31  ;;  %v478_v31 = vld [vmem:[#allocation5 + $0x9f0] sm:$0xff]  ;;  %v5904_v35 = vcombine.high %v259_v27, %v263_v28  ;;  %v311_v20 = vld [vmem:[#allocation5 + $0x4b8] sm:$0xff] }
 0x1bb   :  { %2958 = vmatpush1.bf16.msra.mxu0 %v6053_v30  ;;  %v7601_v41 = vpop.f32.mrb[0].mxu1  ;;  %v474_v30 = vld [vmem:[#allocation5 + $0x9d0] sm:$0xff] }
 0x1bc   :  { %2968 = vmatprep.subr.bf16.mxu0 %v6062_v32  ;;  %v7603_v46 = vpop.f32.mrb[1].mxu1  ;;  %v5895_v32 = vcombine.low %v251_v18, %v255_v19  ;;  %v6118_v36 = vcombine.high %v474_v30, %v478_v31  ;;  %v6117_v44 = vcombine.low %v474_v30, %v478_v31  ;;  %v307_v19 = vld [vmem:[#allocation5 + $0x498] sm:$0xff]  ;;  %v530_v31 = vld [vmem:[#allocation5 + $0xb90] sm:$0xff] }
 0x1bd   :  { %v2596_v49 = vpop.f32.mrb[2].mxu1  ;;  %3061 = vmatpush1.bf16.msra.mxu1 %v5847_v38  ;;  %v271_v38 = vld [vmem:[#allocation5 + $0x378] sm:$0xff] }
 0x1be   :  { %2960 = vmatmul.mubr.bf16.vlgmr.msra.gmra.mrb[8].mxu0 %v7573_v21  ;;  %v2597_v51 = vpop.f32.mrb[3].mxu1  ;;  %3062 = vmatprep.subr.bf16.mxu1 %v5856_v40  ;;  %v486_v40 = vld [vmem:[#allocation5 + $0xa30] sm:$0xff]  ;;  %v5912_v45 = vcombine.high %v267_v37, %v271_v38  ;;  %v279_v49 = vld [vmem:[#allocation5 + $0x3b8] sm:$0xff] }
 0x1bf   :  { %2969 = vmatpush1.bf16.msra.mxu0 %v6061_v39  ;;  %3000 = vmatprep.mubr.bf16.mxu0 %v7575_v29  ;;  %v482_v39 = vld [vmem:[#allocation5 + $0xa10] sm:$0xff]  ;;  %v319_v30 = vld [vmem:[#allocation5 + $0x4f8] sm:$0xff] }
 0x1c0   :  { %2970 = vmatprep.subr.bf16.mxu0 %v6070_v43  ;;  %v5903_v43 = vcombine.low %v259_v27, %v263_v28  ;;  %v6126_v47 = vcombine.high %v482_v39, %v486_v40  ;;  %v494_v51 = vld [vmem:[#allocation5 + $0xa70] sm:$0xff]  ;;  %v315_v28 = vld [vmem:[#allocation5 + $0x4d8] sm:$0xff] }
 0x1c1   :  { %3063 = vmatpush1.bf16.msra.mxu1 %v5855_v50  ;;  %v490_v50 = vld [vmem:[#allocation5 + $0xa50] sm:$0xff] }
 0x1c2   :  { %3064 = vmatprep.subr.bf16.mxu1 %v5864_v54  ;;  %v6125_v54 = vcombine.low %v482_v39, %v486_v40  ;;  %v6134_v56 = vcombine.high %v490_v50, %v494_v51  ;;  %v542_v39 = vld [vmem:[#allocation5 + $0xbf0] sm:$0xff]  ;;  %v5959_v40 = vcombine.low %v315_v28, %v319_v30 }
 0x1c3   :  { %2971 = vmatpush1.bf16.msra.mxu0 %v6069_v53  ;;  %v5911_v53 = vcombine.low %v267_v37, %v271_v38  ;;  %v323_v37 = vld [vmem:[#allocation5 + $0x518] sm:$0xff]  ;;  %v538_v38 = vld [vmem:[#allocation5 + $0xbd0] sm:$0xff] }
 0x1c4   :  { %2972 = vmatprep.subr.bf16.mxu0 %v6078_v55  ;;  %v5920_v55 = vcombine.high %v275_v48, %v279_v49 }
 0x1c5   :  { %3065 = vmatpush1.bf16.msra.mxu1 %v5863_v62  ;;  %v502_v62 = vld [vmem:[#allocation5 + $0xab0] sm:$0xff] }
 0x1c6   :  { %3066 = vmatprep.subr.bf16.mxu1 %v5872_v0  ;;  %v6133_v0 = vcombine.low %v490_v50, %v494_v51  ;;  %v6142_v2 = vcombine.high %v498_v60, %v502_v62  ;;  %v550_v50 = vld [vmem:[#allocation5 + $0xc30] sm:$0xff] }
 0x1c7   :  { %2973 = vmatpush1.bf16.msra.mxu0 %v6077_v63  ;;  %v5919_v63 = vcombine.low %v275_v48, %v279_v49  ;;  %v335_v48 = vld [vmem:[#allocation5 + $0x578] sm:$0xff]  ;;  %v546_v49 = vld [vmem:[#allocation5 + $0xc10] sm:$0xff] }
 0x1c8   :  { %2974 = vmatprep.subr.bf16.mxu0 %v6086_v1  ;;  %v5928_v1 = vcombine.high %v283_v58, %v287_v59 }
 0x1c9   :  { %3067 = vmatpush1.bf16.msra.mxu1 %v5871_v6  ;;  %v510_v6 = vld [vmem:[#allocation5 + $0xaf0] sm:$0xff] }
 0x1ca   :  { %3068 = vmatprep.subr.bf16.mxu1 %v5880_v8  ;;  %v6141_v8 = vcombine.low %v498_v60, %v502_v62  ;;  %v6150_v10 = vcombine.high %v506_v5, %v510_v6  ;;  %v547_v60 = vld [vmem:[#allocation5 + $0xc18] sm:$0xff] }
 0x1cb   :  { %2975 = vmatpush1.bf16.msra.mxu0 %v6085_v7  ;;  %v5927_v7 = vcombine.low %v283_v58, %v287_v59  ;;  %v343_v58 = vld [vmem:[#allocation5 + $0x5b8] sm:$0xff]  ;;  %v6190_v59 = vcombine.high %v546_v49, %v550_v50 }
 0x1cc   :  { %2976 = vmatprep.subr.bf16.mxu0 %v6094_v9  ;;  %v5936_v9 = vcombine.high %v291_v3, %v295_v4  ;;  %v551_v62 = vld [vmem:[#allocation5 + $0xc38] sm:$0xff] }
 0x1cd   :  { %3069 = vmatpush1.bf16.msra.mxu1 %v5879_v14  ;;  %v518_v14 = vld [vmem:[#allocation5 + $0xb30] sm:$0xff] }
 0x1ce   :  { %3070 = vmatprep.subr.bf16.mxu1 %v5888_v57  ;;  %v6149_v57 = vcombine.low %v506_v5, %v510_v6  ;;  %v6158_v18 = vcombine.high %v514_v13, %v518_v14  ;;  %v6192_v5 = vcombine.high %v547_v60, %v551_v62 }
 0x1cf   :  { %2977 = vmatpush1.bf16.msra.mxu0 %v6093_v15  ;;  %v5935_v15 = vcombine.low %v291_v3, %v295_v4  ;;  %v347_v3 = vld [vmem:[#allocation5 + $0x5d8] sm:$0xff] }
 0x1d0   :  { %2978 = vmatprep.subr.bf16.mxu0 %v6102_v17  ;;  %v5944_v17 = vcombine.high %v299_v11, %v303_v12  ;;  %v351_v4 = vld [vmem:[#allocation5 + $0x5f8] sm:$0xff] }
 0x1d1   :  { %3071 = vmatpush1.bf16.msra.mxu1 %v5887_v23  ;;  %v526_v23 = vld [vmem:[#allocation5 + $0xb70] sm:$0xff] }
 0x1d2   :  { %3072 = vmatprep.subr.bf16.mxu1 %v5896_v25  ;;  %v6157_v25 = vcombine.low %v514_v13, %v518_v14  ;;  %v6166_v27 = vcombine.high %v522_v22, %v526_v23  ;;  %v5991_v13 = vcombine.low %v347_v3, %v351_v4 }
 0x1d3   :  { %2979 = vmatpush1.bf16.msra.mxu0 %v6101_v24  ;;  %v5943_v24 = vcombine.low %v299_v11, %v303_v12  ;;  %v7616_v11 = vld [vmem:[#allocation7] sm:$0xff] }
 0x1d4   :  { %2980 = vmatprep.subr.bf16.mxu0 %v6110_v26  ;;  %v5952_v26 = vcombine.high %v307_v19, %v311_v20 }
 0x1d5   :  { %3073 = vmatpush1.bf16.msra.mxu1 %v5895_v32  ;;  %v534_v32 = vld [vmem:[#allocation5 + $0xbb0] sm:$0xff] }
 0x1d6   :  { %3074 = vmatprep.subr.bf16.mxu1 %v5904_v35  ;;  %v5960_v35 = vcombine.high %v315_v28, %v319_v30 }
 0x1d7   :  { %2981 = vmatpush1.bf16.msra.mxu0 %v6109_v34  ;;  %v5951_v34 = vcombine.low %v307_v19, %v311_v20  ;;  %v6191_v20 = vcombine.low %v547_v60, %v551_v62  ;;  %v6670_v60 = vld [vmem:[#allocation8 + $0x64] ss:$16 sps:$4 sm:$0xff]  }
 0x1d8   :  { %2982 = vmatprep.subr.bf16.mxu0 %v6118_v36  ;;  %v6174_v36 = vcombine.high %v530_v31, %v534_v32  ;;  %v403_v62 = vld [vmem:[#allocation5 + $0x798] sm:$0xff] }
 0x1d9   :  { %3075 = vmatpush1.bf16.msra.mxu1 %v5903_v43  ;;  %v6173_v43 = vcombine.low %v530_v31, %v534_v32 }
 0x1da   :  { %3076 = vmatprep.subr.bf16.mxu1 %v5912_v45  ;;  %v6182_v45 = vcombine.high %v538_v38, %v542_v39 }
 0x1db   :  { %2983 = vmatpush1.bf16.msra.mxu0 %v6117_v44 }
 0x1dc   :  { %2984 = vmatprep.subr.bf16.mxu0 %v6126_v47  ;;  %v331_v47 = vld [vmem:[#allocation5 + $0x558] sm:$0xff] }
 0x1dd   :  { %3077 = vmatpush1.bf16.msra.mxu1 %v5911_v53  ;;  %v6181_v53 = vcombine.low %v538_v38, %v542_v39  ;;  %v6659_v39 = vld [vmem:[#allocation8] ss:$16 sps:$4 sm:$0xff]  }
 0x1de   :  { %3078 = vmatprep.subr.bf16.mxu1 %v5920_v55  ;;  %v554_v55 = vlaneseq }
 0x1df   :  { %2985 = vmatpush1.bf16.msra.mxu0 %v6125_v54  ;;  %v5976_v54 = vcombine.high %v331_v47, %v335_v48 }
 0x1e0   :  { %2986 = vmatprep.subr.bf16.mxu0 %v6134_v56  ;;  %v339_v56 = vld [vmem:[#allocation5 + $0x598] sm:$0xff] }
 0x1e1   :  { %3079 = vmatpush1.bf16.msra.mxu1 %v5919_v63  ;;  %v5975_v63 = vcombine.low %v331_v47, %v335_v48  ;;  %v5983_v6 = vcombine.low %v339_v56, %v343_v58 }
 0x1e2   :  { %3080 = vmatprep.subr.bf16.mxu1 %v5928_v1  ;;  %v6189_v1 = vcombine.low %v546_v49, %v550_v50  ;;  %v6662_v49 = vld [vmem:[#allocation8 + $0x20] ss:$16 sps:$4 sm:$0xff]  }
 0x1e3   :  { %2987 = vmatpush1.bf16.msra.mxu0 %v6133_v0  ;;  %v5984_v0 = vcombine.high %v339_v56, %v343_v58 }
 0x1e4   :  { %2988 = vmatprep.subr.bf16.mxu0 %v6142_v2  ;;  %v7609_v2 = vshrl.u32 %v554_v55, 7  ;;  %v399_v55 = vld [vmem:[#allocation5 + $0x778] sm:$0xff] }
 0x1e5   :  { %3081 = vmatpush1.bf16.msra.mxu1 %v5927_v7  ;;  %v5992_v7 = vcombine.high %v347_v3, %v351_v4  ;;  %v6673_v4 = vld [vmem:[#allocation8 + $0x84] ss:$16 sps:$4 sm:$0xff]  }
 0x1e6   :  { %3091 = vmatprep.subr.bf16.mxu1 %v5936_v9  ;;  %v355_v9 = vld [vmem:[#allocation5 + $0x618] sm:$0xff]  ;;  %v7619_v12 = vsub.s32 1, %v7609_v2 }
 0x1e7   :  { %2989 = vmatpush1.bf16.msra.mxu0 %v6141_v8  ;;  %v7613_v8 = vsub.s32 0, %v7609_v2 }
 0x1e8   :  { %2990 = vmatprep.subr.bf16.mxu0 %v6150_v10  ;;  %3083 = vmatmul.mubr.bf16.vlgmr.msra.gmra.mrb[8].mxu1 %v7571_v16  ;;  %v6165_v16 = vcombine.low %v522_v22, %v526_v23  ;;  %v359_v10 = vld [vmem:[#allocation5 + $0x638] sm:$0xff] }
 0x1e9   :  { %3092 = vmatpush1.bf16.msra.mxu1 %v5935_v15  ;;  %3123 = vmatprep.mubr.bf16.mxu1 %v7567_v61  ;;  %v327_v61 = vld [vmem:[#allocation5 + $0x538] sm:$0xff]  ;;  %v6000_v14 = vcombine.high %v355_v9, %v359_v10  ;;  %v557_v15 = vrot.slane %v7616_v11, %v7613_v8  ;;  %v5999_v19 = vcombine.low %v355_v9, %v359_v10 }
 0x1ea   :  { %3093 = vmatprep.subr.bf16.mxu1 %v5944_v17  ;;  %v5968_v44 = vcombine.high %v323_v37, %v327_v61  ;;  %v5967_v51 = vcombine.low %v323_v37, %v327_v61  ;;  %v367_v17 = vld [vmem:[#allocation5 + $0x678] sm:$0xff] }
 0x1eb   :  { %2991 = vmatpush1.bf16.msra.mxu0 %v6149_v57  ;;  %v363_v57 = vld [vmem:[#allocation5 + $0x658] sm:$0xff]  ;;  %v2593_v23 = vadd.f32 %v7601_v41, %v557_v15 }
 0x1ec   :  { %2992 = vmatprep.subr.bf16.mxu0 %v6158_v18  ;;  %v561_v18 = vrot.slane %v7616_v11, %v7619_v12  ;;  %v6008_v22 = vcombine.high %v363_v57, %v367_v17  ;;  %v6007_v32 = vcombine.low %v363_v57, %v367_v17  ;;  %v383_v37 = vld [vmem:[#allocation5 + $0x6f8] sm:$0xff] }
 0x1ed   :  { %3094 = vmatpush1.bf16.msra.mxu1 %v5943_v24  ;;  %v6661_v24 = vld [vmem:[#allocation8 + $0x4] ss:$16 sps:$4 sm:$0xff]   ;;  %v6671_v9 = vld [vmem:[#allocation8 + $0x80] ss:$16 sps:$4 sm:$0xff]  }
 0x1ee   :  { %3095 = vmatprep.subr.bf16.mxu1 %v5952_v26  ;;  %v375_v26 = vld [vmem:[#allocation5 + $0x6b8] sm:$0xff] }
 0x1ef   :  { %2993 = vmatpush1.bf16.msra.mxu0 %v6157_v25  ;;  %v371_v25 = vld [vmem:[#allocation5 + $0x698] sm:$0xff] }
 0x1f0   :  { %2994 = vmatprep.subr.bf16.mxu0 %v6166_v27  ;;  %v2595_v27 = vadd.f32 %v7603_v46, %v561_v18  ;;  %v379_v46 = vld [vmem:[#allocation5 + $0x6d8] sm:$0xff]  ;;  %v6015_v61 = vcombine.low %v371_v25, %v375_v26 }
 0x1f1   :  { %3096 = vmatpush1.bf16.msra.mxu1 %v5951_v34  ;;  %v423_v15 = vld [vmem:[#allocation5 + $0x838] sm:$0xff] }
 0x1f2   :  { %3097 = vmatprep.subr.bf16.mxu1 %v5960_v35  ;;  %v6016_v35 = vcombine.high %v371_v25, %v375_v26  ;;  %v6674_v17 = vld [vmem:[#allocation8 + $0xa0] ss:$16 sps:$4 sm:$0xff]   ;;  %v6682_v26 = vld [vmem:[#allocation8 + $0xe4] ss:$16 sps:$4 sm:$0xff]  }
 0x1f3   :  { %2995 = vmatpush1.bf16.msra.mxu0 %v6165_v16 }
 0x1f4   :  { %2996 = vmatprep.subr.bf16.mxu0 %v6174_v36 }
 0x1f5   :  { %3098 = vmatpush1.bf16.msra.mxu1 %v5959_v40  ;;  %v6664_v40 = vld [vmem:[#allocation8 + $0x24] ss:$16 sps:$4 sm:$0xff]  }
 0x1f6   :  { %3099 = vmatprep.subr.bf16.mxu1 %v5968_v44  ;;  %v387_v44 = vld [vmem:[#allocation5 + $0x718] sm:$0xff] }
 0x1f7   :  { %2997 = vmatpush1.bf16.msra.mxu0 %v6173_v43  ;;  %v6024_v43 = vcombine.high %v379_v46, %v383_v37 }
 0x1f8   :  { %2998 = vmatprep.subr.bf16.mxu0 %v6182_v45  ;;  %v391_v45 = vld [vmem:[#allocation5 + $0x738] sm:$0xff] }
 0x1f9   :  { %3100 = vmatpush1.bf16.msra.mxu1 %v5967_v51  ;;  %v6032_v50 = vcombine.high %v387_v44, %v391_v45  ;;  %v6031_v58 = vcombine.low %v387_v44, %v391_v45  ;;  %v6691_v44 = vld [vmem:[#allocation8 + $0x144] ss:$16 sps:$4 sm:$0xff]  }
 0x1fa   :  { %3101 = vmatprep.subr.bf16.mxu1 %v5976_v54  ;;  %v395_v54 = vld [vmem:[#allocation5 + $0x758] sm:$0xff] }
 0x1fb   :  { %2999 = vmatpush1.bf16.msra.mxu0 %v6181_v53  ;;  %v6667_v53 = vld [vmem:[#allocation8 + $0x44] ss:$16 sps:$4 sm:$0xff]  }
 0x1fc   :  { %3009 = vmatprep.subr.bf16.mxu0 %v6190_v59  ;;  %v6040_v59 = vcombine.high %v395_v54, %v399_v55  ;;  %v459_v45 = vld [vmem:[#allocation5 + $0x958] sm:$0xff] }
 0x1fd   :  { %3102 = vmatpush1.bf16.msra.mxu1 %v5975_v63  ;;  %v407_v63 = vld [vmem:[#allocation5 + $0x7b8] sm:$0xff] }
 0x1fe   :  { %3001 = vmatmul.mubr.bf16.vlgmr.msra.gmra.mrb[8].mxu0 %v7581_v33  ;;  %3103 = vmatprep.subr.bf16.mxu1 %v5984_v0  ;;  %v6039_v0 = vcombine.low %v395_v54, %v399_v55  ;;  %v6048_v3 = vcombine.high %v403_v62, %v407_v63  ;;  %v467_v54 = vld [vmem:[#allocation5 + $0x998] sm:$0xff] }
 0x1ff   :  { %3010 = vmatpush1.bf16.msra.mxu0 %v6189_v1  ;;  %3041 = vmatprep.mubr.bf16.mxu0 %v7405_v42  ;;  %v6668_v1 = vld [vmem:[#allocation8 + $0x60] ss:$16 sps:$4 sm:$0xff]  }
 0x200   :  { %3173 = vmatprep.subr.bf16.mxu0 %v6192_v5  ;;  %v411_v5 = vld [vmem:[#allocation5 + $0x7d8] sm:$0xff] }
 0x201   :  { %3104 = vmatpush1.bf16.msra.mxu1 %v5983_v6  ;;  %v415_v6 = vld [vmem:[#allocation5 + $0x7f8] sm:$0xff] }
 0x202   :  { %3105 = vmatprep.subr.bf16.mxu1 %v5992_v7  ;;  %v6047_v7 = vcombine.low %v403_v62, %v407_v63  ;;  %v6056_v10 = vcombine.high %v411_v5, %v415_v6  ;;  %v6055_v57 = vcombine.low %v411_v5, %v415_v6  ;;  %v471_v55 = vld [vmem:[#allocation5 + $0x9b8] sm:$0xff] }
 0x203   :  { %v479_v62 = vld [vmem:[#allocation5 + $0x9f8] sm:$0xff]  ;;  %v6111_v63 = vcombine.low %v467_v54, %v471_v55 }
 0x204   :  { %v487_v5 = vld [vmem:[#allocation5 + $0xa38] sm:$0xff] }
 0x205   :  { %3106 = vmatpush1.bf16.msra.mxu1 %v5991_v13  ;;  %v6676_v13 = vld [vmem:[#allocation8 + $0xa4] ss:$16 sps:$4 sm:$0xff]  }
 0x206   :  { %3107 = vmatprep.subr.bf16.mxu1 %v6000_v14  ;;  %v419_v14 = vld [vmem:[#allocation5 + $0x818] sm:$0xff] }
 0x207   :  { %v6064_v18 = vcombine.high %v419_v14, %v423_v15 }
 0x209   :  { %v2715_v28 = vpop.f32.mrb[0].mxu0  ;;  %3108 = vmatpush1.bf16.msra.mxu1 %v5999_v19  ;;  %v6679_v19 = vld [vmem:[#allocation8 + $0xc4] ss:$16 sps:$4 sm:$0xff]  }
 0x20a   :  { %v7627_v30 = vadd.f32 %v2715_v28, %v2593_v23  ;;  %6195 = vmatmul.mubr.msk.bf16.vlgmr.msra.gmra.mrb[8].mxu0 %vm2554_vm0, %v7587_v52  ;;  %v2717_v31 = vpop.f32.mrb[1].mxu0  ;;  %3109 = vmatprep.subr.bf16.mxu1 %v6008_v22  ;;  %v431_v22 = vld [vmem:[#allocation5 + $0x878] sm:$0xff]  ;;  %v6063_v23 = vcombine.low %v419_v14, %v423_v15 }
 0x20b   :  { %v6559_v34 = vadd.f32 %v2717_v31, %v2595_v27  ;;  %v2719_v16 = vpop.f32.mrb[2].mxu0  ;;  %3174 = vmatpush1.bf16.msra.mxu0 %v6191_v20  ;;  %3205 = vmatprep.mubr.bf16.mxu0 %v7405_v42  ;;  %v6023_v42 = vcombine.low %v379_v46, %v383_v37  ;;  %v427_v20 = vld [vmem:[#allocation5 + $0x858] sm:$0xff] }
 0x20c   :  { %v2720_v41 = vpop.f32.mrb[3].mxu0  ;;  %4788 = vmatprep.subr.bf16.mxu0 %v6661_v24  ;;  %v6677_v24 = vld [vmem:[#allocation8 + $0xc0] ss:$16 sps:$4 sm:$0xff]   ;;  %v6072_v25 = vcombine.high %v427_v20, %v431_v22  ;;  %v6071_v31 = vcombine.low %v427_v20, %v431_v22  ;;  %v6685_v16 = vld [vmem:[#allocation8 + $0x104] ss:$16 sps:$4 sm:$0xff]  }
 0x20d   :  { %v3215_v36 = vmax.f32 %v6559_v34, 0.0  ;;  %3110 = vmatpush1.bf16.msra.mxu1 %v6007_v32  ;;  %v435_v27 = vld [vmem:[#allocation5 + $0x898] sm:$0xff] }
 0x20e   :  { %3111 = vmatprep.subr.bf16.mxu1 %v6016_v35  ;;  %v439_v28 = vld [vmem:[#allocation5 + $0x8b8] sm:$0xff] }
 0x20f   :  { %v7632_v38 = vpack.c.bf16 %v3215_v36, %v3215_v36  ;;  %v6680_v32 = vld [vmem:[#allocation8 + $0xe0] ss:$16 sps:$4 sm:$0xff]   ;;  %v6080_v34 = vcombine.high %v435_v27, %v439_v28  ;;  %v6079_v36 = vcombine.low %v435_v27, %v439_v28 }
 0x210   :  { %v443_v35 = vld [vmem:[#allocation5 + $0x8d8] sm:$0xff] }
 0x211   :  { %v7634_v47 = vpop.f32.mrb[4].mxu0  ;;  %3112 = vmatpush1.bf16.msra.mxu1 %v6015_v61  ;;  %v447_v41 = vld [vmem:[#allocation5 + $0x8f8] sm:$0xff] }
 0x212   :  { %6196 = vmatmul.mubr.msk.bf16.vlgmr.msra.gmra.mrb[12].mxu0 %vm2554_vm0, %v7587_v52  ;;  %v7638_v48 = vpop.f32.mrb[5].mxu0  ;;  %3113 = vmatprep.subr.bf16.mxu1 %v6024_v43  ;;  %v6665_v52 = vld [vmem:[#allocation8 + $0x40] ss:$16 sps:$4 sm:$0xff]   ;;  %v6088_v37 = vcombine.high %v443_v35, %v447_v41 }
 0x213   :  { %4789 = vmatpush1.bf16.msra.mxu0 %v6659_v39  ;;  %4820 = vmatprep.mubr.bf16.mxu0 %v7632_v38  ;;  %v2883_v51 = vpop.f32.mrb[6].mxu0  ;;  %v6683_v46 = vld [vmem:[#allocation8 + $0x100] ss:$16 sps:$4 sm:$0xff]  }
 0x214   :  { %4790 = vmatprep.subr.bf16.mxu0 %v6664_v40  ;;  %v2884_v56 = vpop.f32.mrb[7].mxu0  ;;  %v451_v61 = vld [vmem:[#allocation5 + $0x918] sm:$0xff] }
 0x215   :  { %3114 = vmatpush1.bf16.msra.mxu1 %v6023_v42  ;;  %v455_v39 = vld [vmem:[#allocation5 + $0x938] sm:$0xff] }
 0x216   :  { %3115 = vmatprep.subr.bf16.mxu1 %v6032_v50  ;;  %v6686_v40 = vld [vmem:[#allocation8 + $0x120] ss:$16 sps:$4 sm:$0xff]   ;;  %v6096_v43 = vcombine.high %v451_v61, %v455_v39 }
 0x217   :  { %4791 = vmatpush1.bf16.msra.mxu0 %v6662_v49  ;;  %v463_v42 = vld [vmem:[#allocation5 + $0x978] sm:$0xff]  ;;  %v6095_v49 = vcombine.low %v451_v61, %v455_v39 }
 0x218   :  { %4792 = vmatprep.subr.bf16.mxu0 %v6667_v53  ;;  %v6689_v50 = vld [vmem:[#allocation8 + $0x140] ss:$16 sps:$4 sm:$0xff]   ;;  %v6104_v51 = vcombine.high %v459_v45, %v463_v42  ;;  %v6694_v53 = vld [vmem:[#allocation8 + $0x164] ss:$16 sps:$4 sm:$0xff]   ;;  %v6103_v56 = vcombine.low %v459_v45, %v463_v42 }
 0x219   :  { %3116 = vmatpush1.bf16.msra.mxu1 %v6031_v58  ;;  %v6692_v58 = vld [vmem:[#allocation8 + $0x160] ss:$16 sps:$4 sm:$0xff]  }
 0x21a   :  { %3117 = vmatprep.subr.bf16.mxu1 %v6040_v59  ;;  %v6697_v59 = vld [vmem:[#allocation8 + $0x184] ss:$16 sps:$4 sm:$0xff]  }
 0x21b   :  { %4793 = vmatpush1.bf16.msra.mxu0 %v6665_v52  ;;  %v6112_v52 = vcombine.high %v467_v54, %v471_v55  ;;  %v495_v14 = vld [vmem:[#allocation5 + $0xa78] sm:$0xff] }
 0x21c   :  { %4794 = vmatprep.subr.bf16.mxu0 %v6670_v60  ;;  %v475_v60 = vld [vmem:[#allocation5 + $0x9d8] sm:$0xff] }
 0x21d   :  { %3118 = vmatpush1.bf16.msra.mxu1 %v6039_v0  ;;  %v6695_v0 = vld [vmem:[#allocation8 + $0x180] ss:$16 sps:$4 sm:$0xff]   ;;  %v6119_v6 = vcombine.low %v475_v60, %v479_v62 }
 0x21e   :  { %3119 = vmatprep.subr.bf16.mxu1 %v6048_v3  ;;  %v6700_v3 = vld [vmem:[#allocation8 + $0x1a4] ss:$16 sps:$4 sm:$0xff]  }
 0x21f   :  { %4795 = vmatpush1.bf16.msra.mxu0 %v6668_v1  ;;  %v6120_v1 = vcombine.high %v475_v60, %v479_v62  ;;  %v503_v20 = vld [vmem:[#allocation5 + $0xab8] sm:$0xff] }
 0x220   :  { %4796 = vmatprep.subr.bf16.mxu0 %v6673_v4  ;;  %v483_v4 = vld [vmem:[#allocation5 + $0xa18] sm:$0xff] }
 0x221   :  { %3120 = vmatpush1.bf16.msra.mxu1 %v6047_v7  ;;  %v6698_v7 = vld [vmem:[#allocation8 + $0x1a0] ss:$16 sps:$4 sm:$0xff]   ;;  %v6127_v15 = vcombine.low %v483_v4, %v487_v5 }
 0x222   :  { %3121 = vmatprep.subr.bf16.mxu1 %v6056_v10  ;;  %v6703_v10 = vld [vmem:[#allocation8 + $0x1c4] ss:$16 sps:$4 sm:$0xff]   ;;  %v6722_v62 = vld [vmem:[#allocation8 + $0x2a0] ss:$16 sps:$4 sm:$0xff]  }
 0x223   :  { %4797 = vmatpush1.bf16.msra.mxu0 %v6671_v9  ;;  %v6128_v9 = vcombine.high %v483_v4, %v487_v5  ;;  %v507_v27 = vld [vmem:[#allocation5 + $0xad8] sm:$0xff]  ;;  %v6736_v4 = vld [vmem:[#allocation8 + $0x2c] ss:$16 sps:$4 sm:$0xff]  }
 0x224   :  { %4798 = vmatprep.subr.bf16.mxu0 %v6676_v13  ;;  %v491_v13 = vld [vmem:[#allocation5 + $0xa58] sm:$0xff] }
 0x225   :  { %3122 = vmatpush1.bf16.msra.mxu1 %v6055_v57  ;;  %v6701_v57 = vld [vmem:[#allocation8 + $0x1c0] ss:$16 sps:$4 sm:$0xff]   ;;  %v6135_v22 = vcombine.low %v491_v13, %v495_v14  ;;  %v6733_v5 = vld [vmem:[#allocation8 + $0x2e4] ss:$16 sps:$4 sm:$0xff]  }
 0x226   :  { %3132 = vmatprep.subr.bf16.mxu1 %v6064_v18  ;;  %v6706_v18 = vld [vmem:[#allocation8 + $0x1e4] ss:$16 sps:$4 sm:$0xff]  }
 0x227   :  { %4799 = vmatpush1.bf16.msra.mxu0 %v6674_v17  ;;  %v6136_v17 = vcombine.high %v491_v13, %v495_v14  ;;  %v511_v28 = vld [vmem:[#allocation5 + $0xaf8] sm:$0xff]  ;;  %v6740_v13 = vld [vmem:[#allocation8 + $0x48] ss:$16 sps:$4 sm:$0xff]  }
 0x228   :  { %4800 = vmatprep.subr.bf16.mxu0 %v6679_v19  ;;  %3124 = vmatmul.mubr.bf16.vlgmr.msra.gmra.mrb[8].mxu1 %v7573_v21  ;;  %v6688_v21 = vld [vmem:[#allocation8 + $0x124] ss:$16 sps:$4 sm:$0xff]   ;;  %v6737_v14 = vld [vmem:[#allocation8 + $0x300] ss:$16 sps:$4 sm:$0xff]  }
 0x229   :  { %3133 = vmatpush1.bf16.msra.mxu1 %v6063_v23  ;;  %3164 = vmatprep.mubr.bf16.mxu1 %v7575_v29  ;;  %v6087_v29 = vcombine.low %v443_v35, %v447_v41  ;;  %v499_v19 = vld [vmem:[#allocation5 + $0xa98] sm:$0xff] }
 0x22a   :  { %3134 = vmatprep.subr.bf16.mxu1 %v6072_v25  ;;  %v6704_v23 = vld [vmem:[#allocation8 + $0x1e0] ss:$16 sps:$4 sm:$0xff]   ;;  %v3214_v25 = vmax.f32 %v7627_v30, 0.0  ;;  %v6712_v35 = vld [vmem:[#allocation8 + $0x224] ss:$16 sps:$4 sm:$0xff]   ;;  %v6151_v30 = vcombine.low %v507_v27, %v511_v28 }
 0x22b   :  { %4801 = vmatpush1.bf16.msra.mxu0 %v6677_v24  ;;  %v6144_v24 = vcombine.high %v499_v19, %v503_v20  ;;  %v515_v41 = vld [vmem:[#allocation5 + $0xb18] sm:$0xff] }
 0x22c   :  { %4802 = vmatprep.subr.bf16.mxu0 %v6682_v26  ;;  %v6709_v26 = vld [vmem:[#allocation8 + $0x204] ss:$16 sps:$4 sm:$0xff]  }
 0x22d   :  { %3135 = vmatpush1.bf16.msra.mxu1 %v6071_v31  ;;  %v6143_v31 = vcombine.low %v499_v19, %v503_v20  ;;  %v523_v61 = vld [vmem:[#allocation5 + $0xb58] sm:$0xff]  ;;  %v564_v19 = vsub.s32 2, %v7609_v2  ;;  %v6752_v20 = vld [vmem:[#allocation8 + $0x88] ss:$16 sps:$4 sm:$0xff]  }
 0x22e   :  { %3136 = vmatprep.subr.bf16.mxu1 %v6080_v34  ;;  %v6152_v34 = vcombine.high %v507_v27, %v511_v28  ;;  %v527_v39 = vld [vmem:[#allocation5 + $0xb78] sm:$0xff]  ;;  %v6758_v28 = vld [vmem:[#allocation8 + $0xa8] ss:$16 sps:$4 sm:$0xff]  }
 0x22f   :  { %4803 = vmatpush1.bf16.msra.mxu0 %v6680_v32  ;;  %v6707_v32 = vld [vmem:[#allocation8 + $0x200] ss:$16 sps:$4 sm:$0xff]  }
 0x230   :  { %4804 = vmatprep.subr.bf16.mxu0 %v6685_v16  ;;  %v7644_v16 = vpack.c.bf16 %v3214_v25, %v3214_v25  ;;  %v531_v45 = vld [vmem:[#allocation5 + $0xb98] sm:$0xff] }
 0x231   :  { %3137 = vmatpush1.bf16.msra.mxu1 %v6079_v36  ;;  %v519_v36 = vld [vmem:[#allocation5 + $0xb38] sm:$0xff] }
 0x232   :  { %3138 = vmatprep.subr.bf16.mxu1 %v6088_v37  ;;  %v6160_v37 = vcombine.high %v515_v41, %v519_v36  ;;  %v535_v42 = vld [vmem:[#allocation5 + $0xbb8] sm:$0xff] }
 0x233   :  { %4805 = vmatpush1.bf16.msra.mxu0 %v6683_v46  ;;  %v6710_v46 = vld [vmem:[#allocation8 + $0x220] ss:$16 sps:$4 sm:$0xff]   ;;  %v6757_v25 = vld [vmem:[#allocation8 + $0x364] ss:$16 sps:$4 sm:$0xff]  }
 0x234   :  { %4806 = vmatprep.subr.bf16.mxu0 %v6688_v21  ;;  %v6715_v21 = vld [vmem:[#allocation8 + $0x244] ss:$16 sps:$4 sm:$0xff]  }
 0x235   :  { %3139 = vmatpush1.bf16.msra.mxu1 %v6087_v29  ;;  %v6159_v29 = vcombine.low %v515_v41, %v519_v36  ;;  %v539_v54 = vld [vmem:[#allocation5 + $0xbd8] sm:$0xff] }
 0x236   :  { %3140 = vmatprep.subr.bf16.mxu1 %v6096_v43  ;;  %v6168_v43 = vcombine.high %v523_v61, %v527_v39  ;;  %v543_v55 = vld [vmem:[#allocation5 + $0xbf8] sm:$0xff] }
 0x237   :  { %4807 = vmatpush1.bf16.msra.mxu0 %v6686_v40  ;;  %v6713_v40 = vld [vmem:[#allocation8 + $0x240] ss:$16 sps:$4 sm:$0xff]   ;;  %v6183_v60 = vcombine.low %v539_v54, %v543_v55 }
 0x238   :  { %4808 = vmatprep.subr.bf16.mxu0 %v6691_v44  ;;  %v6718_v44 = vld [vmem:[#allocation8 + $0x264] ss:$16 sps:$4 sm:$0xff]  }
 0x239   :  { %3141 = vmatpush1.bf16.msra.mxu1 %v6095_v49  ;;  %v6167_v49 = vcombine.low %v523_v61, %v527_v39  ;;  %v6761_v39 = vld [vmem:[#allocation8 + $0x380] ss:$16 sps:$4 sm:$0xff]  }
 0x23a   :  { %3142 = vmatprep.subr.bf16.mxu1 %v6104_v51  ;;  %v6176_v51 = vcombine.high %v531_v45, %v535_v42 }
 0x23b   :  { %4809 = vmatpush1.bf16.msra.mxu0 %v6689_v50  ;;  %v6716_v50 = vld [vmem:[#allocation8 + $0x260] ss:$16 sps:$4 sm:$0xff]  }
 0x23c   :  { %4810 = vmatprep.subr.bf16.mxu0 %v6694_v53  ;;  %v6721_v53 = vld [vmem:[#allocation8 + $0x284] ss:$16 sps:$4 sm:$0xff]  }
 0x23d   :  { %3143 = vmatpush1.bf16.msra.mxu1 %v6103_v56  ;;  %v6175_v56 = vcombine.low %v531_v45, %v535_v42  ;;  %v6770_v45 = vld [vmem:[#allocation8 + $0xe8] ss:$16 sps:$4 sm:$0xff]   ;;  %v6767_v42 = vld [vmem:[#allocation8 + $0x3a0] ss:$16 sps:$4 sm:$0xff]  }
 0x23e   :  { %3144 = vmatprep.subr.bf16.mxu1 %v6112_v52  ;;  %v6184_v52 = vcombine.high %v539_v54, %v543_v55  ;;  %v6781_v54 = vld [vmem:[#allocation8 + $0x3e4] ss:$16 sps:$4 sm:$0xff]   ;;  %v6782_v55 = vld [vmem:[#allocation8 + $0x128] ss:$16 sps:$4 sm:$0xff]  }
 0x23f   :  { %4811 = vmatpush1.bf16.msra.mxu0 %v6692_v58  ;;  %v6719_v58 = vld [vmem:[#allocation8 + $0x280] ss:$16 sps:$4 sm:$0xff]  }
 0x240   :  { %4812 = vmatprep.subr.bf16.mxu0 %v6697_v59  ;;  %v6724_v59 = vld [vmem:[#allocation8 + $0x2a4] ss:$16 sps:$4 sm:$0xff]  }
 0x241   :  { %3145 = vmatpush1.bf16.msra.mxu1 %v6111_v63  ;;  %v6730_v63 = vld [vmem:[#allocation8 + $0xc] ss:$16 sps:$4 sm:$0xff]  }
 0x242   :  { %3146 = vmatprep.subr.bf16.mxu1 %v6120_v1  ;;  %v6728_v1 = vld [vmem:[#allocation8 + $0x8] ss:$16 sps:$4 sm:$0xff]  }
 0x243   :  { %4813 = vmatpush1.bf16.msra.mxu0 %v6695_v0  ;;  %v6727_v0 = vld [vmem:[#allocation8 + $0x2c4] ss:$16 sps:$4 sm:$0xff]  }
 0x244   :  { %4814 = vmatprep.subr.bf16.mxu0 %v6700_v3  ;;  %v6725_v3 = vld [vmem:[#allocation8 + $0x2c0] ss:$16 sps:$4 sm:$0xff]  }
 0x245   :  { %3147 = vmatpush1.bf16.msra.mxu1 %v6119_v6  ;;  %v6734_v6 = vld [vmem:[#allocation8 + $0x28] ss:$16 sps:$4 sm:$0xff]  }
 0x246   :  { %3148 = vmatprep.subr.bf16.mxu1 %v6128_v9  ;;  %v6742_v9 = vld [vmem:[#allocation8 + $0x4c] ss:$16 sps:$4 sm:$0xff]  }
 0x247   :  { %4815 = vmatpush1.bf16.msra.mxu0 %v6698_v7  ;;  %v6731_v7 = vld [vmem:[#allocation8 + $0x2e0] ss:$16 sps:$4 sm:$0xff]  }
 0x248   :  { %4816 = vmatprep.subr.bf16.mxu0 %v6703_v10  ;;  %v6739_v10 = vld [vmem:[#allocation8 + $0x304] ss:$16 sps:$4 sm:$0xff]  }
 0x249   :  { %3149 = vmatpush1.bf16.msra.mxu1 %v6127_v15  ;;  %v6748_v15 = vld [vmem:[#allocation8 + $0x6c] ss:$16 sps:$4 sm:$0xff]  }
 0x24a   :  { %3150 = vmatprep.subr.bf16.mxu1 %v6136_v17  ;;  %v6743_v17 = vld [vmem:[#allocation8 + $0x320] ss:$16 sps:$4 sm:$0xff]  }
 0x24b   :  { %4817 = vmatpush1.bf16.msra.mxu0 %v6701_v57  ;;  %v6745_v57 = vld [vmem:[#allocation8 + $0x324] ss:$16 sps:$4 sm:$0xff]  }
 0x24c   :  { %4818 = vmatprep.subr.bf16.mxu0 %v6706_v18  ;;  %v6751_v18 = vld [vmem:[#allocation8 + $0x344] ss:$16 sps:$4 sm:$0xff]  }
 0x24d   :  { %3151 = vmatpush1.bf16.msra.mxu1 %v6135_v22  ;;  %v568_v22 = vsub.s32 3, %v7609_v2 }
 0x24e   :  { %3152 = vmatprep.subr.bf16.mxu1 %v6144_v24  ;;  %v6760_v24 = vld [vmem:[#allocation8 + $0xac] ss:$16 sps:$4 sm:$0xff]  }
 0x24f   :  { %4819 = vmatpush1.bf16.msra.mxu0 %v6704_v23  ;;  %v6749_v23 = vld [vmem:[#allocation8 + $0x340] ss:$16 sps:$4 sm:$0xff]   ;;  %v569_v27 = vrot.slane %v7616_v11, %v568_v22 }
 0x250   :  { %4829 = vmatprep.subr.bf16.mxu0 %v6709_v26  ;;  %v565_v26 = vrot.slane %v7616_v11, %v564_v19 }
 0x251   :  { %3153 = vmatpush1.bf16.msra.mxu1 %v6143_v31  ;;  %v6755_v31 = vld [vmem:[#allocation8 + $0x360] ss:$16 sps:$4 sm:$0xff]  }
 0x252   :  { %4821 = vmatmul.mubr.bf16.vlgmr.msra.gmra.mrb[16].mxu0 %v7644_v16  ;;  %3154 = vmatprep.subr.bf16.mxu1 %v6152_v34 }
 0x253   :  { %4830 = vmatpush1.bf16.msra.mxu0 %v6707_v32  ;;  %v6766_v32 = vld [vmem:[#allocation8 + $0xcc] ss:$16 sps:$4 sm:$0xff]  }
 0x254   :  { %4831 = vmatprep.subr.bf16.mxu0 %v6712_v35  ;;  %v6763_v35 = vld [vmem:[#allocation8 + $0x384] ss:$16 sps:$4 sm:$0xff]  }
 0x255   :  { %3155 = vmatpush1.bf16.msra.mxu1 %v6151_v30 }
 0x256   :  { %3156 = vmatprep.subr.bf16.mxu1 %v6160_v37  ;;  %v6764_v37 = vld [vmem:[#allocation8 + $0xc8] ss:$16 sps:$4 sm:$0xff]  }
 0x257   :  { %4832 = vmatpush1.bf16.msra.mxu0 %v6710_v46 }
 0x258   :  { %4833 = vmatprep.subr.bf16.mxu0 %v6715_v21 }
 0x259   :  { %3157 = vmatpush1.bf16.msra.mxu1 %v6159_v29  ;;  %v6772_v29 = vld [vmem:[#allocation8 + $0xec] ss:$16 sps:$4 sm:$0xff]  }
 0x25a   :  { %3158 = vmatprep.subr.bf16.mxu1 %v6168_v43  ;;  %v6769_v43 = vld [vmem:[#allocation8 + $0x3a4] ss:$16 sps:$4 sm:$0xff]  }
 0x25b   :  { %4834 = vmatpush1.bf16.msra.mxu0 %v6713_v40 }
 0x25c   :  { %4835 = vmatprep.subr.bf16.mxu0 %v6718_v44 }
 0x25d   :  { %3159 = vmatpush1.bf16.msra.mxu1 %v6167_v49  ;;  %v6778_v49 = vld [vmem:[#allocation8 + $0x10c] ss:$16 sps:$4 sm:$0xff]  }
 0x25e   :  { %3160 = vmatprep.subr.bf16.mxu1 %v6176_v51  ;;  %v6776_v51 = vld [vmem:[#allocation8 + $0x108] ss:$16 sps:$4 sm:$0xff]  }
 0x25f   :  { %4836 = vmatpush1.bf16.msra.mxu0 %v6716_v50 }
 0x260   :  { %4837 = vmatprep.subr.bf16.mxu0 %v6721_v53  ;;  %v6773_v53 = vld [vmem:[#allocation8 + $0x3c0] ss:$16 sps:$4 sm:$0xff]  }
 0x261   :  { %3161 = vmatpush1.bf16.msra.mxu1 %v6175_v56  ;;  %v6779_v56 = vld [vmem:[#allocation8 + $0x3e0] ss:$16 sps:$4 sm:$0xff]  }
 0x262   :  { %3162 = vmatprep.subr.bf16.mxu1 %v6184_v52 }
 0x263   :  { %4838 = vmatpush1.bf16.msra.mxu0 %v6719_v58  ;;  %v6787_v58 = vld [vmem:[#allocation8 + $0x14c] ss:$16 sps:$4 sm:$0xff]  }
 0x264   :  { %4839 = vmatprep.subr.bf16.mxu0 %v6724_v59  ;;  %v6802_v59 = vld [vmem:[#allocation8 + $0x404] ss:$16 sps:$4 sm:$0xff]  }
 0x265   :  { %3163 = vmatpush1.bf16.msra.mxu1 %v6183_v60  ;;  %v6785_v60 = vld [vmem:[#allocation8 + $0x148] ss:$16 sps:$4 sm:$0xff]  }
 0x266   :  { %4952 = vmatprep.subr.bf16.mxu1 %v6730_v63  ;;  %v6800_v63 = vld [vmem:[#allocation8 + $0x400] ss:$16 sps:$4 sm:$0xff]  }
 0x267   :  { %4840 = vmatpush1.bf16.msra.mxu0 %v6722_v62  ;;  %v6790_v62 = vld [vmem:[#allocation8 + $0x16c] ss:$16 sps:$4 sm:$0xff]  }
 0x268   :  { %4841 = vmatprep.subr.bf16.mxu0 %v6727_v0  ;;  %3165 = vmatmul.mubr.bf16.vlgmr.msra.gmra.mrb[8].mxu1 %v7581_v33  ;;  %v6746_v33 = vld [vmem:[#allocation8 + $0x68] ss:$16 sps:$4 sm:$0xff]  }
 0x269   :  { %4953 = vmatpush1.bf16.msra.mxu1 %v6728_v1  ;;  %4984 = vmatprep.mubr.bf16.mxu1 %v7632_v38  ;;  %v6754_v38 = vld [vmem:[#allocation8 + $0x8c] ss:$16 sps:$4 sm:$0xff]   ;;  %v6808_v1 = vld [vmem:[#allocation8 + $0x424] ss:$16 sps:$4 sm:$0xff]  }
 0x26a   :  { %4954 = vmatprep.subr.bf16.mxu1 %v6736_v4  ;;  %v6793_v4 = vld [vmem:[#allocation8 + $0x18c] ss:$16 sps:$4 sm:$0xff]  }
 0x26b   :  { %4842 = vmatpush1.bf16.msra.mxu0 %v6725_v3  ;;  %v6788_v3 = vld [vmem:[#allocation8 + $0x168] ss:$16 sps:$4 sm:$0xff]  }
 0x26c   :  { %4843 = vmatprep.subr.bf16.mxu0 %v6733_v5  ;;  %v6806_v5 = vld [vmem:[#allocation8 + $0x420] ss:$16 sps:$4 sm:$0xff]  }
 0x26d   :  { %4955 = vmatpush1.bf16.msra.mxu1 %v6734_v6  ;;  %v6814_v6 = vld [vmem:[#allocation8 + $0x444] ss:$16 sps:$4 sm:$0xff]  }
 0x26e   :  { %4956 = vmatprep.subr.bf16.mxu1 %v6742_v9  ;;  %v6796_v9 = vld [vmem:[#allocation8 + $0x1ac] ss:$16 sps:$4 sm:$0xff]  }
 0x26f   :  { %4844 = vmatpush1.bf16.msra.mxu0 %v6731_v7  ;;  %v6791_v7 = vld [vmem:[#allocation8 + $0x188] ss:$16 sps:$4 sm:$0xff]  }
 0x270   :  { %4845 = vmatprep.subr.bf16.mxu0 %v6739_v10  ;;  %v6812_v10 = vld [vmem:[#allocation8 + $0x440] ss:$16 sps:$4 sm:$0xff]  }
 0x271   :  { %4957 = vmatpush1.bf16.msra.mxu1 %v6740_v13  ;;  %v6820_v13 = vld [vmem:[#allocation8 + $0x464] ss:$16 sps:$4 sm:$0xff]  }
 0x272   :  { %4958 = vmatprep.subr.bf16.mxu1 %v6748_v15  ;;  %v6799_v15 = vld [vmem:[#allocation8 + $0x1cc] ss:$16 sps:$4 sm:$0xff]  }
 0x273   :  { %4846 = vmatpush1.bf16.msra.mxu0 %v6737_v14  ;;  %v6794_v14 = vld [vmem:[#allocation8 + $0x1a8] ss:$16 sps:$4 sm:$0xff]  }
 0x274   :  { %4847 = vmatprep.subr.bf16.mxu0 %v6745_v57  ;;  %v6818_v57 = vld [vmem:[#allocation8 + $0x460] ss:$16 sps:$4 sm:$0xff]  }
 0x275   :  { %4959 = vmatpush1.bf16.msra.mxu1 %v6746_v33  ;;  %v6826_v33 = vld [vmem:[#allocation8 + $0x484] ss:$16 sps:$4 sm:$0xff]  }
 0x276   :  { %4960 = vmatprep.subr.bf16.mxu1 %v6754_v38  ;;  %v6805_v38 = vld [vmem:[#allocation8 + $0x1ec] ss:$16 sps:$4 sm:$0xff]  }
 0x277   :  { %4848 = vmatpush1.bf16.msra.mxu0 %v6743_v17  ;;  %v6797_v17 = vld [vmem:[#allocation8 + $0x1c8] ss:$16 sps:$4 sm:$0xff]  }
 0x278   :  { %4849 = vmatprep.subr.bf16.mxu0 %v6751_v18  ;;  %v6824_v18 = vld [vmem:[#allocation8 + $0x480] ss:$16 sps:$4 sm:$0xff]  }
 0x279   :  { %4961 = vmatpush1.bf16.msra.mxu1 %v6752_v20  ;;  %v6832_v20 = vld [vmem:[#allocation8 + $0x4a4] ss:$16 sps:$4 sm:$0xff]  }
 0x27a   :  { %4962 = vmatprep.subr.bf16.mxu1 %v6760_v24  ;;  %v6811_v24 = vld [vmem:[#allocation8 + $0x20c] ss:$16 sps:$4 sm:$0xff]  }
 0x27b   :  { %4850 = vmatpush1.bf16.msra.mxu0 %v6749_v23  ;;  %v2838_v34 = vpop.f32.mrb[4].mxu1  ;;  %v6803_v23 = vld [vmem:[#allocation8 + $0x1e8] ss:$16 sps:$4 sm:$0xff]  }
 0x27c   :  { %4851 = vmatprep.subr.bf16.mxu0 %v6757_v25  ;;  %v6560_v41 = vadd.f32 %v2838_v34, %v565_v26  ;;  %v2840_v36 = vpop.f32.mrb[5].mxu1  ;;  %v6830_v25 = vld [vmem:[#allocation8 + $0x4a0] ss:$16 sps:$4 sm:$0xff]   ;;  %v6838_v26 = vld [vmem:[#allocation8 + $0x4c4] ss:$16 sps:$4 sm:$0xff]  }
 0x27d   :  { %v6562_v30 = vadd.f32 %v2840_v36, %v569_v27  ;;  %v2842_v46 = vpop.f32.mrb[6].mxu1  ;;  %4963 = vmatpush1.bf16.msra.mxu1 %v6758_v28  ;;  %v6809_v27 = vld [vmem:[#allocation8 + $0x208] ss:$16 sps:$4 sm:$0xff]   ;;  %v6817_v28 = vld [vmem:[#allocation8 + $0x22c] ss:$16 sps:$4 sm:$0xff]  }
 0x27e   :  { %v6561_v21 = vadd.f32 %v6560_v41, %v7634_v47  ;;  %v2843_v61 = vpop.f32.mrb[7].mxu1  ;;  %4964 = vmatprep.subr.bf16.mxu1 %v6766_v32  ;;  %v6775_v47 = vld [vmem:[#allocation8 + $0x3c4] ss:$16 sps:$4 sm:$0xff]   ;;  %v6815_v34 = vld [vmem:[#allocation8 + $0x228] ss:$16 sps:$4 sm:$0xff]  }
 0x27f   :  { %4852 = vmatpush1.bf16.msra.mxu0 %v6755_v31  ;;  %v6563_v40 = vadd.f32 %v6562_v30, %v7638_v48  ;;  %v6784_v48 = vld [vmem:[#allocation8 + $0x12c] ss:$16 sps:$4 sm:$0xff]   ;;  %v6836_v31 = vld [vmem:[#allocation8 + $0x4c0] ss:$16 sps:$4 sm:$0xff]   ;;  %v6844_v32 = vld [vmem:[#allocation8 + $0x4e4] ss:$16 sps:$4 sm:$0xff]  }
 0x280   :  { %4853 = vmatprep.subr.bf16.mxu0 %v6763_v35  ;;  %v3216_v52 = vmax.f32 %v6561_v21, 0.0  ;;  %v6823_v35 = vld [vmem:[#allocation8 + $0x24c] ss:$16 sps:$4 sm:$0xff]   ;;  %v6842_v41 = vld [vmem:[#allocation8 + $0x4e0] ss:$16 sps:$4 sm:$0xff]  }
 0x281   :  { %v3217_v44 = vmax.f32 %v6563_v40, 0.0  ;;  %4965 = vmatpush1.bf16.msra.mxu1 %v6764_v37  ;;  %v6850_v36 = vld [vmem:[#allocation8 + $0x504] ss:$16 sps:$4 sm:$0xff]   ;;  %v6821_v30 = vld [vmem:[#allocation8 + $0x248] ss:$16 sps:$4 sm:$0xff]  }
 0x282   :  { %4966 = vmatprep.subr.bf16.mxu1 %v6772_v29  ;;  %v7662_v0 = vpack.c.bf16 %v3216_v52, %v3216_v52  ;;  %v6829_v46 = vld [vmem:[#allocation8 + $0x26c] ss:$16 sps:$4 sm:$0xff]   ;;  %v6848_v37 = vld [vmem:[#allocation8 + $0x500] ss:$16 sps:$4 sm:$0xff]   ;;  %v6856_v21 = vld [vmem:[#allocation8 + $0x524] ss:$16 sps:$4 sm:$0xff]  }
 0x283   :  { %4854 = vmatpush1.bf16.msra.mxu0 %v6761_v39  ;;  %v7659_v50 = vpack.c.bf16 %v3217_v44, %v3217_v44  ;;  %v6835_v61 = vld [vmem:[#allocation8 + $0x28c] ss:$16 sps:$4 sm:$0xff]   ;;  %v6854_v39 = vld [vmem:[#allocation8 + $0x520] ss:$16 sps:$4 sm:$0xff]   ;;  %v6862_v29 = vld [vmem:[#allocation8 + $0x544] ss:$16 sps:$4 sm:$0xff]  }
 0x284   :  { %4855 = vmatprep.subr.bf16.mxu0 %v6769_v43  ;;  %v6833_v40 = vld [vmem:[#allocation8 + $0x288] ss:$16 sps:$4 sm:$0xff]   ;;  %v6841_v43 = vld [vmem:[#allocation8 + $0x2ac] ss:$16 sps:$4 sm:$0xff]   ;;  %v6860_v44 = vld [vmem:[#allocation8 + $0x540] ss:$16 sps:$4 sm:$0xff]  }
 0x285   :  { %4861 = vmatprep.mubr.bf16.mxu0 %v7659_v50  ;;  %4967 = vmatpush1.bf16.msra.mxu1 %v6770_v45  ;;  %v6868_v45 = vld [vmem:[#allocation8 + $0x564] ss:$16 sps:$4 sm:$0xff]  }
 0x286   :  { %4968 = vmatprep.subr.bf16.mxu1 %v6778_v49  ;;  %v6847_v49 = vld [vmem:[#allocation8 + $0x2cc] ss:$16 sps:$4 sm:$0xff]   ;;  %v6886_v52 = vld [vmem:[#allocation8 + $0x5c4] ss:$16 sps:$4 sm:$0xff]  }
 0x287   :  { %4856 = vmatpush1.bf16.msra.mxu0 %v6767_v42  ;;  %v6839_v42 = vld [vmem:[#allocation8 + $0x2a8] ss:$16 sps:$4 sm:$0xff]  }
 0x288   :  { %4857 = vmatprep.subr.bf16.mxu0 %v6775_v47  ;;  %v6874_v47 = vld [vmem:[#allocation8 + $0x584] ss:$16 sps:$4 sm:$0xff]  }
 0x289   :  { %4969 = vmatpush1.bf16.msra.mxu1 %v6776_v51  ;;  %v6845_v51 = vld [vmem:[#allocation8 + $0x2c8] ss:$16 sps:$4 sm:$0xff]  }
 0x28a   :  { %4970 = vmatprep.subr.bf16.mxu1 %v6784_v48  ;;  %v6872_v48 = vld [vmem:[#allocation8 + $0x580] ss:$16 sps:$4 sm:$0xff]  }
 0x28b   :  { %4858 = vmatpush1.bf16.msra.mxu0 %v6773_v53  ;;  %v6853_v53 = vld [vmem:[#allocation8 + $0x2ec] ss:$16 sps:$4 sm:$0xff]  }
 0x28c   :  { %4859 = vmatprep.subr.bf16.mxu0 %v6781_v54  ;;  %v6880_v54 = vld [vmem:[#allocation8 + $0x5a4] ss:$16 sps:$4 sm:$0xff]  }
 0x28d   :  { %4971 = vmatpush1.bf16.msra.mxu1 %v6782_v55  ;;  %v6851_v55 = vld [vmem:[#allocation8 + $0x2e8] ss:$16 sps:$4 sm:$0xff]  }
 0x28e   :  { %4972 = vmatprep.subr.bf16.mxu1 %v6787_v58  ;;  %v6878_v58 = vld [vmem:[#allocation8 + $0x5a0] ss:$16 sps:$4 sm:$0xff]  }
 0x28f   :  { %4860 = vmatpush1.bf16.msra.mxu0 %v6779_v56  ;;  %v6859_v56 = vld [vmem:[#allocation8 + $0x30c] ss:$16 sps:$4 sm:$0xff]  }
 0x290   :  { %4870 = vmatprep.subr.bf16.mxu0 %v6802_v59  ;;  %v6857_v59 = vld [vmem:[#allocation8 + $0x308] ss:$16 sps:$4 sm:$0xff]  }
 0x291   :  { %4973 = vmatpush1.bf16.msra.mxu1 %v6785_v60  ;;  %v6865_v60 = vld [vmem:[#allocation8 + $0x32c] ss:$16 sps:$4 sm:$0xff]  }
 0x292   :  { %4862 = vmatmul.mubr.bf16.vlgmr.msra.gmra.mrb[16].mxu0 %v7662_v0  ;;  %4974 = vmatprep.subr.bf16.mxu1 %v6790_v62  ;;  %v6884_v62 = vld [vmem:[#allocation8 + $0x5c0] ss:$16 sps:$4 sm:$0xff]  }
 0x293   :  { %4871 = vmatpush1.bf16.msra.mxu0 %v6800_v63  ;;  %v6892_v63 = vld [vmem:[#allocation8 + $0x5e4] ss:$16 sps:$4 sm:$0xff]  }
 0x294   :  { %4872 = vmatprep.subr.bf16.mxu0 %v6808_v1  ;;  %v6863_v1 = vld [vmem:[#allocation8 + $0x328] ss:$16 sps:$4 sm:$0xff]  }
 0x295   :  { %4975 = vmatpush1.bf16.msra.mxu1 %v6788_v3  ;;  %v6871_v3 = vld [vmem:[#allocation8 + $0x34c] ss:$16 sps:$4 sm:$0xff]  }
 0x296   :  { %4976 = vmatprep.subr.bf16.mxu1 %v6793_v4  ;;  %v6890_v4 = vld [vmem:[#allocation8 + $0x5e0] ss:$16 sps:$4 sm:$0xff]  }
 0x297   :  { %4873 = vmatpush1.bf16.msra.mxu0 %v6806_v5  ;;  %v6925_v5 = vld [vmem:[#allocation8 + $0x604] ss:$16 sps:$4 sm:$0xff]  }
 0x298   :  { %4874 = vmatprep.subr.bf16.mxu0 %v6814_v6  ;;  %v6869_v6 = vld [vmem:[#allocation8 + $0x348] ss:$16 sps:$4 sm:$0xff]  }
 0x299   :  { %4977 = vmatpush1.bf16.msra.mxu1 %v6791_v7  ;;  %v6877_v7 = vld [vmem:[#allocation8 + $0x36c] ss:$16 sps:$4 sm:$0xff]  }
 0x29a   :  { %4978 = vmatprep.subr.bf16.mxu1 %v6796_v9  ;;  %v6875_v9 = vld [vmem:[#allocation8 + $0x368] ss:$16 sps:$4 sm:$0xff]  }
 0x29b   :  { %4875 = vmatpush1.bf16.msra.mxu0 %v6812_v10  ;;  %v6883_v10 = vld [vmem:[#allocation8 + $0x38c] ss:$16 sps:$4 sm:$0xff]  }
 0x29c   :  { %4876 = vmatprep.subr.bf16.mxu0 %v6820_v13  ;;  %v6881_v13 = vld [vmem:[#allocation8 + $0x388] ss:$16 sps:$4 sm:$0xff]  }
 0x29d   :  { %4979 = vmatpush1.bf16.msra.mxu1 %v6794_v14  ;;  %v572_v14 = vsub.s32 4, %v7609_v2 }
 0x29e   :  { %4980 = vmatprep.subr.bf16.mxu1 %v6799_v15  ;;  %v576_v15 = vsub.s32 5, %v7609_v2 }
 0x29f   :  { %4877 = vmatpush1.bf16.msra.mxu0 %v6818_v57  ;;  %v6889_v57 = vld [vmem:[#allocation8 + $0x3ac] ss:$16 sps:$4 sm:$0xff]  }
 0x2a0   :  { %4878 = vmatprep.subr.bf16.mxu0 %v6826_v33  ;;  %v573_v33 = vrot.slane %v7616_v11, %v572_v14  ;;  %v6896_v11 = vld [vmem:[#allocation8 + $0x3e8] ss:$16 sps:$4 sm:$0xff]   ;;  %v6979_v14 = vld [vmem:[#allocation8 + $0x724] ss:$16 sps:$4 sm:$0xff]  }
 0x2a1   :  { %4981 = vmatpush1.bf16.msra.mxu1 %v6797_v17  ;;  %v6887_v17 = vld [vmem:[#allocation8 + $0x3a8] ss:$16 sps:$4 sm:$0xff]  }
 0x2a2   :  { %4982 = vmatprep.subr.bf16.mxu1 %v6805_v38  ;;  %v7670_v38 = vld [vmem:[#allocation7] sm:$0xff] }
 0x2a3   :  { %4879 = vmatpush1.bf16.msra.mxu0 %v6824_v18  ;;  %v577_v18 = vrot.slane %v7670_v38, %v576_v15  ;;  %v6926_v15 = vld [vmem:[#allocation8 + $0x508] ss:$16 sps:$4 sm:$0xff]  }
 0x2a4   :  { %4880 = vmatprep.subr.bf16.mxu0 %v6832_v20  ;;  %v6895_v20 = vld [vmem:[#allocation8 + $0x3cc] ss:$16 sps:$4 sm:$0xff]  }
 0x2a5   :  { %4983 = vmatpush1.bf16.msra.mxu1 %v6803_v23 }
 0x2a6   :  { %4993 = vmatprep.subr.bf16.mxu1 %v6811_v24 }
 0x2a7   :  { %4881 = vmatpush1.bf16.msra.mxu0 %v6830_v25 }
 0x2a8   :  { %4882 = vmatprep.subr.bf16.mxu0 %v6838_v26  ;;  %4985 = vmatmul.mubr.bf16.vlgmr.msra.gmra.mrb[12].mxu1 %v7644_v16  ;;  %v6827_v16 = vld [vmem:[#allocation8 + $0x268] ss:$16 sps:$4 sm:$0xff]  }
 0x2a9   :  { %4994 = vmatpush1.bf16.msra.mxu1 %v6809_v27  ;;  %5025 = vmatprep.mubr.bf16.mxu1 %v7659_v50  ;;  %v6866_v50 = vld [vmem:[#allocation8 + $0x560] ss:$16 sps:$4 sm:$0xff]   ;;  %v6893_v26 = vld [vmem:[#allocation8 + $0x3c8] ss:$16 sps:$4 sm:$0xff]  }
 0x2aa   :  { %4995 = vmatprep.subr.bf16.mxu1 %v6817_v28 }
 0x2ab   :  { %4883 = vmatpush1.bf16.msra.mxu0 %v6836_v31  ;;  %v6898_v31 = vld [vmem:[#allocation8 + $0x3ec] ss:$16 sps:$4 sm:$0xff]  }
 0x2ac   :  { %4884 = vmatprep.subr.bf16.mxu0 %v6844_v32 }
 0x2ad   :  { %4996 = vmatpush1.bf16.msra.mxu1 %v6815_v34 }
 0x2ae   :  { %4997 = vmatprep.subr.bf16.mxu1 %v6823_v35 }
 0x2af   :  { %4885 = vmatpush1.bf16.msra.mxu0 %v6842_v41 }
 0x2b0   :  { %4886 = vmatprep.subr.bf16.mxu0 %v6850_v36  ;;  %v6901_v36 = vld [vmem:[#allocation8 + $0x40c] ss:$16 sps:$4 sm:$0xff]  }
 0x2b1   :  { %4998 = vmatpush1.bf16.msra.mxu1 %v6821_v30  ;;  %v6923_v30 = vld [vmem:[#allocation8 + $0x600] ss:$16 sps:$4 sm:$0xff]  }
 0x2b2   :  { %4999 = vmatprep.subr.bf16.mxu1 %v6829_v46 }
 0x2b3   :  { %4887 = vmatpush1.bf16.msra.mxu0 %v6848_v37  ;;  %v6931_v37 = vld [vmem:[#allocation8 + $0x624] ss:$16 sps:$4 sm:$0xff]  }
 0x2b4   :  { %4888 = vmatprep.subr.bf16.mxu0 %v6856_v21 }
 0x2b5   :  { %5000 = vmatpush1.bf16.msra.mxu1 %v6827_v16  ;;  %v6899_v16 = vld [vmem:[#allocation8 + $0x408] ss:$16 sps:$4 sm:$0xff]  }
 0x2b6   :  { %5001 = vmatprep.subr.bf16.mxu1 %v6835_v61 }
 0x2b7   :  { %4889 = vmatpush1.bf16.msra.mxu0 %v6854_v39  ;;  %v6904_v39 = vld [vmem:[#allocation8 + $0x42c] ss:$16 sps:$4 sm:$0xff]  }
 0x2b8   :  { %4890 = vmatprep.subr.bf16.mxu0 %v6862_v29  ;;  %v6929_v29 = vld [vmem:[#allocation8 + $0x620] ss:$16 sps:$4 sm:$0xff]  }
 0x2b9   :  { %5002 = vmatpush1.bf16.msra.mxu1 %v6833_v40 }
 0x2ba   :  { %5003 = vmatprep.subr.bf16.mxu1 %v6841_v43  ;;  %v6937_v43 = vld [vmem:[#allocation8 + $0x644] ss:$16 sps:$4 sm:$0xff]  }
 0x2bb   :  { %4891 = vmatpush1.bf16.msra.mxu0 %v6860_v44 }
 0x2bc   :  { %4892 = vmatprep.subr.bf16.mxu0 %v6868_v45  ;;  %v6902_v45 = vld [vmem:[#allocation8 + $0x428] ss:$16 sps:$4 sm:$0xff]  }
 0x2bd   :  { %5004 = vmatpush1.bf16.msra.mxu1 %v6839_v42  ;;  %v6907_v42 = vld [vmem:[#allocation8 + $0x44c] ss:$16 sps:$4 sm:$0xff]  }
 0x2be   :  { %5005 = vmatprep.subr.bf16.mxu1 %v6847_v49  ;;  %v6935_v49 = vld [vmem:[#allocation8 + $0x640] ss:$16 sps:$4 sm:$0xff]  }
 0x2bf   :  { %4893 = vmatpush1.bf16.msra.mxu0 %v6866_v50  ;;  %v6943_v50 = vld [vmem:[#allocation8 + $0x664] ss:$16 sps:$4 sm:$0xff]  }
 0x2c0   :  { %4894 = vmatprep.subr.bf16.mxu0 %v6874_v47  ;;  %v6905_v47 = vld [vmem:[#allocation8 + $0x448] ss:$16 sps:$4 sm:$0xff]  }
 0x2c1   :  { %5006 = vmatpush1.bf16.msra.mxu1 %v6845_v51  ;;  %v6910_v51 = vld [vmem:[#allocation8 + $0x46c] ss:$16 sps:$4 sm:$0xff]  }
 0x2c2   :  { %5007 = vmatprep.subr.bf16.mxu1 %v6853_v53  ;;  %v6941_v53 = vld [vmem:[#allocation8 + $0x660] ss:$16 sps:$4 sm:$0xff]  }
 0x2c3   :  { %4895 = vmatpush1.bf16.msra.mxu0 %v6872_v48  ;;  %v6949_v48 = vld [vmem:[#allocation8 + $0x684] ss:$16 sps:$4 sm:$0xff]  }
 0x2c4   :  { %4896 = vmatprep.subr.bf16.mxu0 %v6880_v54  ;;  %v6908_v54 = vld [vmem:[#allocation8 + $0x468] ss:$16 sps:$4 sm:$0xff]  }
 0x2c5   :  { %5008 = vmatpush1.bf16.msra.mxu1 %v6851_v55  ;;  %v6947_v55 = vld [vmem:[#allocation8 + $0x680] ss:$16 sps:$4 sm:$0xff]  }
 0x2c6   :  { %5009 = vmatprep.subr.bf16.mxu1 %v6859_v56  ;;  %v6955_v56 = vld [vmem:[#allocation8 + $0x6a4] ss:$16 sps:$4 sm:$0xff]  }
 0x2c7   :  { %4897 = vmatpush1.bf16.msra.mxu0 %v6878_v58  ;;  %v6911_v58 = vld [vmem:[#allocation8 + $0x488] ss:$16 sps:$4 sm:$0xff]  }
 0x2c8   :  { %4898 = vmatprep.subr.bf16.mxu0 %v6886_v52  ;;  %v6916_v52 = vld [vmem:[#allocation8 + $0x4ac] ss:$16 sps:$4 sm:$0xff]  }
 0x2c9   :  { %5010 = vmatpush1.bf16.msra.mxu1 %v6857_v59  ;;  %v6953_v59 = vld [vmem:[#allocation8 + $0x6a0] ss:$16 sps:$4 sm:$0xff]  }
 0x2ca   :  { %5011 = vmatprep.subr.bf16.mxu1 %v6865_v60  ;;  %v6961_v60 = vld [vmem:[#allocation8 + $0x6c4] ss:$16 sps:$4 sm:$0xff]  }
 0x2cb   :  { %4899 = vmatpush1.bf16.msra.mxu0 %v6884_v62  ;;  %v6914_v62 = vld [vmem:[#allocation8 + $0x4a8] ss:$16 sps:$4 sm:$0xff]  }
 0x2cc   :  { %4900 = vmatprep.subr.bf16.mxu0 %v6892_v63  ;;  %v6919_v63 = vld [vmem:[#allocation8 + $0x4cc] ss:$16 sps:$4 sm:$0xff]  }
 0x2cd   :  { %5012 = vmatpush1.bf16.msra.mxu1 %v6863_v1  ;;  %v6959_v1 = vld [vmem:[#allocation8 + $0x6c0] ss:$16 sps:$4 sm:$0xff]  }
 0x2ce   :  { %5013 = vmatprep.subr.bf16.mxu1 %v6871_v3  ;;  %v6967_v3 = vld [vmem:[#allocation8 + $0x6e4] ss:$16 sps:$4 sm:$0xff]  }
 0x2cf   :  { %4901 = vmatpush1.bf16.msra.mxu0 %v6890_v4  ;;  %v6917_v4 = vld [vmem:[#allocation8 + $0x4c8] ss:$16 sps:$4 sm:$0xff]  }
 0x2d0   :  { %4911 = vmatprep.subr.bf16.mxu0 %v6925_v5  ;;  %v6922_v5 = vld [vmem:[#allocation8 + $0x4ec] ss:$16 sps:$4 sm:$0xff]  }
 0x2d1   :  { %5014 = vmatpush1.bf16.msra.mxu1 %v6869_v6  ;;  %v6965_v6 = vld [vmem:[#allocation8 + $0x6e0] ss:$16 sps:$4 sm:$0xff]  }
 0x2d2   :  { %5015 = vmatprep.subr.bf16.mxu1 %v6877_v7  ;;  %v6973_v7 = vld [vmem:[#allocation8 + $0x704] ss:$16 sps:$4 sm:$0xff]  }
 0x2d5   :  { %5016 = vmatpush1.bf16.msra.mxu1 %v6875_v9  ;;  %v6920_v9 = vld [vmem:[#allocation8 + $0x4e8] ss:$16 sps:$4 sm:$0xff]  }
 0x2d6   :  { %5017 = vmatprep.subr.bf16.mxu1 %v6883_v10  ;;  %v6928_v10 = vld [vmem:[#allocation8 + $0x50c] ss:$16 sps:$4 sm:$0xff]  }
 0x2d9   :  { %5018 = vmatpush1.bf16.msra.mxu1 %v6881_v13  ;;  %v6971_v13 = vld [vmem:[#allocation8 + $0x700] ss:$16 sps:$4 sm:$0xff]  }
 0x2da   :  { %5019 = vmatprep.subr.bf16.mxu1 %v6889_v57  ;;  %v6934_v57 = vld [vmem:[#allocation8 + $0x52c] ss:$16 sps:$4 sm:$0xff]  }
 0x2dd   :  { %v3043_v23 = vpop.f32.mrb[8].mxu0  ;;  %5020 = vmatpush1.bf16.msra.mxu1 %v6887_v17  ;;  %v6985_v17 = vld [vmem:[#allocation8 + $0x744] ss:$16 sps:$4 sm:$0xff]  }
 0x2de   :  { %v6564_v24 = vadd.f32 %v3043_v23, %v573_v33  ;;  %v3045_v25 = vpop.f32.mrb[9].mxu0  ;;  %5021 = vmatprep.subr.bf16.mxu1 %v6895_v20  ;;  %v6977_v33 = vld [vmem:[#allocation8 + $0x720] ss:$16 sps:$4 sm:$0xff]   ;;  %v6940_v20 = vld [vmem:[#allocation8 + $0x54c] ss:$16 sps:$4 sm:$0xff]  }
 0x2df   :  { %v6565_v27 = vadd.f32 %v3045_v25, %v577_v18  ;;  %v3047_v28 = vpop.f32.mrb[10].mxu0  ;;  %v6932_v18 = vld [vmem:[#allocation8 + $0x528] ss:$16 sps:$4 sm:$0xff]   ;;  %v6983_v23 = vld [vmem:[#allocation8 + $0x740] ss:$16 sps:$4 sm:$0xff]  }
 0x2e0   :  { %v3218_v32 = vmax.f32 %v6564_v24, 0.0  ;;  %v3048_v34 = vpop.f32.mrb[11].mxu0  ;;  %v6991_v24 = vld [vmem:[#allocation8 + $0x764] ss:$16 sps:$4 sm:$0xff]   ;;  %v6938_v25 = vld [vmem:[#allocation8 + $0x548] ss:$16 sps:$4 sm:$0xff]  }
 0x2e1   :  { %v3219_v35 = vmax.f32 %v6565_v27, 0.0  ;;  %5022 = vmatpush1.bf16.msra.mxu1 %v6893_v26  ;;  %v6946_v26 = vld [vmem:[#allocation8 + $0x56c] ss:$16 sps:$4 sm:$0xff]   ;;  %v6989_v27 = vld [vmem:[#allocation8 + $0x760] ss:$16 sps:$4 sm:$0xff]  }
 0x2e2   :  { %5023 = vmatprep.subr.bf16.mxu1 %v6898_v31  ;;  %v7673_v46 = vpack.c.bf16 %v3218_v32, %v3218_v32  ;;  %v6997_v28 = vld [vmem:[#allocation8 + $0x784] ss:$16 sps:$4 sm:$0xff]   ;;  %v6944_v31 = vld [vmem:[#allocation8 + $0x568] ss:$16 sps:$4 sm:$0xff]   ;;  %v6952_v32 = vld [vmem:[#allocation8 + $0x58c] ss:$16 sps:$4 sm:$0xff]  }
 0x2e3   :  { %v3227_v41 = vpack.c.bf16 %v3219_v35, %v3219_v35  ;;  %v6995_v34 = vld [vmem:[#allocation8 + $0x780] ss:$16 sps:$4 sm:$0xff]   ;;  %v7003_v35 = vld [vmem:[#allocation8 + $0x7a4] ss:$16 sps:$4 sm:$0xff]  }
 0x2e5   :  { %4902 = vmatprep.mubr.bf16.mxu0 %v3227_v41  ;;  %v7675_v21 = vpop.f32.mrb[12].mxu0  ;;  %5024 = vmatpush1.bf16.msra.mxu1 %v6896_v11  ;;  %v6950_v11 = vld [vmem:[#allocation8 + $0x588] ss:$16 sps:$4 sm:$0xff]  }
 0x2e6   :  { %4903 = vmatmul.mubr.bf16.vlgmr.msra.gmra.mrb[16].mxu0 %v7673_v46  ;;  %v7678_v61 = vpop.f32.mrb[13].mxu0  ;;  %5034 = vmatprep.subr.bf16.mxu1 %v6901_v36  ;;  %v7001_v36 = vld [vmem:[#allocation8 + $0x7a0] ss:$16 sps:$4 sm:$0xff]  }
 0x2e7   :  { %4912 = vmatpush1.bf16.msra.mxu0 %v6923_v30  ;;  %v3211_v40 = vpop.f32.mrb[14].mxu0  ;;  %v7009_v30 = vld [vmem:[#allocation8 + $0x7c4] ss:$16 sps:$4 sm:$0xff]  }
 0x2e8   :  { %4913 = vmatprep.subr.bf16.mxu0 %v6931_v37  ;;  %v3212_v44 = vpop.f32.mrb[15].mxu0  ;;  %5026 = vmatmul.mubr.bf16.vlgmr.msra.gmra.mrb[12].mxu1 %v7662_v0  ;;  %v6913_v0 = vld [vmem:[#allocation8 + $0x48c] ss:$16 sps:$4 sm:$0xff]   ;;  %v6956_v37 = vld [vmem:[#allocation8 + $0x5a8] ss:$16 sps:$4 sm:$0xff]  }
 0x2e9   :  { %5035 = vmatpush1.bf16.msra.mxu1 %v6899_v16  ;;  %5066 = vmatprep.mubr.bf16.mxu1 %v3227_v41  ;;  %v6958_v41 = vld [vmem:[#allocation8 + $0x5ac] ss:$16 sps:$4 sm:$0xff]   ;;  %v6962_v40 = vld [vmem:[#allocation8 + $0x5c8] ss:$16 sps:$4 sm:$0xff]   ;;  %v7013_v44 = vld [vmem:[#allocation8 + $0x7e0] ss:$16 sps:$4 sm:$0xff]  }
 0x2ea   :  { %5036 = vmatprep.subr.bf16.mxu1 %v6904_v39  ;;  %v6964_v16 = vld [vmem:[#allocation8 + $0x5cc] ss:$16 sps:$4 sm:$0xff]   ;;  %v7007_v39 = vld [vmem:[#allocation8 + $0x7c0] ss:$16 sps:$4 sm:$0xff]  }
 0x2eb   :  { %4914 = vmatpush1.bf16.msra.mxu0 %v6929_v29  ;;  %v7015_v29 = vld [vmem:[#allocation8 + $0x7e4] ss:$16 sps:$4 sm:$0xff]  }
 0x2ec   :  { %4915 = vmatprep.subr.bf16.mxu0 %v6937_v43  ;;  %v6970_v43 = vld [vmem:[#allocation8 + $0x5ec] ss:$16 sps:$4 sm:$0xff]  }
 0x2ed   :  { %5037 = vmatpush1.bf16.msra.mxu1 %v6902_v45  ;;  %v7045_v45 = vld [vmem:[#allocation11 + $0x4] ss:$8 sps:$4 sm:$0xff]  }
 0x2ee   :  { %5038 = vmatprep.subr.bf16.mxu1 %v6907_v42  ;;  %v6968_v42 = vld [vmem:[#allocation8 + $0x5e8] ss:$16 sps:$4 sm:$0xff]  }
 0x2ef   :  { %4916 = vmatpush1.bf16.msra.mxu0 %v6935_v49  ;;  %v6976_v49 = vld [vmem:[#allocation8 + $0x60c] ss:$16 sps:$4 sm:$0xff]  }
 0x2f0   :  { %4917 = vmatprep.subr.bf16.mxu0 %v6943_v50  ;;  %v6974_v50 = vld [vmem:[#allocation8 + $0x608] ss:$16 sps:$4 sm:$0xff]  }
 0x2f1   :  { %5039 = vmatpush1.bf16.msra.mxu1 %v6905_v47  ;;  %v6982_v47 = vld [vmem:[#allocation8 + $0x62c] ss:$16 sps:$4 sm:$0xff]  }
 0x2f2   :  { %5040 = vmatprep.subr.bf16.mxu1 %v6910_v51  ;;  %v6980_v51 = vld [vmem:[#allocation8 + $0x628] ss:$16 sps:$4 sm:$0xff]  }
 0x2f3   :  { %4918 = vmatpush1.bf16.msra.mxu0 %v6941_v53  ;;  %v6988_v53 = vld [vmem:[#allocation8 + $0x64c] ss:$16 sps:$4 sm:$0xff]  }
 0x2f4   :  { %4919 = vmatprep.subr.bf16.mxu0 %v6949_v48  ;;  %v6986_v48 = vld [vmem:[#allocation8 + $0x648] ss:$16 sps:$4 sm:$0xff]  }
 0x2f5   :  { %5041 = vmatpush1.bf16.msra.mxu1 %v6908_v54  ;;  %v6994_v54 = vld [vmem:[#allocation8 + $0x66c] ss:$16 sps:$4 sm:$0xff]  }
 0x2f6   :  { %5042 = vmatprep.subr.bf16.mxu1 %v6913_v0  ;;  %v6992_v0 = vld [vmem:[#allocation8 + $0x668] ss:$16 sps:$4 sm:$0xff]  }
 0x2f7   :  { %4920 = vmatpush1.bf16.msra.mxu0 %v6947_v55  ;;  %v7000_v55 = vld [vmem:[#allocation8 + $0x68c] ss:$16 sps:$4 sm:$0xff]  }
 0x2f8   :  { %4921 = vmatprep.subr.bf16.mxu0 %v6955_v56  ;;  %v580_v56 = vsub.s32 6, %v7609_v2 }
 0x2f9   :  { %5043 = vmatpush1.bf16.msra.mxu1 %v6911_v58  ;;  %v6998_v58 = vld [vmem:[#allocation8 + $0x688] ss:$16 sps:$4 sm:$0xff]  }
 0x2fa   :  { %5044 = vmatprep.subr.bf16.mxu1 %v6916_v52  ;;  %v584_v52 = vsub.s32 7, %v7609_v2  ;;  %v7153_v2 = vld [vmem:[#allocation14 + $0x78] sm:$0xff]  }
 0x2fb   :  { %4922 = vmatpush1.bf16.msra.mxu0 %v6953_v59  ;;  %v581_v59 = vrot.slane %v7670_v38, %v580_v56  ;;  %v7073_v56 = vld [vmem:[#allocation11 + $0xa0] ss:$8 sps:$4 sm:$0xff]  }
 0x2fc   :  { %4923 = vmatprep.subr.bf16.mxu0 %v6961_v60  ;;  %v585_v60 = vrot.slane %v7670_v38, %v584_v52  ;;  %v7016_v38 = vld [vmem:[#allocation8 + $0x6e8] ss:$16 sps:$4 sm:$0xff]   ;;  %v7076_v52 = vld [vmem:[#allocation11 + $0xb0] ss:$8 sps:$4 sm:$0xff]  }
 0x2fd   :  { %5045 = vmatpush1.bf16.msra.mxu1 %v6914_v62  ;;  %v7004_v62 = vld [vmem:[#allocation8 + $0x6a8] ss:$16 sps:$4 sm:$0xff]  }
 0x2fe   :  { %5046 = vmatprep.subr.bf16.mxu1 %v6919_v63  ;;  %v7012_v63 = vld [vmem:[#allocation8 + $0x6cc] ss:$16 sps:$4 sm:$0xff]  }
 0x2ff   :  { %4924 = vmatpush1.bf16.msra.mxu0 %v6959_v1 }
 0x300   :  { %4925 = vmatprep.subr.bf16.mxu0 %v6967_v3 }
 0x301   :  { %5047 = vmatpush1.bf16.msra.mxu1 %v6917_v4 }
 0x302   :  { %5048 = vmatprep.subr.bf16.mxu1 %v6922_v5 }
 0x303   :  { %4926 = vmatpush1.bf16.msra.mxu0 %v6965_v6 }
 0x304   :  { %4927 = vmatprep.subr.bf16.mxu0 %v6973_v7  ;;  %v7010_v7 = vld [vmem:[#allocation8 + $0x6c8] ss:$16 sps:$4 sm:$0xff]  }
 0x305   :  { %5049 = vmatpush1.bf16.msra.mxu1 %v6920_v9 }
 0x306   :  { %5050 = vmatprep.subr.bf16.mxu1 %v6928_v10 }
 0x307   :  { %4928 = vmatpush1.bf16.msra.mxu0 %v6971_v13  ;;  %v7018_v13 = vld [vmem:[#allocation8 + $0x6ec] ss:$16 sps:$4 sm:$0xff]  }
 0x308   :  { %4929 = vmatprep.subr.bf16.mxu0 %v6979_v14 }
 0x309   :  { %5051 = vmatpush1.bf16.msra.mxu1 %v6926_v15 }
 0x30a   :  { %5052 = vmatprep.subr.bf16.mxu1 %v6934_v57 }
 0x30b   :  { %4930 = vmatpush1.bf16.msra.mxu0 %v6977_v33 }
 0x30c   :  { %4931 = vmatprep.subr.bf16.mxu0 %v6985_v17  ;;  %v7021_v17 = vld [vmem:[#allocation8 + $0x70c] ss:$16 sps:$4 sm:$0xff]  }
 0x30d   :  { %5053 = vmatpush1.bf16.msra.mxu1 %v6932_v18  ;;  %v7043_v18 = vld [vmem:[#allocation11] ss:$8 sps:$4 sm:$0xff]  }
 0x30e   :  { %5054 = vmatprep.subr.bf16.mxu1 %v6940_v20 }
 0x30f   :  { %4932 = vmatpush1.bf16.msra.mxu0 %v6983_v23  ;;  %v7048_v23 = vld [vmem:[#allocation11 + $0x14] ss:$8 sps:$4 sm:$0xff]  }
 0x310   :  { %4933 = vmatprep.subr.bf16.mxu0 %v6991_v24  ;;  %v7019_v24 = vld [vmem:[#allocation8 + $0x708] ss:$16 sps:$4 sm:$0xff]  }
 0x311   :  { %5055 = vmatpush1.bf16.msra.mxu1 %v6938_v25  ;;  %v7051_v25 = vld [vmem:[#allocation11 + $0x24] ss:$8 sps:$4 sm:$0xff]  }
 0x312   :  { %5056 = vmatprep.subr.bf16.mxu1 %v6946_v26  ;;  %v7022_v26 = vld [vmem:[#allocation8 + $0x728] ss:$16 sps:$4 sm:$0xff]  }
 0x313   :  { %4934 = vmatpush1.bf16.msra.mxu0 %v6989_v27  ;;  %v7027_v27 = vld [vmem:[#allocation8 + $0x74c] ss:$16 sps:$4 sm:$0xff]  }
 0x314   :  { %4935 = vmatprep.subr.bf16.mxu0 %v6997_v28  ;;  %v7049_v28 = vld [vmem:[#allocation11 + $0x20] ss:$8 sps:$4 sm:$0xff]  }
 0x315   :  { %5057 = vmatpush1.bf16.msra.mxu1 %v6944_v31  ;;  %v7054_v31 = vld [vmem:[#allocation11 + $0x34] ss:$8 sps:$4 sm:$0xff]  }
 0x316   :  { %5058 = vmatprep.subr.bf16.mxu1 %v6952_v32  ;;  %v7025_v32 = vld [vmem:[#allocation8 + $0x748] ss:$16 sps:$4 sm:$0xff]  }
 0x317   :  { %4936 = vmatpush1.bf16.msra.mxu0 %v6995_v34  ;;  %v7030_v34 = vld [vmem:[#allocation8 + $0x76c] ss:$16 sps:$4 sm:$0xff]  }
 0x318   :  { %4937 = vmatprep.subr.bf16.mxu0 %v7003_v35  ;;  %v7052_v35 = vld [vmem:[#allocation11 + $0x30] ss:$8 sps:$4 sm:$0xff]  }
 0x319   :  { %5059 = vmatpush1.bf16.msra.mxu1 %v6950_v11  ;;  %v7057_v11 = vld [vmem:[#allocation11 + $0x44] ss:$8 sps:$4 sm:$0xff]  }
 0x31a   :  { %5060 = vmatprep.subr.bf16.mxu1 %v6958_v41  ;;  %v7028_v41 = vld [vmem:[#allocation8 + $0x768] ss:$16 sps:$4 sm:$0xff]  }
 0x31b   :  { %4938 = vmatpush1.bf16.msra.mxu0 %v7001_v36  ;;  %v7033_v36 = vld [vmem:[#allocation8 + $0x78c] ss:$16 sps:$4 sm:$0xff]  }
 0x31c   :  { %4939 = vmatprep.subr.bf16.mxu0 %v7009_v30  ;;  %v7055_v30 = vld [vmem:[#allocation11 + $0x40] ss:$8 sps:$4 sm:$0xff]  }
 0x31d   :  { %5061 = vmatpush1.bf16.msra.mxu1 %v6956_v37  ;;  %v7060_v37 = vld [vmem:[#allocation11 + $0x54] ss:$8 sps:$4 sm:$0xff]  }
 0x31e   :  { %5062 = vmatprep.subr.bf16.mxu1 %v6964_v16  ;;  %v7031_v16 = vld [vmem:[#allocation8 + $0x788] ss:$16 sps:$4 sm:$0xff]  }
 0x31f   :  { %4940 = vmatpush1.bf16.msra.mxu0 %v7007_v39  ;;  %v7036_v39 = vld [vmem:[#allocation8 + $0x7ac] ss:$16 sps:$4 sm:$0xff]  }
 0x320   :  { %4941 = vmatprep.subr.bf16.mxu0 %v7015_v29  ;;  %v7058_v29 = vld [vmem:[#allocation11 + $0x50] ss:$8 sps:$4 sm:$0xff]  }
 0x321   :  { %5063 = vmatpush1.bf16.msra.mxu1 %v6962_v40  ;;  %v7063_v40 = vld [vmem:[#allocation11 + $0x64] ss:$8 sps:$4 sm:$0xff]  }
 0x322   :  { %5064 = vmatprep.subr.bf16.mxu1 %v6970_v43  ;;  %v7034_v43 = vld [vmem:[#allocation8 + $0x7a8] ss:$16 sps:$4 sm:$0xff]  }
 0x323   :  { %4942 = vmatpush1.bf16.msra.mxu0 %v7013_v44  ;;  %v7039_v44 = vld [vmem:[#allocation8 + $0x7cc] ss:$16 sps:$4 sm:$0xff]  }
 0x324   :  { %5520 = vmatprep.subr.bf16.mxu0 %v7045_v45  ;;  %v7061_v45 = vld [vmem:[#allocation11 + $0x60] ss:$8 sps:$4 sm:$0xff]  }
 0x325   :  { %5065 = vmatpush1.bf16.msra.mxu1 %v6968_v42  ;;  %v7066_v42 = vld [vmem:[#allocation11 + $0x74] ss:$8 sps:$4 sm:$0xff]  }
 0x326   :  { %5075 = vmatprep.subr.bf16.mxu1 %v6976_v49  ;;  %v7037_v49 = vld [vmem:[#allocation8 + $0x7c8] ss:$16 sps:$4 sm:$0xff]  }
 0x328   :  { %5067 = vmatmul.mubr.bf16.vlgmr.msra.gmra.mrb[12].mxu1 %v7673_v46  ;;  %v7006_v46 = vld [vmem:[#allocation8 + $0x6ac] ss:$16 sps:$4 sm:$0xff]  }
 0x329   :  { %5076 = vmatpush1.bf16.msra.mxu1 %v6974_v50  ;;  %v7042_v50 = vld [vmem:[#allocation8 + $0x7ec] ss:$16 sps:$4 sm:$0xff]  }
 0x32a   :  { %5077 = vmatprep.subr.bf16.mxu1 %v6982_v47  ;;  %v7064_v47 = vld [vmem:[#allocation11 + $0x70] ss:$8 sps:$4 sm:$0xff]  }
 0x32d   :  { %5078 = vmatpush1.bf16.msra.mxu1 %v6980_v51  ;;  %v7069_v51 = vld [vmem:[#allocation11 + $0x84] ss:$8 sps:$4 sm:$0xff]  }
 0x32e   :  { %5079 = vmatprep.subr.bf16.mxu1 %v6988_v53  ;;  %v7040_v53 = vld [vmem:[#allocation8 + $0x7e8] ss:$16 sps:$4 sm:$0xff]  }
 0x331   :  { %5080 = vmatpush1.bf16.msra.mxu1 %v6986_v48  ;;  %v7067_v48 = vld [vmem:[#allocation11 + $0x80] ss:$8 sps:$4 sm:$0xff]  }
 0x332   :  { %5081 = vmatprep.subr.bf16.mxu1 %v6994_v54  ;;  %v7072_v54 = vld [vmem:[#allocation11 + $0x94] ss:$8 sps:$4 sm:$0xff]  }
 0x335   :  { %5082 = vmatpush1.bf16.msra.mxu1 %v6992_v0  ;;  %v7070_v0 = vld [vmem:[#allocation11 + $0x90] ss:$8 sps:$4 sm:$0xff]  }
 0x336   :  { %5083 = vmatprep.subr.bf16.mxu1 %v7000_v55  ;;  %v7075_v55 = vld [vmem:[#allocation11 + $0xa4] ss:$8 sps:$4 sm:$0xff]  }
 0x339   :  { %5084 = vmatpush1.bf16.msra.mxu1 %v6998_v58  ;;  %v7078_v58 = vld [vmem:[#allocation11 + $0xb4] ss:$8 sps:$4 sm:$0xff]  }
 0x33a   :  { %5085 = vmatprep.subr.bf16.mxu1 %v7006_v46  ;;  %v7081_v46 = vld [vmem:[#allocation11 + $0xc4] ss:$8 sps:$4 sm:$0xff]  }
 0x33b   :  { %v3166_v1 = vpop.f32.mrb[8].mxu1 }
 0x33c   :  { %v6566_v3 = vadd.f32 %v3166_v1, %v581_v59  ;;  %v3168_v4 = vpop.f32.mrb[9].mxu1  ;;  %v7079_v59 = vld [vmem:[#allocation11 + $0xc0] ss:$8 sps:$4 sm:$0xff]  }
 0x33d   :  { %v6568_v5 = vadd.f32 %v3168_v4, %v585_v60  ;;  %v3170_v6 = vpop.f32.mrb[10].mxu1  ;;  %5086 = vmatpush1.bf16.msra.mxu1 %v7004_v62  ;;  %v7084_v60 = vld [vmem:[#allocation11 + $0xd4] ss:$8 sps:$4 sm:$0xff]   ;;  %v7082_v62 = vld [vmem:[#allocation11 + $0xd0] ss:$8 sps:$4 sm:$0xff]  }
 0x33e   :  { %v6567_v9 = vadd.f32 %v6566_v3, %v7675_v21  ;;  %v3171_v10 = vpop.f32.mrb[11].mxu1  ;;  %5087 = vmatprep.subr.bf16.mxu1 %v7012_v63  ;;  %v7024_v21 = vld [vmem:[#allocation8 + $0x72c] ss:$16 sps:$4 sm:$0xff]   ;;  %v7087_v63 = vld [vmem:[#allocation11 + $0xe4] ss:$8 sps:$4 sm:$0xff]  }
 0x33f   :  { %v6569_v14 = vadd.f32 %v6568_v5, %v7678_v61  ;;  %v7046_v61 = vld [vmem:[#allocation11 + $0x10] ss:$8 sps:$4 sm:$0xff]   ;;  %v7085_v1 = vld [vmem:[#allocation11 + $0xe0] ss:$8 sps:$4 sm:$0xff]   ;;  %v7090_v3 = vld [vmem:[#allocation11 + $0xf4] ss:$8 sps:$4 sm:$0xff]  }
 0x340   :  { %v3220_v15 = vmax.f32 %v6567_v9, 0.0  ;;  %v7088_v4 = vld [vmem:[#allocation11 + $0xf0] ss:$8 sps:$4 sm:$0xff]   ;;  %v7093_v5 = vld [vmem:[#allocation11 + $0x104] ss:$8 sps:$4 sm:$0xff]  }
 0x341   :  { %v3221_v57 = vmax.f32 %v6569_v14, 0.0  ;;  %5088 = vmatpush1.bf16.msra.mxu1 %v7010_v7  ;;  %v7139_v6 = vld [vmem:[#allocation14 + $0x40] sm:$0xff]   ;;  %v7141_v9 = vld [vmem:[#allocation14 + $0x48] sm:$0xff]   ;;  %v7144_v14 = vld [vmem:[#allocation14 + $0x10] sm:$0xff]  }
 0x342   :  { %5089 = vmatprep.subr.bf16.mxu1 %v7018_v13  ;;  %v7688_v20 = vpack.c.bf16 %v3220_v15, %v3220_v15  ;;  %v7140_v7 = vld [vmem:[#allocation14] sm:$0xff]   ;;  %v7142_v10 = vld [vmem:[#allocation14 + $0x8] sm:$0xff]   ;;  %v7143_v13 = vld [vmem:[#allocation14 + $0x50] sm:$0xff]  }
 0x343   :  { %v3229_v33 = vpack.c.bf16 %v3221_v57, %v3221_v57  ;;  %v7145_v15 = vld [vmem:[#allocation14 + $0x58] sm:$0xff]  }
 0x344   :  { %v7146_v57 = vld [vmem:[#allocation14 + $0x18] sm:$0xff]  }
 0x345   :  { %4943 = vmatprep.mubr.bf16.mxu0 %v3229_v33  ;;  %5090 = vmatpush1.bf16.msra.mxu1 %v7016_v38  ;;  %v7147_v38 = vld [vmem:[#allocation14 + $0x60] sm:$0xff]  }
 0x346   :  { %5107 = vmatprep.mubr.bf16.mxu1 %v3229_v33  ;;  %4944 = vmatmul.mubr.bf16.vlgmr.msra.gmra.mrb[16].mxu0 %v7688_v20  ;;  %v7148_v33 = vld [vmem:[#allocation14 + $0x20] sm:$0xff]  }
 0x347   :  { %5091 = vmatprep.subr.bf16.mxu1 %v7021_v17  ;;  %5521 = vmatpush1.bf16.msra.mxu0 %v7043_v18  ;;  %v7149_v17 = vld [vmem:[#allocation14 + $0x68] sm:$0xff]  }
 0x348   :  { %5522 = vmatprep.subr.bf16.mxu0 %v7048_v23  ;;  %v7150_v18 = vld [vmem:[#allocation14 + $0x28] sm:$0xff]  }
 0x349   :  { %5092 = vmatpush1.bf16.msra.mxu1 %v7019_v24 }
 0x34a   :  { %5093 = vmatprep.subr.bf16.mxu1 %v7024_v21 }
 0x34b   :  { %5523 = vmatpush1.bf16.msra.mxu0 %v7046_v61 }
 0x34c   :  { %5524 = vmatprep.subr.bf16.mxu0 %v7051_v25 }
 0x34d   :  { %5094 = vmatpush1.bf16.msra.mxu1 %v7022_v26 }
 0x34e   :  { %5095 = vmatprep.subr.bf16.mxu1 %v7027_v27 }
 0x34f   :  { %5525 = vmatpush1.bf16.msra.mxu0 %v7049_v28 }
 0x350   :  { %5526 = vmatprep.subr.bf16.mxu0 %v7054_v31 }
 0x351   :  { %5096 = vmatpush1.bf16.msra.mxu1 %v7025_v32 }
 0x352   :  { %5097 = vmatprep.subr.bf16.mxu1 %v7030_v34 }
 0x353   :  { %5527 = vmatpush1.bf16.msra.mxu0 %v7052_v35  ;;  %v7091_v35 = vld [vmem:[#allocation11 + $0x100] ss:$8 sps:$4 sm:$0xff]  }
 0x354   :  { %5528 = vmatprep.subr.bf16.mxu0 %v7057_v11 }
 0x355   :  { %5098 = vmatpush1.bf16.msra.mxu1 %v7028_v41  ;;  %v7096_v41 = vld [vmem:[#allocation11 + $0x114] ss:$8 sps:$4 sm:$0xff]  }
 0x356   :  { %5099 = vmatprep.subr.bf16.mxu1 %v7033_v36  ;;  %v7094_v36 = vld [vmem:[#allocation11 + $0x110] ss:$8 sps:$4 sm:$0xff]  }
 0x357   :  { %5529 = vmatpush1.bf16.msra.mxu0 %v7055_v30  ;;  %v7099_v30 = vld [vmem:[#allocation11 + $0x124] ss:$8 sps:$4 sm:$0xff]  }
 0x358   :  { %5530 = vmatprep.subr.bf16.mxu0 %v7060_v37  ;;  %v7097_v37 = vld [vmem:[#allocation11 + $0x120] ss:$8 sps:$4 sm:$0xff]  }
 0x359   :  { %5100 = vmatpush1.bf16.msra.mxu1 %v7031_v16  ;;  %v7102_v16 = vld [vmem:[#allocation11 + $0x134] ss:$8 sps:$4 sm:$0xff]  }
 0x35a   :  { %5101 = vmatprep.subr.bf16.mxu1 %v7036_v39  ;;  %v7100_v39 = vld [vmem:[#allocation11 + $0x130] ss:$8 sps:$4 sm:$0xff]  }
 0x35b   :  { %5531 = vmatpush1.bf16.msra.mxu0 %v7058_v29  ;;  %v7105_v29 = vld [vmem:[#allocation11 + $0x144] ss:$8 sps:$4 sm:$0xff]  }
 0x35c   :  { %5532 = vmatprep.subr.bf16.mxu0 %v7063_v40  ;;  %v7103_v40 = vld [vmem:[#allocation11 + $0x140] ss:$8 sps:$4 sm:$0xff]  }
 0x35d   :  { %5102 = vmatpush1.bf16.msra.mxu1 %v7034_v43  ;;  %v7108_v43 = vld [vmem:[#allocation11 + $0x154] ss:$8 sps:$4 sm:$0xff]  }
 0x35e   :  { %5103 = vmatprep.subr.bf16.mxu1 %v7039_v44  ;;  %v7106_v44 = vld [vmem:[#allocation11 + $0x150] ss:$8 sps:$4 sm:$0xff]  }
 0x35f   :  { %5533 = vmatpush1.bf16.msra.mxu0 %v7061_v45  ;;  %v7111_v45 = vld [vmem:[#allocation11 + $0x164] ss:$8 sps:$4 sm:$0xff]  }
 0x360   :  { %5534 = vmatprep.subr.bf16.mxu0 %v7066_v42  ;;  %v7109_v42 = vld [vmem:[#allocation11 + $0x160] ss:$8 sps:$4 sm:$0xff]  }
 0x361   :  { %5104 = vmatpush1.bf16.msra.mxu1 %v7037_v49  ;;  %v7114_v49 = vld [vmem:[#allocation11 + $0x174] ss:$8 sps:$4 sm:$0xff]  }
 0x362   :  { %5105 = vmatprep.subr.bf16.mxu1 %v7042_v50 }
 0x363   :  { %5535 = vmatpush1.bf16.msra.mxu0 %v7064_v47 }
 0x364   :  { %5536 = vmatprep.subr.bf16.mxu0 %v7069_v51  ;;  %v7112_v51 = vld [vmem:[#allocation11 + $0x170] ss:$8 sps:$4 sm:$0xff]  }
 0x365   :  { %5106 = vmatpush1.bf16.msra.mxu1 %v7040_v53 }
 0x366   :  { %6534 = vmatprep.subr.bf16.mxu1 %v7139_v6 }
 0x367   :  { %5537 = vmatpush1.bf16.msra.mxu0 %v7067_v48  ;;  %v7117_v48 = vld [vmem:[#allocation11 + $0x184] ss:$8 sps:$4 sm:$0xff]  }
 0x368   :  { %5108 = vmatmul.mubr.bf16.vlgmr.msra.gmra.mrb[12].mxu1 %v7688_v20  ;;  %5538 = vmatprep.subr.bf16.mxu0 %v7072_v54  ;;  %v7692_v20 = vld [vmem:[#allocation10] sm:$0xf] }
 0x369   :  { %6535 = vmatpush3.bf16.msra.mxu1 %v7140_v7  ;;  %v3491_v23 = vrot.slane %v7692_v20, %v7613_v8  ;;  %v3495_v24 = vrot.slane %v7692_v20, %v7619_v12  ;;  %v3503_v50 = vrot.slane %v7692_v20, %v568_v22  ;;  %v7123_v22 = vld [vmem:[#allocation11 + $0x1a4] ss:$8 sps:$4 sm:$0xff]   ;;  %v3499_v6 = vrot.slane %v7692_v20, %v564_v19  ;;  %v7154_v19 = vld [vmem:[#allocation14 + $0x38] sm:$0xff]  }
 0x36a   :  { %6536 = vmatprep.subr.bf16.mxu1 %v7141_v9  ;;  %v7135_v7 = vld [vmem:[#allocation11 + $0x1e4] ss:$8 sps:$4 sm:$0xff]   ;;  %v7133_v9 = vld [vmem:[#allocation11 + $0x1e0] ss:$8 sps:$4 sm:$0xff]  }
 0x36b   :  { %5539 = vmatpush1.bf16.msra.mxu0 %v7070_v0 }
 0x36c   :  { %5540 = vmatprep.subr.bf16.mxu0 %v7075_v55 }
 0x36d   :  { %6537 = vmatpush3.bf16.msra.mxu1 %v7142_v10 }
 0x36e   :  { %6538 = vmatprep.subr.bf16.mxu1 %v7143_v13  ;;  %v7138_v13 = vld [vmem:[#allocation11 + $0x1f4] ss:$8 sps:$4 sm:$0xff]  }
 0x36f   :  { %5541 = vmatpush1.bf16.msra.mxu0 %v7073_v56 }
 0x370   :  { %5542 = vmatprep.subr.bf16.mxu0 %v7078_v58  ;;  %v7115_v58 = vld [vmem:[#allocation11 + $0x180] ss:$8 sps:$4 sm:$0xff]  }
 0x371   :  { %6539 = vmatpush3.bf16.msra.mxu1 %v7144_v14  ;;  %v7136_v14 = vld [vmem:[#allocation11 + $0x1f0] ss:$8 sps:$4 sm:$0xff]  }
 0x372   :  { %6540 = vmatprep.subr.bf16.mxu1 %v7145_v15 }
 0x373   :  { %5543 = vmatpush1.bf16.msra.mxu0 %v7076_v52  ;;  %v7120_v52 = vld [vmem:[#allocation11 + $0x194] ss:$8 sps:$4 sm:$0xff]  }
 0x374   :  { %5544 = vmatprep.subr.bf16.mxu0 %v7081_v46 }
 0x375   :  { %6541 = vmatpush3.bf16.msra.mxu1 %v7146_v57 }
 0x376   :  { %6542 = vmatprep.subr.bf16.mxu1 %v7147_v38  ;;  %v7151_v38 = vld [vmem:[#allocation14 + $0x70] sm:$0xff]  }
 0x377   :  { %5545 = vmatpush1.bf16.msra.mxu0 %v7079_v59  ;;  %v7118_v59 = vld [vmem:[#allocation11 + $0x190] ss:$8 sps:$4 sm:$0xff]  }
 0x378   :  { %5546 = vmatprep.subr.bf16.mxu0 %v7084_v60  ;;  %v7121_v60 = vld [vmem:[#allocation11 + $0x1a0] ss:$8 sps:$4 sm:$0xff]  }
 0x379   :  { %6543 = vmatpush3.bf16.msra.mxu1 %v7148_v33  ;;  %v7152_v33 = vld [vmem:[#allocation14 + $0x30] sm:$0xff]  }
 0x37a   :  { %6544 = vmatprep.subr.bf16.mxu1 %v7149_v17  ;;  %v5188_v17 = vld [vmem:[#allocation13] sm:$0x3] }
 0x37b   :  { %5547 = vmatpush1.bf16.msra.mxu0 %v7082_v62  ;;  %v7126_v62 = vld [vmem:[#allocation11 + $0x1b4] ss:$8 sps:$4 sm:$0xff]   ;;  %v5197_v20 = vrot.slane %v5188_v17, %v7619_v12 }
 0x37c   :  { %5548 = vmatprep.subr.bf16.mxu0 %v7087_v63  ;;  %v7124_v63 = vld [vmem:[#allocation11 + $0x1b0] ss:$8 sps:$4 sm:$0xff]  }
 0x37d   :  { %6545 = vmatpush3.bf16.msra.mxu1 %v7150_v18  ;;  %v5193_v18 = vrot.slane %v5188_v17, %v7613_v8 }
 0x37e   :  { %6546 = vmatprep.subr.bf16.mxu1 %v7151_v38 }
 0x37f   :  { %5549 = vmatpush1.bf16.msra.mxu0 %v7085_v1  ;;  %v7129_v1 = vld [vmem:[#allocation11 + $0x1c4] ss:$8 sps:$4 sm:$0xff]  }
 0x380   :  { %5550 = vmatprep.subr.bf16.mxu0 %v7090_v3  ;;  %v7127_v3 = vld [vmem:[#allocation11 + $0x1c0] ss:$8 sps:$4 sm:$0xff]  }
 0x381   :  { %6547 = vmatpush3.bf16.msra.mxu1 %v7152_v33 }
 0x382   :  { %6548 = vmatprep.subr.bf16.mxu1 %v7153_v2 }
 0x383   :  { %5551 = vmatpush1.bf16.msra.mxu0 %v7088_v4  ;;  %v7132_v4 = vld [vmem:[#allocation11 + $0x1d4] ss:$8 sps:$4 sm:$0xff]  }
 0x384   :  { %5561 = vmatprep.subr.bf16.mxu0 %v7093_v5  ;;  %v7130_v5 = vld [vmem:[#allocation11 + $0x1d0] ss:$8 sps:$4 sm:$0xff]  }
 0x385   :  { %6549 = vmatpush3.bf16.msra.mxu1 %v7154_v19 }
 0x419   :  { %v4945_v21 = vpop.f32.mrb[16].mxu0 }
 0x41a   :  { %v6570_v61 = vadd.f32 %v4945_v21, %v3491_v23  ;;  %v4947_v25 = vpop.f32.mrb[17].mxu0 }
 0x41b   :  { %v6571_v26 = vadd.f32 %v4947_v25, %v3495_v24  ;;  %v4949_v27 = vpop.f32.mrb[18].mxu0 }
 0x41c   :  { %v5116_v28 = vmax.f32 %v6570_v61, 0.0  ;;  %v4950_v31 = vpop.f32.mrb[19].mxu0 }
 0x41d   :  { %v5117_v32 = vmax.f32 %v6571_v26, 0.0 }
 0x41e   :  { %v5120_v11 = vpack.c.bf16 %v5116_v28, %v5116_v28 }
 0x41f   :  { %v5121_v34 = vpack.c.bf16 %v5117_v32, %v5117_v32 }
 0x421   :  { %5552 = vmatprep.mubr.bf16.mxu0 %v5121_v34 }
 0x422   :  { %5553 = vmatmul.mubr.bf16.vlgmr.msra.gmra.mrb[20].mxu0 %v5120_v11 }
 0x423   :  { %5562 = vmatpush1.bf16.msra.mxu0 %v7091_v35  ;;  %v6517_v35 = vld [vmem:[#allocation16] ss:$0 sm:$0xff] }
 0x424   :  { %5563 = vmatprep.subr.bf16.mxu0 %v7096_v41 }
 0x427   :  { %5564 = vmatpush1.bf16.msra.mxu0 %v7094_v36 }
 0x428   :  { %5565 = vmatprep.subr.bf16.mxu0 %v7099_v30 }
 0x42b   :  { %5566 = vmatpush1.bf16.msra.mxu0 %v7097_v37 }
 0x42c   :  { %5567 = vmatprep.subr.bf16.mxu0 %v7102_v16 }
 0x42f   :  { %5568 = vmatpush1.bf16.msra.mxu0 %v7100_v39 }
 0x430   :  { %5569 = vmatprep.subr.bf16.mxu0 %v7105_v29 }
 0x433   :  { %5570 = vmatpush1.bf16.msra.mxu0 %v7103_v40 }
 0x434   :  { %5571 = vmatprep.subr.bf16.mxu0 %v7108_v43 }
 0x437   :  { %5572 = vmatpush1.bf16.msra.mxu0 %v7106_v44 }
 0x438   :  { %5573 = vmatprep.subr.bf16.mxu0 %v7111_v45 }
 0x43b   :  { %5574 = vmatpush1.bf16.msra.mxu0 %v7109_v42  ;;  %v5109_v47 = vpop.f32.mrb[12].mxu1 }
 0x43c   :  { %v5111_v53 = vpop.f32.mrb[13].mxu1  ;;  %5575 = vmatprep.subr.bf16.mxu0 %v7114_v49  ;;  %v6572_v10 = vadd.f32 %v5109_v47, %v3499_v6 }
 0x43d   :  { %v6573_v54 = vadd.f32 %v5111_v53, %v3503_v50  ;;  %v5113_v0 = vpop.f32.mrb[14].mxu1 }
 0x43e   :  { %v5114_v55 = vpop.f32.mrb[15].mxu1  ;;  %v5118_v15 = vmax.f32 %v6572_v10, 0.0 }
 0x43f   :  { %v5119_v56 = vmax.f32 %v6573_v54, 0.0  ;;  %5576 = vmatpush1.bf16.msra.mxu0 %v7112_v51 }
 0x440   :  { %5577 = vmatprep.subr.bf16.mxu0 %v7117_v48  ;;  %v5122_v57 = vpack.c.bf16 %v5118_v15, %v5118_v15 }
 0x441   :  { %v5123_v46 = vpack.c.bf16 %v5119_v56, %v5119_v56 }
 0x443   :  { %5578 = vmatpush1.bf16.msra.mxu0 %v7115_v58  ;;  %5593 = vmatprep.mubr.bf16.mxu0 %v5123_v46 }
 0x444   :  { %5579 = vmatprep.subr.bf16.mxu0 %v7120_v52 }
 0x447   :  { %5580 = vmatpush1.bf16.msra.mxu0 %v7118_v59 }
 0x448   :  { %5581 = vmatprep.subr.bf16.mxu0 %v7123_v22 }
 0x44b   :  { %5582 = vmatpush1.bf16.msra.mxu0 %v7121_v60 }
 0x44c   :  { %5583 = vmatprep.subr.bf16.mxu0 %v7126_v62 }
 0x44f   :  { %5584 = vmatpush1.bf16.msra.mxu0 %v7124_v63 }
 0x450   :  { %5585 = vmatprep.subr.bf16.mxu0 %v7129_v1 }
 0x453   :  { %5586 = vmatpush1.bf16.msra.mxu0 %v7127_v3 }
 0x454   :  { %5587 = vmatprep.subr.bf16.mxu0 %v7132_v4 }
 0x457   :  { %5588 = vmatpush1.bf16.msra.mxu0 %v7130_v5 }
 0x458   :  { %5589 = vmatprep.subr.bf16.mxu0 %v7135_v7 }
 0x45b   :  { %5590 = vmatpush1.bf16.msra.mxu0 %v7133_v9 }
 0x45c   :  { %5591 = vmatprep.subr.bf16.mxu0 %v7138_v13 }
 0x45f   :  { %5592 = vmatpush1.bf16.msra.mxu0 %v7136_v14 }
 0x462   :  { %5594 = vmatmul.mubr.bf16.vlgmr.msra.gmra.mrb[20].mxu0 %v5122_v57 }
 0x535   :  { %v5595_v23 = vpop.f32.mrb[20].mxu0 }
 0x536   :  { %v6574_v24 = vadd.f32 %v5595_v23, %v5193_v18  ;;  %v5597_v21 = vpop.f32.mrb[21].mxu0 }
 0x537   :  { %v6575_v61 = vadd.f32 %v5597_v21, %v5197_v20  ;;  %v5599_v25 = vpop.f32.mrb[22].mxu0 }
 0x538   :  { %v5602_v26 = vmax.f32 %v6574_v24, 0.0  ;;  %v5600_v27 = vpop.f32.mrb[23].mxu0 }
 0x539   :  { %v5603_v28 = vmax.f32 %v6575_v61, 0.0 }
 0x53a   :  { %v5604_v32 = vpack.c.bf16 %v5602_v26, %v5602_v26 }
 0x53b   :  { %v5605_v31 = vpack.c.bf16 %v5603_v28, %v5603_v28 }
 0x53d   :  { %5773 = vmatprep.mubr.bf16.mxu1 %v5605_v31 }
 0x53e   :  { %5774 = vmatmul.mubr.bf16.vlgmr.msra.gmra.mrb[16].mxu1 %v5604_v32 }
 0x611   :  { %v6550_v34 = vpop.f32.mrb[16].mxu1 }
 0x612   :  { %v6551_v11 = vpop.f32.mrb[17].mxu1 }
 0x613   :  { %v6552_v8 = vadd.f32 %v6551_v11, %v6550_v34  ;;  %v6553_v41 = vpop.f32.mrb[18].mxu1 }
 0x614   :  { %v6554_v12 = vpop.f32.mrb[19].mxu1 }
 0x615   :  { %v5776_v36 = vadd.f32 %v6552_v8, %v6517_v35 }
 0x617   :  { %5781 = vst [vmem:[#allocation17] sm:$0xff] %v5776_v36 }
 0x618   :  { %7365 = shalt.err (!%p7362_p6)
}
 0x619   :  { %s7366_s22 = scalar_lea.hbm %s7727_s9, 128 }
 0x61a   :  { %p7367_p7 = scmp.ne.s32.totalorder %s7727_s9, %s7366_s22  ;;  %p7370_p8 = scmp.lt.u32.totalorder %s7366_s22, %s7727_s9 }
 0x61c   :  { %p7372_p9 = pnand %p7370_p8, %p7367_p7 }
 0x61e   :  { %7375 = shalt.err (!%p7372_p9)
}
 0x61f   :  { %5791 = dma.vmem_to_hbm [thread:$0]  %s5789_s24, 128, %s7727_s9, [#allocation4]  }
 0x620   :  { %7386 = dma.done.wait [#allocation4], 128  }
 0x621   :  { %7387 = vsyncadd [#allocation4], 4294967168 }
 0x622   :  { %5795 = vsyncpa [#allocation3], 1 }
 0x623   :  { %5796 = vsyncpa [#allocation6], 1 }
 0x624   :  { %5797 = vsyncpa [#allocation9], 1 }
 0x625   :  { %5798 = vsyncpa [#allocation12], 1 }
 0x626   :  { %5799 = vsyncpa [#allocation15], 1 }
 0x627   :  { %5800 = vsyncpa [#allocation4], 1 }

</bundles_post_ra>
